<compile_context>
chip_gen: v7x
topology: tpu7x:2x2x1
jax: 0.10.0
libtpu: 0.0.40
codegen_flags: <defaults>
</compile_context>

<pallas_src>
import functools

import jax
import jax.numpy as jnp
from jax.experimental import pallas as pl
from jax.experimental.pallas import tpu as pltpu

# ---- module hyper-parameters (small but architecture-consistent) -----------
IMAGE_SIZE = 64          # architecture requires 64x64 spatial input
NUM_CLASSES = 10
NC = 3                   # image channels
NDF = 8                  # discriminator base width (kept small)
BN_EPS = 1e-5

_LANE = 128
_MAX_TM = 512


def _round_up(x, m):
    return ((x + m - 1) // m) * m


# ---------------------------------------------------------------------------
# Pallas kernels
# ---------------------------------------------------------------------------
def _matmul_fused_kernel(a_ref, b_ref, s_ref, t_ref, o_ref, *, act):
    # Single-K-tile matmul with fused affine + activation epilogue.
    acc = jnp.dot(a_ref[...], b_ref[...], preferred_element_type=jnp.float32)
    y = acc * s_ref[...] + t_ref[...]            # f32 epilogue (v5e-safe)
    if act == "relu":
        y = jnp.maximum(y, 0.0)
    elif act == "leaky":
        y = jnp.where(y > 0.0, y, 0.2 * y)
    elif act == "sigmoid":
        y = 1.0 / (1.0 + jnp.exp(-y))
    o_ref[...] = y


def matmul_fused(a_pad, b_pad, scale, shift, act):
    """out = act((a_pad @ b_pad) * scale + shift)   (all padded / lane-dense).

    a_pad: (Mp, Kp) bf16, b_pad: (Kp, Np) bf16, scale/shift: (1, Np) f32.
    Single K tile (Kp <= 1024 here); grid over (M tiles, N tiles), both parallel.
    """
    Mp, Kp = a_pad.shape
    Kp2, Np = b_pad.shape
    assert Kp == Kp2
    tm = Mp if Mp <= _MAX_TM else _MAX_TM
    tn = Np if Np <= _MAX_TM else _MAX_TM
    assert Mp % tm == 0 and Np % tn == 0

    return pl.pallas_call(
        functools.partial(_matmul_fused_kernel, act=act),
        out_shape=jax.ShapeDtypeStruct((Mp, Np), jnp.float32),
        grid_spec=pltpu.PrefetchScalarGridSpec(
            num_scalar_prefetch=0,
            grid=(Mp // tm, Np // tn),
            in_specs=[pl.BlockSpec((tm, Kp), lambda i, j: (i, 0)),
                      pl.BlockSpec((Kp, tn), lambda i, j: (0, j)),
                      pl.BlockSpec((1, tn), lambda i, j: (0, j)),
                      pl.BlockSpec((1, tn), lambda i, j: (0, j))],
            out_specs=pl.BlockSpec((tm, tn), lambda i, j: (i, j))),
        compiler_params=pltpu.CompilerParams(
            dimension_semantics=("parallel", "parallel"),
            vmem_limit_bytes=32 * 1024 * 1024),
    )(a_pad, b_pad, scale, shift)


def _affine_act_kernel(x_ref, s_ref, t_ref, o_ref, *, act):
    y = x_ref[...] * s_ref[...] + t_ref[...]
    if act == "leaky":
        y = jnp.where(y > 0.0, y, 0.2 * y)
    o_ref[...] = y


def pallas_affine_act(x_pad, scale, shift, act):
    """y = act(x * scale + shift) on a lane-dense padded (Mp, 128) slab,
    row-tiled with a parallel 1-D grid (keeps double-buffering / batch-safe)."""
    Mp, Np = x_pad.shape
    tm = Mp if Mp <= _MAX_TM else _MAX_TM
    assert Mp % tm == 0
    return pl.pallas_call(
        functools.partial(_affine_act_kernel, act=act),
        out_shape=jax.ShapeDtypeStruct((Mp, Np), jnp.float32),
        grid_spec=pltpu.PrefetchScalarGridSpec(
            num_scalar_prefetch=0,
            grid=(Mp // tm,),
            in_specs=[pl.BlockSpec((tm, Np), lambda i: (i, 0)),
                      pl.BlockSpec((1, Np), lambda i: (0, 0)),
                      pl.BlockSpec((1, Np), lambda i: (0, 0))],
            out_specs=pl.BlockSpec((tm, Np), lambda i: (i, 0))),
        compiler_params=pltpu.CompilerParams(
            dimension_semantics=("parallel",),
            vmem_limit_bytes=32 * 1024 * 1024),
    )(x_pad, scale, shift)


# ---------------------------------------------------------------------------
# XLA glue: im2col, activation padding, one-pass BN stats
# ---------------------------------------------------------------------------
def _im2col(x_nhwc, k, stride, pad):
    # TODO(synk): could use lax.conv_general_dilated_patches / in-kernel gather
    # to avoid the ~k*k HBM expansion at larger batch sizes.
    B, H, W, C = x_nhwc.shape
    xp = jnp.pad(x_nhwc, ((0, 0), (pad, pad), (pad, pad), (0, 0)))
    Ho = (H + 2 * pad - k) // stride + 1
    Wo = (W + 2 * pad - k) // stride + 1
    cols = []
    for i in range(k):
        for j in range(k):
            cols.append(xp[:, i:i + stride * Ho:stride,
                           j:j + stride * Wo:stride, :])
    patches = jnp.stack(cols, axis=3)               # (B, Ho, Wo, k*k, C)
    return patches.reshape(B * Ho * Wo, k * k * C), Ho, Wo


def _pad_activation(a):
    """Cast to bf16 and pad to (16- or 512-multiple rows, 128-multiple cols)."""
    M, K = a.shape
    Kp = _round_up(K, _LANE)
    Mp = _round_up(M, 16)
    if Mp > _MAX_TM:
        Mp = _round_up(Mp, _MAX_TM)
    a = a.astype(jnp.bfloat16)
    if (Mp, Kp) != (M, K):
        a = jnp.pad(a, ((0, Mp - M), (0, Kp - K)))
    return a


def batchnorm_leaky(conv_out_pad, m_real, gamma_pad, beta_pad):
    """Training-mode BatchNorm2d + LeakyReLU(0.2).

    One-pass stats (sum / sum-of-squares) on the padded lane-dense conv output
    (padded rows/cols are zero, so sums are exact; divide by the real M)."""
    s = jnp.sum(conv_out_pad, axis=0)
    ss = jnp.sum(jnp.square(conv_out_pad), axis=0)
    mean = s / m_real
    var = jnp.maximum(ss / m_real - mean * mean, 0.0)     # biased variance
    inv_std = jax.lax.rsqrt(var + BN_EPS)
    scale = gamma_pad * inv_std                           # zero on padded cols
    shift = beta_pad - mean * scale
    return pallas_affine_act(conv_out_pad, scale.reshape(1, -1),
                             shift.reshape(1, -1), "leaky")


# ---------------------------------------------------------------------------
# Parameters (weights packed/padded to bf16 once at init)
# ---------------------------------------------------------------------------
def _pack_conv_weight(w_oihw):
    cout, cin, kh, kw = w_oihw.shape
    # (kh, kw, Cin, Cout) matches im2col patch flattening order
    w_mat = jnp.transpose(w_oihw, (2, 3, 1, 0)).reshape(kh * kw * cin, cout)
    K, N = w_mat.shape
    Kp, Np = _round_up(K, _LANE), _round_up(N, _LANE)
    return jnp.pad(w_mat.astype(jnp.bfloat16), ((0, Kp - K), (0, Np - N)))


def _pad_vec(v):
    n = v.shape[0]
    return jnp.pad(v.astype(jnp.float32), (0, _round_up(n, _LANE) - n))


def init_params(key):
    ks = jax.random.split(key, 8)
    fc_w = 0.02 * jax.random.normal(ks[0], (NUM_CLASSES, 64 * 64), jnp.float32)
    fc_b = 0.01 * jax.random.normal(ks[1], (64 * 64,), jnp.float32)
    w1 = 0.02 * jax.random.normal(ks[2], (NDF, NC + 1, 4, 4), jnp.float32)
    w2 = 0.02 * jax.random.normal(ks[3], (NDF * 2, NDF, 4, 4), jnp.float32)
    w3 = 0.02 * jax.random.normal(ks[4], (NDF * 4, NDF * 2, 4, 4), jnp.float32)
    w4 = 0.02 * jax.random.normal(ks[5], (NDF * 8, NDF * 4, 4, 4), jnp.float32)
    w5 = 0.02 * jax.random.normal(ks[6], (1, NDF * 8, 4, 4), jnp.float32)

    Kfc, Nfc = fc_w.shape
    p = {
        "fc_w_p": jnp.pad(fc_w.astype(jnp.bfloat16),
                          ((0, _round_up(Kfc, _LANE) - Kfc), (0, 0))),
        "fc_scale": jnp.ones((1, Nfc), jnp.float32),
        "fc_shift": fc_b.reshape(1, Nfc),
        "w1_p": _pack_conv_weight(w1),
        "w2_p": _pack_conv_weight(w2),
        "w3_p": _pack_conv_weight(w3),
        "w4_p": _pack_conv_weight(w4),
        "w5_p": _pack_conv_weight(w5),
        "g2_p": _pad_vec(jnp.ones((NDF * 2,), jnp.float32)),
        "b2_p": _pad_vec(jnp.zeros((NDF * 2,), jnp.float32)),
        "g3_p": _pad_vec(jnp.ones((NDF * 4,), jnp.float32)),
        "b3_p": _pad_vec(jnp.zeros((NDF * 4,), jnp.float32)),
        "g4_p": _pad_vec(jnp.ones((NDF * 8,), jnp.float32)),
        "b4_p": _pad_vec(jnp.zeros((NDF * 8,), jnp.float32)),
    }
    return p


# ---------------------------------------------------------------------------
# Forward pass
# ---------------------------------------------------------------------------
def discriminator64_forward(params, x_nchw, y):
    B = x_nchw.shape[0]
    ones128 = jnp.ones((1, _LANE), jnp.float32)
    zeros128 = jnp.zeros((1, _LANE), jnp.float32)

    # y_label: Linear(NUM_CLASSES, 64*64) + ReLU  (fused bias+ReLU epilogue)
    h = matmul_fused(_pad_activation(y), params["fc_w_p"],
                     params["fc_scale"], params["fc_shift"], "relu")
    y_img = h[:B, :].reshape(B, 64, 64, 1)          # == view(-1, 1, 64, 64)

    # concat([x, y], channel) in NHWC
    x_nhwc = jnp.transpose(x_nchw, (0, 2, 3, 1)).astype(jnp.float32)
    inp = jnp.concatenate([x_nhwc, y_img], axis=-1)  # (B, 64, 64, nc+1)

    # conv1 + LeakyReLU (fused epilogue)
    cols, Ho, Wo = _im2col(inp, 4, 2, 1)             # 64 -> 32
    c1 = matmul_fused(_pad_activation(cols), params["w1_p"],
                      ones128, zeros128, "leaky")
    m1 = B * Ho * Wo
    h1 = c1[:m1, :NDF].reshape(B, Ho, Wo, NDF)

    # conv2 + BN + LeakyReLU
    cols, Ho, Wo = _im2col(h1, 4, 2, 1)              # 32 -> 16
    c2 = matmul_fused(_pad_activation(cols), params["w2_p"],
                      ones128, zeros128, "none")
    m2 = B * Ho * Wo
    c2 = batchnorm_leaky(c2, m2, params["g2_p"], params["b2_p"])
    h2 = c2[:m2, :NDF * 2].reshape(B, Ho, Wo, NDF * 2)

    # conv3 + BN + LeakyReLU
    cols, Ho, Wo = _im2col(h2, 4, 2, 1)              # 16 -> 8
    c3 = matmul_fused(_pad_activation(cols), params["w3_p"],
                      ones128, zeros128, "none")
    m3 = B * Ho * Wo
    c3 = batchnorm_leaky(c3, m3, params["g3_p"], params["b3_p"])
    h3 = c3[:m3, :NDF * 4].reshape(B, Ho, Wo, NDF * 4)

    # conv4 + BN + LeakyReLU
    cols, Ho, Wo = _im2col(h3, 4, 2, 1)              # 8 -> 4
    c4 = matmul_fused(_pad_activation(cols), params["w4_p"],
                      ones128, zeros128, "none")
    m4 = B * Ho * Wo
    c4 = batchnorm_leaky(c4, m4, params["g4_p"], params["b4_p"])
    h4 = c4[:m4, :NDF * 8].reshape(B, Ho, Wo, NDF * 8)

    # conv5 (4x4, stride 1, pad 0) + Sigmoid (fused epilogue)
    cols, Ho, Wo = _im2col(h4, 4, 1, 0)              # 4 -> 1
    c5 = matmul_fused(_pad_activation(cols), params["w5_p"],
                      ones128, zeros128, "sigmoid")

    # output.view(-1, 1).squeeze(1) -> (B,)
    return c5[:B * Ho * Wo, 0]


# ---------------------------------------------------------------------------
if __name__ == "__main__":
    key = jax.random.PRNGKey(0)
    kp, kx, ky = jax.random.split(key, 3)

    params = init_params(kp)
    batch = 2
    x = jax.random.normal(kx, (batch, NC, IMAGE_SIZE, IMAGE_SIZE), jnp.float32)
    y = jax.nn.one_hot(jax.random.randint(ky, (batch,), 0, NUM_CLASSES),
                       NUM_CLASSES).astype(jnp.float32)

    fwd = jax.jit(discriminator64_forward)
    out = fwd(params, x, y)
    out = jax.block_until_ready(out)

    assert out.shape == (batch,)
    assert bool(jnp.all(jnp.isfinite(out)))
    assert bool(jnp.all((out >= 0.0) & (out <= 1.0)))
    print("KERNEL_OK")
</pallas_src>

<mosaic_0001>
module attributes {stable_mosaic.version = 11 : i64} {
  func.func @_matmul_fused_kernel(%arg0: i32, %arg1: i32, %arg2: memref<16x128xbf16, #tpu.memory_space<vmem>>, %arg3: memref<128x512xbf16, #tpu.memory_space<vmem>>, %arg4: memref<1x512xf32, #tpu.memory_space<vmem>>, %arg5: memref<1x512xf32, #tpu.memory_space<vmem>>, %arg6: memref<16x512xf32, #tpu.memory_space<vmem>>) attributes {dimension_semantics = [#tpu.dimension_semantics<parallel>, #tpu.dimension_semantics<parallel>], iteration_bounds = array<i64: 1, 8>, scalar_prefetch = 0 : i64, scratch_operands = 0 : i64, tpu.core_type = #tpu.core_type<tc>, window_params = [{transform_indices = @transform_0, window_bounds = array<i64: 16, 128>}, {transform_indices = @transform_1, window_bounds = array<i64: 128, 512>}, {transform_indices = @transform_2, window_bounds = array<i64: 1, 512>}, {transform_indices = @transform_3, window_bounds = array<i64: 1, 512>}, {transform_indices = @transform_4, window_bounds = array<i64: 16, 512>}]} {
    %c0 = arith.constant 0 : index
    %c0_0 = arith.constant 0 : index
    %0 = vector.load %arg2[%c0, %c0_0] : memref<16x128xbf16, #tpu.memory_space<vmem>>, vector<16x128xbf16>
    %c0_1 = arith.constant 0 : index
    %c0_2 = arith.constant 0 : index
    %1 = vector.load %arg3[%c0_1, %c0_2] : memref<128x512xbf16, #tpu.memory_space<vmem>>, vector<128x512xbf16>
    %cst = arith.constant dense<0.000000e+00> : vector<16x512xf32>
    %2 = tpu.matmul %0, %1, %cst {dimension_numbers = #tpu.dot_dimension_numbers<[1], [0], [0], [1], [0, 0, 1, 1], [], []>} : vector<16x128xbf16>, vector<128x512xbf16>, vector<16x512xf32> -> vector<16x512xf32>
    %c0_3 = arith.constant 0 : index
    %c0_4 = arith.constant 0 : index
    %3 = vector.load %arg4[%c0_3, %c0_4] : memref<1x512xf32, #tpu.memory_space<vmem>>, vector<1x512xf32>
    %4 = vector.broadcast %3 : vector<1x512xf32> to vector<16x512xf32>
    %5 = arith.mulf %2, %4 : vector<16x512xf32>
    %c0_5 = arith.constant 0 : index
    %c0_6 = arith.constant 0 : index
    %6 = vector.load %arg5[%c0_5, %c0_6] : memref<1x512xf32, #tpu.memory_space<vmem>>, vector<1x512xf32>
    %7 = vector.broadcast %6 : vector<1x512xf32> to vector<16x512xf32>
    %8 = arith.addf %5, %7 : vector<16x512xf32>
    %cst_7 = arith.constant 0.000000e+00 : f32
    %9 = vector.broadcast %cst_7 : f32 to vector<16x512xf32>
    %10 = arith.maximumf %8, %9 : vector<16x512xf32>
    %c0_8 = arith.constant 0 : index
    %c0_9 = arith.constant 0 : index
    %11 = vector.load %arg6[%c0_8, %c0_9] : memref<16x512xf32, #tpu.memory_space<vmem>>, vector<16x512xf32>
    tpu.vector_store %arg6[%c0_8, %c0_9], %10 {strides = array<i32>} : memref<16x512xf32, #tpu.memory_space<vmem>>, vector<16x512xf32>,
    return
  }
  func.func @transform_0(%arg0: i32, %arg1: i32) -> (i32, i32) {
    %c0_i32 = arith.constant 0 : i32
    %c0_i32_0 = arith.constant 0 : i32
    return %arg0, %c0_i32 : i32, i32
  }
  func.func @transform_1(%arg0: i32, %arg1: i32) -> (i32, i32) {
    %c0_i32 = arith.constant 0 : i32
    %c0_i32_0 = arith.constant 0 : i32
    return %c0_i32, %arg1 : i32, i32
  }
  func.func @transform_2(%arg0: i32, %arg1: i32) -> (i32, i32) {
    %c0_i32 = arith.constant 0 : i32
    %c0_i32_0 = arith.constant 0 : i32
    return %c0_i32, %arg1 : i32, i32
  }
  func.func @transform_3(%arg0: i32, %arg1: i32) -> (i32, i32) {
    %c0_i32 = arith.constant 0 : i32
    %c0_i32_0 = arith.constant 0 : i32
    return %c0_i32, %arg1 : i32, i32
  }
  func.func @transform_4(%arg0: i32, %arg1: i32) -> (i32, i32) {
    %c0_i32 = arith.constant 0 : i32
    return %arg0, %arg1 : i32, i32
  }
}

module attributes {stable_mosaic.version = 11 : i64} {
  func.func @_matmul_fused_kernel(%arg0: i32, %arg1: i32, %arg2: memref<512x128xbf16, #tpu.memory_space<vmem>>, %arg3: memref<128x128xbf16, #tpu.memory_space<vmem>>, %arg4: memref<1x128xf32, #tpu.memory_space<vmem>>, %arg5: memref<1x128xf32, #tpu.memory_space<vmem>>, %arg6: memref<512x128xf32, #tpu.memory_space<vmem>>) attributes {dimension_semantics = [#tpu.dimension_semantics<parallel>, #tpu.dimension_semantics<parallel>], iteration_bounds = array<i64: 4, 1>, scalar_prefetch = 0 : i64, scratch_operands = 0 : i64, tpu.core_type = #tpu.core_type<tc>, window_params = [{transform_indices = @transform_0, window_bounds = array<i64: 512, 128>}, {transform_indices = @transform_1, window_bounds = array<i64: 128, 128>}, {transform_indices = @transform_2, window_bounds = array<i64: 1, 128>}, {transform_indices = @transform_3, window_bounds = array<i64: 1, 128>}, {transform_indices = @transform_4, window_bounds = array<i64: 512, 128>}]} {
    %c0 = arith.constant 0 : index
    %c0_0 = arith.constant 0 : index
    %0 = vector.load %arg2[%c0, %c0_0] : memref<512x128xbf16, #tpu.memory_space<vmem>>, vector<512x128xbf16>
    %c0_1 = arith.constant 0 : index
    %c0_2 = arith.constant 0 : index
    %1 = vector.load %arg3[%c0_1, %c0_2] : memref<128x128xbf16, #tpu.memory_space<vmem>>, vector<128x128xbf16>
    %cst = arith.constant dense<0.000000e+00> : vector<512x128xf32>
    %2 = tpu.matmul %0, %1, %cst {dimension_numbers = #tpu.dot_dimension_numbers<[1], [0], [0], [1], [0, 0, 1, 1], [], []>} : vector<512x128xbf16>, vector<128x128xbf16>, vector<512x128xf32> -> vector<512x128xf32>
    %c0_3 = arith.constant 0 : index
    %c0_4 = arith.constant 0 : index
    %3 = vector.load %arg4[%c0_3, %c0_4] : memref<1x128xf32, #tpu.memory_space<vmem>>, vector<1x128xf32>
    %4 = vector.broadcast %3 : vector<1x128xf32> to vector<512x128xf32>
    %5 = arith.mulf %2, %4 : vector<512x128xf32>
    %c0_5 = arith.constant 0 : index
    %c0_6 = arith.constant 0 : index
    %6 = vector.load %arg5[%c0_5, %c0_6] : memref<1x128xf32, #tpu.memory_space<vmem>>, vector<1x128xf32>
    %7 = vector.broadcast %6 : vector<1x128xf32> to vector<512x128xf32>
    %8 = arith.addf %5, %7 : vector<512x128xf32>
    %cst_7 = arith.constant 0.000000e+00 : f32
    %9 = vector.broadcast %cst_7 : f32 to vector<512x128xf32>
    %10 = arith.cmpf ogt, %8, %9 : vector<512x128xf32>
    %cst_8 = arith.constant 2.000000e-01 : f32
    %11 = vector.broadcast %cst_8 : f32 to vector<512x128xf32>
    %12 = arith.mulf %11, %8 : vector<512x128xf32>
    %13 = arith.select %10, %8, %12 : vector<512x128xi1>, vector<512x128xf32>
    %c0_9 = arith.constant 0 : index
    %c0_10 = arith.constant 0 : index
    %14 = vector.load %arg6[%c0_9, %c0_10] : memref<512x128xf32, #tpu.memory_space<vmem>>, vector<512x128xf32>
    tpu.vector_store %arg6[%c0_9, %c0_10], %13 {strides = array<i32>} : memref<512x128xf32, #tpu.memory_space<vmem>>, vector<512x128xf32>,
    return
  }
  func.func @transform_0(%arg0: i32, %arg1: i32) -> (i32, i32) {
    %c0_i32 = arith.constant 0 : i32
    %c0_i32_0 = arith.constant 0 : i32
    return %arg0, %c0_i32 : i32, i32
  }
  func.func @transform_1(%arg0: i32, %arg1: i32) -> (i32, i32) {
    %c0_i32 = arith.constant 0 : i32
    %c0_i32_0 = arith.constant 0 : i32
    return %c0_i32, %arg1 : i32, i32
  }
  func.func @transform_2(%arg0: i32, %arg1: i32) -> (i32, i32) {
    %c0_i32 = arith.constant 0 : i32
    %c0_i32_0 = arith.constant 0 : i32
    return %c0_i32, %arg1 : i32, i32
  }
  func.func @transform_3(%arg0: i32, %arg1: i32) -> (i32, i32) {
    %c0_i32 = arith.constant 0 : i32
    %c0_i32_0 = arith.constant 0 : i32
    return %c0_i32, %arg1 : i32, i32
  }
  func.func @transform_4(%arg0: i32, %arg1: i32) -> (i32, i32) {
    %c0_i32 = arith.constant 0 : i32
    return %arg0, %arg1 : i32, i32
  }
}

module attributes {stable_mosaic.version = 11 : i64} {
  func.func @_matmul_fused_kernel(%arg0: i32, %arg1: i32, %arg2: memref<512x128xbf16, #tpu.memory_space<vmem>>, %arg3: memref<128x128xbf16, #tpu.memory_space<vmem>>, %arg4: memref<1x128xf32, #tpu.memory_space<vmem>>, %arg5: memref<1x128xf32, #tpu.memory_space<vmem>>, %arg6: memref<512x128xf32, #tpu.memory_space<vmem>>) attributes {dimension_semantics = [#tpu.dimension_semantics<parallel>, #tpu.dimension_semantics<parallel>], iteration_bounds = array<i64: 1, 1>, scalar_prefetch = 0 : i64, scratch_operands = 0 : i64, tpu.core_type = #tpu.core_type<tc>, window_params = [{transform_indices = @transform_0, window_bounds = array<i64: 512, 128>}, {transform_indices = @transform_1, window_bounds = array<i64: 128, 128>}, {transform_indices = @transform_2, window_bounds = array<i64: 1, 128>}, {transform_indices = @transform_3, window_bounds = array<i64: 1, 128>}, {transform_indices = @transform_4, window_bounds = array<i64: 512, 128>}]} {
    %c0 = arith.constant 0 : index
    %c0_0 = arith.constant 0 : index
    %0 = vector.load %arg2[%c0, %c0_0] : memref<512x128xbf16, #tpu.memory_space<vmem>>, vector<512x128xbf16>
    %c0_1 = arith.constant 0 : index
    %c0_2 = arith.constant 0 : index
    %1 = vector.load %arg3[%c0_1, %c0_2] : memref<128x128xbf16, #tpu.memory_space<vmem>>, vector<128x128xbf16>
    %cst = arith.constant dense<0.000000e+00> : vector<512x128xf32>
    %2 = tpu.matmul %0, %1, %cst {dimension_numbers = #tpu.dot_dimension_numbers<[1], [0], [0], [1], [0, 0, 1, 1], [], []>} : vector<512x128xbf16>, vector<128x128xbf16>, vector<512x128xf32> -> vector<512x128xf32>
    %c0_3 = arith.constant 0 : index
    %c0_4 = arith.constant 0 : index
    %3 = vector.load %arg4[%c0_3, %c0_4] : memref<1x128xf32, #tpu.memory_space<vmem>>, vector<1x128xf32>
    %4 = vector.broadcast %3 : vector<1x128xf32> to vector<512x128xf32>
    %5 = arith.mulf %2, %4 : vector<512x128xf32>
    %c0_5 = arith.constant 0 : index
    %c0_6 = arith.constant 0 : index
    %6 = vector.load %arg5[%c0_5, %c0_6] : memref<1x128xf32, #tpu.memory_space<vmem>>, vector<1x128xf32>
    %7 = vector.broadcast %6 : vector<1x128xf32> to vector<512x128xf32>
    %8 = arith.addf %5, %7 : vector<512x128xf32>
    %c0_7 = arith.constant 0 : index
    %c0_8 = arith.constant 0 : index
    %9 = vector.load %arg6[%c0_7, %c0_8] : memref<512x128xf32, #tpu.memory_space<vmem>>, vector<512x128xf32>
    tpu.vector_store %arg6[%c0_7, %c0_8], %8 {strides = array<i32>} : memref<512x128xf32, #tpu.memory_space<vmem>>, vector<512x128xf32>,
    return
  }
  func.func @transform_0(%arg0: i32, %arg1: i32) -> (i32, i32) {
    %c0_i32 = arith.constant 0 : i32
    %c0_i32_0 = arith.constant 0 : i32
    return %arg0, %c0_i32 : i32, i32
  }
  func.func @transform_1(%arg0: i32, %arg1: i32) -> (i32, i32) {
    %c0_i32 = arith.constant 0 : i32
    %c0_i32_0 = arith.constant 0 : i32
    return %c0_i32, %arg1 : i32, i32
  }
  func.func @transform_2(%arg0: i32, %arg1: i32) -> (i32, i32) {
    %c0_i32 = arith.constant 0 : i32
    %c0_i32_0 = arith.constant 0 : i32
    return %c0_i32, %arg1 : i32, i32
  }
  func.func @transform_3(%arg0: i32, %arg1: i32) -> (i32, i32) {
    %c0_i32 = arith.constant 0 : i32
    %c0_i32_0 = arith.constant 0 : i32
    return %c0_i32, %arg1 : i32, i32
  }
  func.func @transform_4(%arg0: i32, %arg1: i32) -> (i32, i32) {
    %c0_i32 = arith.constant 0 : i32
    return %arg0, %arg1 : i32, i32
  }
}

module attributes {stable_mosaic.version = 11 : i64} {
  func.func @_affine_act_kernel(%arg0: i32, %arg1: memref<512x128xf32, #tpu.memory_space<vmem>>, %arg2: memref<1x128xf32, #tpu.memory_space<vmem>>, %arg3: memref<1x128xf32, #tpu.memory_space<vmem>>, %arg4: memref<512x128xf32, #tpu.memory_space<vmem>>) attributes {dimension_semantics = [#tpu.dimension_semantics<parallel>], iteration_bounds = array<i64: 1>, scalar_prefetch = 0 : i64, scratch_operands = 0 : i64, tpu.core_type = #tpu.core_type<tc>, window_params = [{transform_indices = @transform_0, window_bounds = array<i64: 512, 128>}, {pipeline_mode = #tpu.pipeline_mode<synchronous>, transform_indices = @transform_1, window_bounds = array<i64: 1, 128>}, {pipeline_mode = #tpu.pipeline_mode<synchronous>, transform_indices = @transform_2, window_bounds = array<i64: 1, 128>}, {transform_indices = @transform_3, window_bounds = array<i64: 512, 128>}]} {
    %c0 = arith.constant 0 : index
    %c0_0 = arith.constant 0 : index
    %0 = vector.load %arg1[%c0, %c0_0] : memref<512x128xf32, #tpu.memory_space<vmem>>, vector<512x128xf32>
    %c0_1 = arith.constant 0 : index
    %c0_2 = arith.constant 0 : index
    %1 = vector.load %arg2[%c0_1, %c0_2] : memref<1x128xf32, #tpu.memory_space<vmem>>, vector<1x128xf32>
    %2 = vector.broadcast %1 : vector<1x128xf32> to vector<512x128xf32>
    %3 = arith.mulf %0, %2 : vector<512x128xf32>
    %c0_3 = arith.constant 0 : index
    %c0_4 = arith.constant 0 : index
    %4 = vector.load %arg3[%c0_3, %c0_4] : memref<1x128xf32, #tpu.memory_space<vmem>>, vector<1x128xf32>
    %5 = vector.broadcast %4 : vector<1x128xf32> to vector<512x128xf32>
    %6 = arith.addf %3, %5 : vector<512x128xf32>
    %cst = arith.constant 0.000000e+00 : f32
    %7 = vector.broadcast %cst : f32 to vector<512x128xf32>
    %8 = arith.cmpf ogt, %6, %7 : vector<512x128xf32>
    %cst_5 = arith.constant 2.000000e-01 : f32
    %9 = vector.broadcast %cst_5 : f32 to vector<512x128xf32>
    %10 = arith.mulf %9, %6 : vector<512x128xf32>
    %11 = arith.select %8, %6, %10 : vector<512x128xi1>, vector<512x128xf32>
    %c0_6 = arith.constant 0 : index
    %c0_7 = arith.constant 0 : index
    %12 = vector.load %arg4[%c0_6, %c0_7] : memref<512x128xf32, #tpu.memory_space<vmem>>, vector<512x128xf32>
    tpu.vector_store %arg4[%c0_6, %c0_7], %11 {strides = array<i32>} : memref<512x128xf32, #tpu.memory_space<vmem>>, vector<512x128xf32>,
    return
  }
  func.func @transform_0(%arg0: i32) -> (i32, i32) {
    %c0_i32 = arith.constant 0 : i32
    %c0_i32_0 = arith.constant 0 : i32
    return %arg0, %c0_i32 : i32, i32
  }
  func.func @transform_1(%arg0: i32) -> (i32, i32) {
    %c0_i32 = arith.constant 0 : i32
    %c0_i32_0 = arith.constant 0 : i32
    %c0_i32_1 = arith.constant 0 : i32
    return %c0_i32, %c0_i32_0 : i32, i32
  }
  func.func @transform_2(%arg0: i32) -> (i32, i32) {
    %c0_i32 = arith.constant 0 : i32
    %c0_i32_0 = arith.constant 0 : i32
    %c0_i32_1 = arith.constant 0 : i32
    return %c0_i32, %c0_i32_0 : i32, i32
  }
  func.func @transform_3(%arg0: i32) -> (i32, i32) {
    %c0_i32 = arith.constant 0 : i32
    %c0_i32_0 = arith.constant 0 : i32
    return %arg0, %c0_i32 : i32, i32
  }
}

module attributes {stable_mosaic.version = 11 : i64} {
  func.func @_matmul_fused_kernel(%arg0: i32, %arg1: i32, %arg2: memref<128x256xbf16, #tpu.memory_space<vmem>>, %arg3: memref<256x128xbf16, #tpu.memory_space<vmem>>, %arg4: memref<1x128xf32, #tpu.memory_space<vmem>>, %arg5: memref<1x128xf32, #tpu.memory_space<vmem>>, %arg6: memref<128x128xf32, #tpu.memory_space<vmem>>) attributes {dimension_semantics = [#tpu.dimension_semantics<parallel>, #tpu.dimension_semantics<parallel>], iteration_bounds = array<i64: 1, 1>, scalar_prefetch = 0 : i64, scratch_operands = 0 : i64, tpu.core_type = #tpu.core_type<tc>, window_params = [{transform_indices = @transform_0, window_bounds = array<i64: 128, 256>}, {transform_indices = @transform_1, window_bounds = array<i64: 256, 128>}, {transform_indices = @transform_2, window_bounds = array<i64: 1, 128>}, {transform_indices = @transform_3, window_bounds = array<i64: 1, 128>}, {transform_indices = @transform_4, window_bounds = array<i64: 128, 128>}]} {
    %c0 = arith.constant 0 : index
    %c0_0 = arith.constant 0 : index
    %0 = vector.load %arg2[%c0, %c0_0] : memref<128x256xbf16, #tpu.memory_space<vmem>>, vector<128x256xbf16>
    %c0_1 = arith.constant 0 : index
    %c0_2 = arith.constant 0 : index
    %1 = vector.load %arg3[%c0_1, %c0_2] : memref<256x128xbf16, #tpu.memory_space<vmem>>, vector<256x128xbf16>
    %cst = arith.constant dense<0.000000e+00> : vector<128x128xf32>
    %2 = tpu.matmul %0, %1, %cst {dimension_numbers = #tpu.dot_dimension_numbers<[1], [0], [0], [1], [0, 0, 1, 1], [], []>} : vector<128x256xbf16>, vector<256x128xbf16>, vector<128x128xf32> -> vector<128x128xf32>
    %c0_3 = arith.constant 0 : index
    %c0_4 = arith.constant 0 : index
    %3 = vector.load %arg4[%c0_3, %c0_4] : memref<1x128xf32, #tpu.memory_space<vmem>>, vector<1x128xf32>
    %4 = vector.broadcast %3 : vector<1x128xf32> to vector<128x128xf32>
    %5 = arith.mulf %2, %4 : vector<128x128xf32>
    %c0_5 = arith.constant 0 : index
    %c0_6 = arith.constant 0 : index
    %6 = vector.load %arg5[%c0_5, %c0_6] : memref<1x128xf32, #tpu.memory_space<vmem>>, vector<1x128xf32>
    %7 = vector.broadcast %6 : vector<1x128xf32> to vector<128x128xf32>
    %8 = arith.addf %5, %7 : vector<128x128xf32>
    %c0_7 = arith.constant 0 : index
    %c0_8 = arith.constant 0 : index
    %9 = vector.load %arg6[%c0_7, %c0_8] : memref<128x128xf32, #tpu.memory_space<vmem>>, vector<128x128xf32>
    tpu.vector_store %arg6[%c0_7, %c0_8], %8 {strides = array<i32>} : memref<128x128xf32, #tpu.memory_space<vmem>>, vector<128x128xf32>,
    return
  }
  func.func @transform_0(%arg0: i32, %arg1: i32) -> (i32, i32) {
    %c0_i32 = arith.constant 0 : i32
    %c0_i32_0 = arith.constant 0 : i32
    return %arg0, %c0_i32 : i32, i32
  }
  func.func @transform_1(%arg0: i32, %arg1: i32) -> (i32, i32) {
    %c0_i32 = arith.constant 0 : i32
    %c0_i32_0 = arith.constant 0 : i32
    return %c0_i32, %arg1 : i32, i32
  }
  func.func @transform_2(%arg0: i32, %arg1: i32) -> (i32, i32) {
    %c0_i32 = arith.constant 0 : i32
    %c0_i32_0 = arith.constant 0 : i32
    return %c0_i32, %arg1 : i32, i32
  }
  func.func @transform_3(%arg0: i32, %arg1: i32) -> (i32, i32) {
    %c0_i32 = arith.constant 0 : i32
    %c0_i32_0 = arith.constant 0 : i32
    return %c0_i32, %arg1 : i32, i32
  }
  func.func @transform_4(%arg0: i32, %arg1: i32) -> (i32, i32) {
    %c0_i32 = arith.constant 0 : i32
    return %arg0, %arg1 : i32, i32
  }
}

module attributes {stable_mosaic.version = 11 : i64} {
  func.func @_affine_act_kernel(%arg0: i32, %arg1: memref<128x128xf32, #tpu.memory_space<vmem>>, %arg2: memref<1x128xf32, #tpu.memory_space<vmem>>, %arg3: memref<1x128xf32, #tpu.memory_space<vmem>>, %arg4: memref<128x128xf32, #tpu.memory_space<vmem>>) attributes {dimension_semantics = [#tpu.dimension_semantics<parallel>], iteration_bounds = array<i64: 1>, scalar_prefetch = 0 : i64, scratch_operands = 0 : i64, tpu.core_type = #tpu.core_type<tc>, window_params = [{transform_indices = @transform_0, window_bounds = array<i64: 128, 128>}, {pipeline_mode = #tpu.pipeline_mode<synchronous>, transform_indices = @transform_1, window_bounds = array<i64: 1, 128>}, {pipeline_mode = #tpu.pipeline_mode<synchronous>, transform_indices = @transform_2, window_bounds = array<i64: 1, 128>}, {transform_indices = @transform_3, window_bounds = array<i64: 128, 128>}]} {
    %c0 = arith.constant 0 : index
    %c0_0 = arith.constant 0 : index
    %0 = vector.load %arg1[%c0, %c0_0] : memref<128x128xf32, #tpu.memory_space<vmem>>, vector<128x128xf32>
    %c0_1 = arith.constant 0 : index
    %c0_2 = arith.constant 0 : index
    %1 = vector.load %arg2[%c0_1, %c0_2] : memref<1x128xf32, #tpu.memory_space<vmem>>, vector<1x128xf32>
    %2 = vector.broadcast %1 : vector<1x128xf32> to vector<128x128xf32>
    %3 = arith.mulf %0, %2 : vector<128x128xf32>
    %c0_3 = arith.constant 0 : index
    %c0_4 = arith.constant 0 : index
    %4 = vector.load %arg3[%c0_3, %c0_4] : memref<1x128xf32, #tpu.memory_space<vmem>>, vector<1x128xf32>
    %5 = vector.broadcast %4 : vector<1x128xf32> to vector<128x128xf32>
    %6 = arith.addf %3, %5 : vector<128x128xf32>
    %cst = arith.constant 0.000000e+00 : f32
    %7 = vector.broadcast %cst : f32 to vector<128x128xf32>
    %8 = arith.cmpf ogt, %6, %7 : vector<128x128xf32>
    %cst_5 = arith.constant 2.000000e-01 : f32
    %9 = vector.broadcast %cst_5 : f32 to vector<128x128xf32>
    %10 = arith.mulf %9, %6 : vector<128x128xf32>
    %11 = arith.select %8, %6, %10 : vector<128x128xi1>, vector<128x128xf32>
    %c0_6 = arith.constant 0 : index
    %c0_7 = arith.constant 0 : index
    %12 = vector.load %arg4[%c0_6, %c0_7] : memref<128x128xf32, #tpu.memory_space<vmem>>, vector<128x128xf32>
    tpu.vector_store %arg4[%c0_6, %c0_7], %11 {strides = array<i32>} : memref<128x128xf32, #tpu.memory_space<vmem>>, vector<128x128xf32>,
    return
  }
  func.func @transform_0(%arg0: i32) -> (i32, i32) {
    %c0_i32 = arith.constant 0 : i32
    %c0_i32_0 = arith.constant 0 : i32
    return %arg0, %c0_i32 : i32, i32
  }
  func.func @transform_1(%arg0: i32) -> (i32, i32) {
    %c0_i32 = arith.constant 0 : i32
    %c0_i32_0 = arith.constant 0 : i32
    %c0_i32_1 = arith.constant 0 : i32
    return %c0_i32, %c0_i32_0 : i32, i32
  }
  func.func @transform_2(%arg0: i32) -> (i32, i32) {
    %c0_i32 = arith.constant 0 : i32
    %c0_i32_0 = arith.constant 0 : i32
    %c0_i32_1 = arith.constant 0 : i32
    return %c0_i32, %c0_i32_0 : i32, i32
  }
  func.func @transform_3(%arg0: i32) -> (i32, i32) {
    %c0_i32 = arith.constant 0 : i32
    %c0_i32_0 = arith.constant 0 : i32
    return %arg0, %c0_i32 : i32, i32
  }
}

module attributes {stable_mosaic.version = 11 : i64} {
  func.func @_matmul_fused_kernel(%arg0: i32, %arg1: i32, %arg2: memref<32x512xbf16, #tpu.memory_space<vmem>>, %arg3: memref<512x128xbf16, #tpu.memory_space<vmem>>, %arg4: memref<1x128xf32, #tpu.memory_space<vmem>>, %arg5: memref<1x128xf32, #tpu.memory_space<vmem>>, %arg6: memref<32x128xf32, #tpu.memory_space<vmem>>) attributes {dimension_semantics = [#tpu.dimension_semantics<parallel>, #tpu.dimension_semantics<parallel>], iteration_bounds = array<i64: 1, 1>, scalar_prefetch = 0 : i64, scratch_operands = 0 : i64, tpu.core_type = #tpu.core_type<tc>, window_params = [{transform_indices = @transform_0, window_bounds = array<i64: 32, 512>}, {transform_indices = @transform_1, window_bounds = array<i64: 512, 128>}, {transform_indices = @transform_2, window_bounds = array<i64: 1, 128>}, {transform_indices = @transform_3, window_bounds = array<i64: 1, 128>}, {transform_indices = @transform_4, window_bounds = array<i64: 32, 128>}]} {
    %c0 = arith.constant 0 : index
    %c0_0 = arith.constant 0 : index
    %0 = vector.load %arg2[%c0, %c0_0] : memref<32x512xbf16, #tpu.memory_space<vmem>>, vector<32x512xbf16>
    %c0_1 = arith.constant 0 : index
    %c0_2 = arith.constant 0 : index
    %1 = vector.load %arg3[%c0_1, %c0_2] : memref<512x128xbf16, #tpu.memory_space<vmem>>, vector<512x128xbf16>
    %cst = arith.constant dense<0.000000e+00> : vector<32x128xf32>
    %2 = tpu.matmul %0, %1, %cst {dimension_numbers = #tpu.dot_dimension_numbers<[1], [0], [0], [1], [0, 0, 1, 1], [], []>} : vector<32x512xbf16>, vector<512x128xbf16>, vector<32x128xf32> -> vector<32x128xf32>
    %c0_3 = arith.constant 0 : index
    %c0_4 = arith.constant 0 : index
    %3 = vector.load %arg4[%c0_3, %c0_4] : memref<1x128xf32, #tpu.memory_space<vmem>>, vector<1x128xf32>
    %4 = vector.broadcast %3 : vector<1x128xf32> to vector<32x128xf32>
    %5 = arith.mulf %2, %4 : vector<32x128xf32>
    %c0_5 = arith.constant 0 : index
    %c0_6 = arith.constant 0 : index
    %6 = vector.load %arg5[%c0_5, %c0_6] : memref<1x128xf32, #tpu.memory_space<vmem>>, vector<1x128xf32>
    %7 = vector.broadcast %6 : vector<1x128xf32> to vector<32x128xf32>
    %8 = arith.addf %5, %7 : vector<32x128xf32>
    %c0_7 = arith.constant 0 : index
    %c0_8 = arith.constant 0 : index
    %9 = vector.load %arg6[%c0_7, %c0_8] : memref<32x128xf32, #tpu.memory_space<vmem>>, vector<32x128xf32>
    tpu.vector_store %arg6[%c0_7, %c0_8], %8 {strides = array<i32>} : memref<32x128xf32, #tpu.memory_space<vmem>>, vector<32x128xf32>,
    return
  }
  func.func @transform_0(%arg0: i32, %arg1: i32) -> (i32, i32) {
    %c0_i32 = arith.constant 0 : i32
    %c0_i32_0 = arith.constant 0 : i32
    return %arg0, %c0_i32 : i32, i32
  }
  func.func @transform_1(%arg0: i32, %arg1: i32) -> (i32, i32) {
    %c0_i32 = arith.constant 0 : i32
    %c0_i32_0 = arith.constant 0 : i32
    return %c0_i32, %arg1 : i32, i32
  }
  func.func @transform_2(%arg0: i32, %arg1: i32) -> (i32, i32) {
    %c0_i32 = arith.constant 0 : i32
    %c0_i32_0 = arith.constant 0 : i32
    return %c0_i32, %arg1 : i32, i32
  }
  func.func @transform_3(%arg0: i32, %arg1: i32) -> (i32, i32) {
    %c0_i32 = arith.constant 0 : i32
    %c0_i32_0 = arith.constant 0 : i32
    return %c0_i32, %arg1 : i32, i32
  }
  func.func @transform_4(%arg0: i32, %arg1: i32) -> (i32, i32) {
    %c0_i32 = arith.constant 0 : i32
    return %arg0, %arg1 : i32, i32
  }
}

module attributes {stable_mosaic.version = 11 : i64} {
  func.func @_affine_act_kernel(%arg0: i32, %arg1: memref<32x128xf32, #tpu.memory_space<vmem>>, %arg2: memref<1x128xf32, #tpu.memory_space<vmem>>, %arg3: memref<1x128xf32, #tpu.memory_space<vmem>>, %arg4: memref<32x128xf32, #tpu.memory_space<vmem>>) attributes {dimension_semantics = [#tpu.dimension_semantics<parallel>], iteration_bounds = array<i64: 1>, scalar_prefetch = 0 : i64, scratch_operands = 0 : i64, tpu.core_type = #tpu.core_type<tc>, window_params = [{transform_indices = @transform_0, window_bounds = array<i64: 32, 128>}, {pipeline_mode = #tpu.pipeline_mode<synchronous>, transform_indices = @transform_1, window_bounds = array<i64: 1, 128>}, {pipeline_mode = #tpu.pipeline_mode<synchronous>, transform_indices = @transform_2, window_bounds = array<i64: 1, 128>}, {transform_indices = @transform_3, window_bounds = array<i64: 32, 128>}]} {
    %c0 = arith.constant 0 : index
    %c0_0 = arith.constant 0 : index
    %0 = vector.load %arg1[%c0, %c0_0] : memref<32x128xf32, #tpu.memory_space<vmem>>, vector<32x128xf32>
    %c0_1 = arith.constant 0 : index
    %c0_2 = arith.constant 0 : index
    %1 = vector.load %arg2[%c0_1, %c0_2] : memref<1x128xf32, #tpu.memory_space<vmem>>, vector<1x128xf32>
    %2 = vector.broadcast %1 : vector<1x128xf32> to vector<32x128xf32>
    %3 = arith.mulf %0, %2 : vector<32x128xf32>
    %c0_3 = arith.constant 0 : index
    %c0_4 = arith.constant 0 : index
    %4 = vector.load %arg3[%c0_3, %c0_4] : memref<1x128xf32, #tpu.memory_space<vmem>>, vector<1x128xf32>
    %5 = vector.broadcast %4 : vector<1x128xf32> to vector<32x128xf32>
    %6 = arith.addf %3, %5 : vector<32x128xf32>
    %cst = arith.constant 0.000000e+00 : f32
    %7 = vector.broadcast %cst : f32 to vector<32x128xf32>
    %8 = arith.cmpf ogt, %6, %7 : vector<32x128xf32>
    %cst_5 = arith.constant 2.000000e-01 : f32
    %9 = vector.broadcast %cst_5 : f32 to vector<32x128xf32>
    %10 = arith.mulf %9, %6 : vector<32x128xf32>
    %11 = arith.select %8, %6, %10 : vector<32x128xi1>, vector<32x128xf32>
    %c0_6 = arith.constant 0 : index
    %c0_7 = arith.constant 0 : index
    %12 = vector.load %arg4[%c0_6, %c0_7] : memref<32x128xf32, #tpu.memory_space<vmem>>, vector<32x128xf32>
    tpu.vector_store %arg4[%c0_6, %c0_7], %11 {strides = array<i32>} : memref<32x128xf32, #tpu.memory_space<vmem>>, vector<32x128xf32>,
    return
  }
  func.func @transform_0(%arg0: i32) -> (i32, i32) {
    %c0_i32 = arith.constant 0 : i32
    %c0_i32_0 = arith.constant 0 : i32
    return %arg0, %c0_i32 : i32, i32
  }
  func.func @transform_1(%arg0: i32) -> (i32, i32) {
    %c0_i32 = arith.constant 0 : i32
    %c0_i32_0 = arith.constant 0 : i32
    %c0_i32_1 = arith.constant 0 : i32
    return %c0_i32, %c0_i32_0 : i32, i32
  }
  func.func @transform_2(%arg0: i32) -> (i32, i32) {
    %c0_i32 = arith.constant 0 : i32
    %c0_i32_0 = arith.constant 0 : i32
    %c0_i32_1 = arith.constant 0 : i32
    return %c0_i32, %c0_i32_0 : i32, i32
  }
  func.func @transform_3(%arg0: i32) -> (i32, i32) {
    %c0_i32 = arith.constant 0 : i32
    %c0_i32_0 = arith.constant 0 : i32
    return %arg0, %c0_i32 : i32, i32
  }
}

module attributes {stable_mosaic.version = 11 : i64} {
  func.func @_matmul_fused_kernel(%arg0: i32, %arg1: i32, %arg2: memref<16x1024xbf16, #tpu.memory_space<vmem>>, %arg3: memref<1024x128xbf16, #tpu.memory_space<vmem>>, %arg4: memref<1x128xf32, #tpu.memory_space<vmem>>, %arg5: memref<1x128xf32, #tpu.memory_space<vmem>>, %arg6: memref<16x128xf32, #tpu.memory_space<vmem>>) attributes {dimension_semantics = [#tpu.dimension_semantics<parallel>, #tpu.dimension_semantics<parallel>], iteration_bounds = array<i64: 1, 1>, scalar_prefetch = 0 : i64, scratch_operands = 0 : i64, tpu.core_type = #tpu.core_type<tc>, window_params = [{transform_indices = @transform_0, window_bounds = array<i64: 16, 1024>}, {transform_indices = @transform_1, window_bounds = array<i64: 1024, 128>}, {transform_indices = @transform_2, window_bounds = array<i64: 1, 128>}, {transform_indices = @transform_3, window_bounds = array<i64: 1, 128>}, {transform_indices = @transform_4, window_bounds = array<i64: 16, 128>}]} {
    %c0 = arith.constant 0 : index
    %c0_0 = arith.constant 0 : index
    %0 = vector.load %arg2[%c0, %c0_0] : memref<16x1024xbf16, #tpu.memory_space<vmem>>, vector<16x1024xbf16>
    %c0_1 = arith.constant 0 : index
    %c0_2 = arith.constant 0 : index
    %1 = vector.load %arg3[%c0_1, %c0_2] : memref<1024x128xbf16, #tpu.memory_space<vmem>>, vector<1024x128xbf16>
    %cst = arith.constant dense<0.000000e+00> : vector<16x128xf32>
    %2 = tpu.matmul %0, %1, %cst {dimension_numbers = #tpu.dot_dimension_numbers<[1], [0], [0], [1], [0, 0, 1, 1], [], []>} : vector<16x1024xbf16>, vector<1024x128xbf16>, vector<16x128xf32> -> vector<16x128xf32>
    %c0_3 = arith.constant 0 : index
    %c0_4 = arith.constant 0 : index
    %3 = vector.load %arg4[%c0_3, %c0_4] : memref<1x128xf32, #tpu.memory_space<vmem>>, vector<1x128xf32>
    %4 = vector.broadcast %3 : vector<1x128xf32> to vector<16x128xf32>
    %5 = arith.mulf %2, %4 : vector<16x128xf32>
    %c0_5 = arith.constant 0 : index
    %c0_6 = arith.constant 0 : index
    %6 = vector.load %arg5[%c0_5, %c0_6] : memref<1x128xf32, #tpu.memory_space<vmem>>, vector<1x128xf32>
    %7 = vector.broadcast %6 : vector<1x128xf32> to vector<16x128xf32>
    %8 = arith.addf %5, %7 : vector<16x128xf32>
    %cst_7 = arith.constant 0.000000e+00 : f32
    %9 = vector.broadcast %cst_7 : f32 to vector<16x128xf32>
    %10 = arith.subf %9, %8 : vector<16x128xf32>
    %11 = math.exp %10 : vector<16x128xf32>
    %cst_8 = arith.constant 1.000000e+00 : f32
    %12 = vector.broadcast %cst_8 : f32 to vector<16x128xf32>
    %13 = arith.addf %12, %11 : vector<16x128xf32>
    %cst_9 = arith.constant 1.000000e+00 : f32
    %14 = vector.broadcast %cst_9 : f32 to vector<16x128xf32>
    %15 = arith.divf %14, %13 : vector<16x128xf32>
    %c0_10 = arith.constant 0 : index
    %c0_11 = arith.constant 0 : index
    %16 = vector.load %arg6[%c0_10, %c0_11] : memref<16x128xf32, #tpu.memory_space<vmem>>, vector<16x128xf32>
    tpu.vector_store %arg6[%c0_10, %c0_11], %15 {strides = array<i32>} : memref<16x128xf32, #tpu.memory_space<vmem>>, vector<16x128xf32>,
    return
  }
  func.func @transform_0(%arg0: i32, %arg1: i32) -> (i32, i32) {
    %c0_i32 = arith.constant 0 : i32
    %c0_i32_0 = arith.constant 0 : i32
    return %arg0, %c0_i32 : i32, i32
  }
  func.func @transform_1(%arg0: i32, %arg1: i32) -> (i32, i32) {
    %c0_i32 = arith.constant 0 : i32
    %c0_i32_0 = arith.constant 0 : i32
    return %c0_i32, %arg1 : i32, i32
  }
  func.func @transform_2(%arg0: i32, %arg1: i32) -> (i32, i32) {
    %c0_i32 = arith.constant 0 : i32
    %c0_i32_0 = arith.constant 0 : i32
    return %c0_i32, %arg1 : i32, i32
  }
  func.func @transform_3(%arg0: i32, %arg1: i32) -> (i32, i32) {
    %c0_i32 = arith.constant 0 : i32
    %c0_i32_0 = arith.constant 0 : i32
    return %c0_i32, %arg1 : i32, i32
  }
  func.func @transform_4(%arg0: i32, %arg1: i32) -> (i32, i32) {
    %c0_i32 = arith.constant 0 : i32
    return %arg0, %arg1 : i32, i32
  }
}

</mosaic_0001>

<bundles_post_ra>
// kernel: discriminator64_forward.9
= control target key start
LH: loop header
LB: loop body
LE: loop exit
PB: predicated region body
PF: predicated region fallthrough
CT: control target
= control target key end

     0   :  { %9 = vsyncpa [#allocation3], 0  ;;  %s1375_s0 = inlined_call_operand.vmem [shape: bf16[16,128], index: 0, kind: input, shape index: {}]   ;;  %s1376_s1 = inlined_call_operand.hbm [shape: bf16[128,4096], index: 1, kind: input, shape index: {}]   ;;  %s1377_s2 = inlined_call_operand.vmem [shape: f32[1,4096], index: 2, kind: input, shape index: {}]   ;;  %s1378_s3 = inlined_call_operand.hbm [shape: f32[1,4096], index: 3, kind: input, shape index: {}]   ;;  %s1379_s4 = inlined_call_operand.vmem [shape: f32[16,4096], index: 4, kind: output, shape index: {}]  }
   0x1   :  { %11 = vsyncpa [#allocation3 + $0x1], 0 }
   0x2   :  { %12 = vsyncpa [#allocation5], 0 }
   0x3   :  { %14 = vsyncpa [#allocation5 + $0x1], 0  ;;  %s1153_s15 = smov 0   ;;  %s1155_s16 = smov 0  }
   0x4   :  { %s1157_s17 = smov 0   ;;  %s1159_s18 = smov 0  }
   0x5   :  { %s1161_s19 = smov 0   ;;  %s1163_s20 = smov 0  }
   0x6 LB: > { %s836_s21 = sadd.s32 4294967295, %s1120_s20   ;;  %s29_s22 = sadd.s32 1, %s1116_s19  ;;  %s1120_s20 = sphi %s1163_s20, %s20_s20   ;;  %s1116_s19 = sphi %s1161_s19, %s1394_s19   ;;  %s1112_s18 = sphi %s1159_s18, %s1393_s18   ;;  %s1108_s17 = sphi %s1157_s17, %s1392_s17   ;;  %s1104_s16 = sphi %s1155_s16, %s1391_s16   ;;  %s1100_s15 = sphi %s1153_s15, %s1390_s15  }
   0x7   : > { %p30_p0 = scmp.ge.s32.totalorder %s29_s22, 8  ;;  %s65_s23 = sadd.s32 1, %s1108_s17 }
   0x8   : > { %p72_p1 = scmp.ne.s32.totalorder %s1108_s17, %s1104_s16  ;;  %p73_p2 = scmp.eq.s32.totalorder %s1120_s20, 0 }
   0x9   : > { %s1396_s22 = smov (%p30_p0, %s29_s22), 0  ;;  %p78_p4 = scmp.ne.s32.totalorder %s1104_s16, %s1100_s15 }
   0xa   : > { %p1189_p3 = por %p73_p2, %p72_p1  ;;  %s62_s25 = ssub.s32 %s1116_s19, %s1396_s22 }
   0xb   : > { %p79_p5 = scmp.eq.s32.totalorder %s836_s21, 0  ;;  %p63_p6 = scmp.eq.s32.totalorder %s62_s25, 0 }
   0xc   : > { %p156_p7 = scmp.eq.s32.totalorder %s836_s21, 7  ;;  %p904_p10 = scmp.lt.s32.totalorder %s1120_s20, 8 }
   0xd   : > { %p1196_p8 = por %p79_p5, %p78_p4  ;;  %s1209_s29 = sand.u32 1, %s1108_s17  }
   0xe   : > { %s1201_s27 = scalar_select %p63_p6, %s1108_s17, %s65_s23  }
   0xf   : > { %s1382_s26 = scalar_select %p1196_p8, 1, 0 }
  0x10   : > { %p1203_p9 = por %p156_p7, %p72_p1  ;;  %s890_s30 = sshll.u32 %s1116_s19, 8 }
  0x11   : > { %s841_s5 = sshll.u32 %s1209_s29, 8  ;;  %s1216_s8 = scalar_lea.hbm %s1376_s1, %s890_s30 }
  0x12   : > { %s1383_s28 = scalar_select %p1203_p9, 1, 0 }
  0x13   : > { %s195_s9 = scalar_lea.vmem [#allocation2], %s841_s5  ;;  %p1220_p11 = pnand %p904_p10, %p1189_p3 }
  0x14   : > { %s202_s10 = sshll.u32 %s195_s9, 4  ;;  %s192_s12 = scalar_lea.sflag [#allocation3], %s1209_s29  ;;  %s1224_s10 = int_to_ptr.vmem [resolvable:$true] %s202_s10 }
  0x15   : > { %s1006_s13 = scalar_lea.hbm %s1216_s8, 4096  ;;  %p1008_p0 = pneg %p1220_p11 }
  0x16   : > { %p1007_p13 = scmp.ne.s32.totalorder %s1216_s8, %s1006_s13  ;;  %s1011_s21 = scalar_lea.hbm %s1376_s1, 32768 }
  0x17   : > { %p1012_p3 = scmp.lt.u32.totalorder %s1216_s8, %s1376_s1  ;;  %p1013_p4 = scmp.lt.u32.totalorder %s1011_s21, %s1006_s13 }
  0x18   : > { %p1009_p1 = pnand %p1008_p0, %p1007_p13  ;;  %p1015_p6 = scmp.lt.u32.totalorder %s1006_s13, %s1216_s8 }
  0x19   : > { %p1014_p5 = por %p1013_p4, %p1012_p3 }
  0x1a   : > { %p1010_p2 = pneg %p1009_p1 }
  0x1b   : > { %p1016_p7 = por %p1015_p6, %p1014_p5 }
  0x1d   : > { %p1017_p10 = pnand %p1016_p7, %p1010_p2 }
  0x1f   : > { %1020 = shalt.err (!%p1017_p10)
}
  0x20   : > { %s1021_s25 = scalar_lea.vmem %s1224_s10, 4096  ;;  %s1122_s30 = smov [#allocation2]  }
  0x21   : > { %p1022_p13 = scmp.ne.s32.totalorder %s1224_s10, %s1021_s25  ;;  %s1026_s5 = sshll.u32 %s1122_s30, 4  ;;  %s1027_s5 = int_to_ptr.vmem [resolvable:$false] %s1026_s5 }
  0x22   : > { %s1028_s6 = scalar_lea.vmem %s1027_s5, 8192  ;;  %p1029_p9 = scmp.lt.s32.totalorder %s1224_s10, %s1027_s5 }
  0x23   : > { %p1024_p1 = pnand %p1022_p13, %p1008_p0  ;;  %p1030_p3 = scmp.lt.s32.totalorder %s1028_s6, %s1021_s25 }
  0x25   : > { %p1025_p12 = pneg %p1024_p1  ;;  %p1031_p4 = por %p1030_p3, %p1029_p9 }
  0x27   : > { %p1032_p5 = pnand %p1031_p4, %p1025_p12 }
  0x29   : > { %1035 = shalt.err (!%p1032_p5)
}
  0x2a   : > { %s1123_s7 = smov 2048   ;;  %s1124_s9 = smov 256  }
  0x2b   : > { %s1125_s13 = smov 16   ;;  %p237_p2 = scmp.lt.s32.totalorder %s1120_s20, 9 }
  0x2c   : > { %900 = dma.hbm_to_vmem [thread:$0]  (!%p1220_p11), %s1216_s8, 4096, %s1224_s10, %s192_s12, %s1123_s7, %s1124_s9, %s1125_s13  }
  0x2d   : > { %s844_s14 = sshll.u32 %s1209_s29, 2  ;;  %s891_s15 = sshll.u32 %s1116_s19, 6 }
  0x2e   : > { %p1385_p9 = scmp.ge.s32.totalorder %s1120_s20, 1  ;;  %s1267_s25 = scalar_lea.hbm %s1378_s3, %s891_s15 }
  0x2f   : > { %s224_s30 = scalar_lea.vmem [#allocation4], %s844_s14  ;;  %s221_s8 = scalar_lea.sflag [#allocation5], %s1209_s29 }
  0x30   : > { %p1260_p12 = pnand %p1385_p9, %p237_p2  ;;  %s232_s5 = sshll.u32 %s224_s30, 4  ;;  %s233_s5 = int_to_ptr.vmem [resolvable:$true] %s232_s5 }
  0x31   : > { %s1036_s10 = scalar_lea.hbm %s1267_s25, 64  ;;  %s1041_s7 = scalar_lea.hbm %s1378_s3, 512 }
  0x32   : > { %s1386_s21 = scalar_select %p1260_p12, 1, 0 }
  0x33   : > { %p1037_p6 = scmp.ne.s32.totalorder %s1267_s25, %s1036_s10  ;;  %p1042_p13 = scmp.lt.u32.totalorder %s1267_s25, %s1378_s3 }
  0x34   : > { %p1043_p1 = scmp.lt.u32.totalorder %s1041_s7, %s1036_s10  ;;  %p1045_p4 = scmp.lt.u32.totalorder %s1036_s10, %s1267_s25 }
  0x35   : > { %p1039_p7 = pnand %p1037_p6, %p1008_p0 }
  0x36   : > { %p1044_p3 = por %p1043_p1, %p1042_p13 }
  0x37   : > { %p1040_p10 = pneg %p1039_p7 }
  0x38   : > { %p1046_p5 = por %p1045_p4, %p1044_p3 }
  0x3a   : > { %p1047_p2 = pnand %p1046_p5, %p1040_p10 }
  0x3c   : > { %1050 = shalt.err (!%p1047_p2)
}
  0x3d   : > { %s1051_s29 = scalar_lea.vmem %s233_s5, 64  ;;  %s1126_s14 = smov [#allocation4]  }
  0x3e   : > { %p1052_p9 = scmp.ne.s32.totalorder %s233_s5, %s1051_s29  ;;  %s1056_s15 = sshll.u32 %s1126_s14, 4  ;;  %s1057_s15 = int_to_ptr.vmem [resolvable:$false] %s1056_s15 }
  0x3f   : > { %s1058_s23 = scalar_lea.vmem %s1057_s15, 128  ;;  %p1059_p8 = scmp.lt.s32.totalorder %s233_s5, %s1057_s15 }
  0x40   : > { %p1054_p6 = pnand %p1052_p9, %p1008_p0  ;;  %p1060_p12 = scmp.lt.s32.totalorder %s1058_s23, %s1051_s29 }
  0x42   : > { %p1055_p7 = pneg %p1054_p6  ;;  %p1061_p1 = por %p1060_p12, %p1059_p8 }
  0x44   : > { %p1062_p13 = pnand %p1061_p1, %p1055_p7 }
  0x46   : > { %1065 = shalt.err (!%p1062_p13)
}
  0x47   : > { %903 = dma.hbm_to_vmem [thread:$0]  (!%p1220_p11), %s1267_s25, 64, %s233_s5, %s221_s8  }
  0x48   : > { %p1387_p10 = scmp.ne.s32.totalorder %s1386_s21, 0 }
  0x49   : > { %s1292_s24 = sand.u32 (!%p1387_p10), 1, %s1104_s16   ;;  %p1388_p8 = scmp.ne.s32.totalorder (!%p1387_p10), %s1382_s26, 0 }
  0x4a   : > { %241 = sbr.rel (%p1387_p10) target bundleno = 349 (0x15d), region = 36  ;;  %s848_s30 = sshll.u32 (!%p1387_p10), %s1292_s24, 8 }
  0x4b   : > { %s244_s10 = scalar_lea.sflag (!%p1387_p10), [#allocation3], %s1292_s24  ;;  %s1296_s12 = scalar_lea.vmem (!%p1387_p10), [#allocation2], %s848_s30 }
  0x51   : > { %1091 = dma.done.wait (%p1388_p8), %s244_s10, 4096  }
  0x52   : > { %1093 = vsyncadd (%p1388_p8), %s244_s10, 4294963200  ;;  %s849_s11 = sshll.u32 %s1292_s24, 2  ;;  %s253_s21 = scalar_lea.sflag [#allocation5], %s1292_s24 }
  0x53   : > { %s1304_s25 = scalar_lea.vmem [#allocation4], %s849_s11 }
  0x54   : > { %1095 = dma.done.wait (%p1388_p8), %s253_s21, 64  }
  0x55   : > { %1097 = vsyncadd (%p1388_p8), %s253_s21, 4294967232  ;;  %v1127_v0 = vmov 0   ;;  %v957_v1 = vld [vmem:[%s1296_s12 + $0x4] ss:$16 sps:$4 sm:$0xff]   ;;  %v959_v2 = vld [vmem:[%s1296_s12 + $0xc] ss:$16 sps:$4 sm:$0xff]   ;;  %v598_v34 = vlaneseq }
  0x56   : > { %542 = vmatprep.mubr.bf16.mxu0 %v1127_v0  ;;  %585 = vmatprep.mubr.bf16.mxu1 %v1127_v0  ;;  %v961_v3 = vld [vmem:[%s1296_s12] ss:$16 sps:$4 sm:$0xff]   ;;  %v962_v4 = vld [vmem:[%s1296_s12 + $0x8] ss:$16 sps:$4 sm:$0xff]   ;;  %v963_v5 = vld [vmem:[%s1296_s12 + $0x24] ss:$16 sps:$4 sm:$0xff]  }
  0x57   : > { %510 = vmatprep.subr.bf16.mxu0 %v957_v1  ;;  %553 = vmatprep.subr.bf16.mxu1 %v959_v2  ;;  %v965_v6 = vld [vmem:[%s1296_s12 + $0x2c] ss:$16 sps:$4 sm:$0xff]   ;;  %v967_v7 = vld [vmem:[%s1296_s12 + $0x20] ss:$16 sps:$4 sm:$0xff]   ;;  %v968_v8 = vld [vmem:[%s1296_s12 + $0x28] ss:$16 sps:$4 sm:$0xff]  }
  0x58   : > { %511 = vmatpush1.bf16.msra.mxu0 %v961_v3  ;;  %554 = vmatpush1.bf16.msra.mxu1 %v962_v4  ;;  %v969_v9 = vld [vmem:[%s1296_s12 + $0x44] ss:$16 sps:$4 sm:$0xff]   ;;  %v971_v10 = vld [vmem:[%s1296_s12 + $0x4c] ss:$16 sps:$4 sm:$0xff]   ;;  %v973_v11 = vld [vmem:[%s1296_s12 + $0x40] ss:$16 sps:$4 sm:$0xff]  }
  0x59   : > { %512 = vmatprep.subr.bf16.mxu0 %v963_v5  ;;  %555 = vmatprep.subr.bf16.mxu1 %v965_v6  ;;  %v974_v12 = vld [vmem:[%s1296_s12 + $0x48] ss:$16 sps:$4 sm:$0xff]   ;;  %v975_v13 = vld [vmem:[%s1296_s12 + $0x64] ss:$16 sps:$4 sm:$0xff]   ;;  %v977_v14 = vld [vmem:[%s1296_s12 + $0x6c] ss:$16 sps:$4 sm:$0xff]  }
  0x5a   : > { %v979_v15 = vld [vmem:[%s1296_s12 + $0x60] ss:$16 sps:$4 sm:$0xff]   ;;  %v980_v16 = vld [vmem:[%s1296_s12 + $0x68] ss:$16 sps:$4 sm:$0xff]   ;;  %v981_v17 = vld [vmem:[%s1296_s12 + $0x84] ss:$16 sps:$4 sm:$0xff]  }
  0x5b   : > { %v983_v18 = vld [vmem:[%s1296_s12 + $0x8c] ss:$16 sps:$4 sm:$0xff]   ;;  %v985_v19 = vld [vmem:[%s1296_s12 + $0x80] ss:$16 sps:$4 sm:$0xff]   ;;  %v986_v20 = vld [vmem:[%s1296_s12 + $0x88] ss:$16 sps:$4 sm:$0xff]  }
  0x5c   : > { %513 = vmatpush1.bf16.msra.mxu0 %v967_v7  ;;  %556 = vmatpush1.bf16.msra.mxu1 %v968_v8  ;;  %v987_v21 = vld [vmem:[%s1296_s12 + $0xa4] ss:$16 sps:$4 sm:$0xff]   ;;  %v989_v22 = vld [vmem:[%s1296_s12 + $0xac] ss:$16 sps:$4 sm:$0xff]   ;;  %v991_v23 = vld [vmem:[%s1296_s12 + $0xa0] ss:$16 sps:$4 sm:$0xff]  }
  0x5d   : > { %514 = vmatprep.subr.bf16.mxu0 %v969_v9  ;;  %557 = vmatprep.subr.bf16.mxu1 %v971_v10  ;;  %v992_v24 = vld [vmem:[%s1296_s12 + $0xa8] ss:$16 sps:$4 sm:$0xff]   ;;  %v993_v25 = vld [vmem:[%s1296_s12 + $0xc4] ss:$16 sps:$4 sm:$0xff]   ;;  %v995_v26 = vld [vmem:[%s1296_s12 + $0xcc] ss:$16 sps:$4 sm:$0xff]  }
  0x5e   : > { %v997_v27 = vld [vmem:[%s1296_s12 + $0xc0] ss:$16 sps:$4 sm:$0xff]   ;;  %v998_v28 = vld [vmem:[%s1296_s12 + $0xc8] ss:$16 sps:$4 sm:$0xff]   ;;  %v999_v29 = vld [vmem:[%s1296_s12 + $0xe4] ss:$16 sps:$4 sm:$0xff]  }
  0x5f   : > { %v1001_v30 = vld [vmem:[%s1296_s12 + $0xec] ss:$16 sps:$4 sm:$0xff]   ;;  %v1003_v31 = vld [vmem:[%s1296_s12 + $0xe0] ss:$16 sps:$4 sm:$0xff]   ;;  %v1004_v32 = vld [vmem:[%s1296_s12 + $0xe8] ss:$16 sps:$4 sm:$0xff]  }
  0x60   : > { %515 = vmatpush1.bf16.msra.mxu0 %v973_v11  ;;  %558 = vmatpush1.bf16.msra.mxu1 %v974_v12  ;;  %v1005_v33 = vld [vmem:[%s1375_s0] sm:$0xff]   ;;  %s851_s8 = sshll.u32 %s1112_s18, 2  ;;  %v599_v35 = vshrl.u32 %v598_v34, 7  ;;  %s850_s13 = sshll.u32 %s1292_s24, 6 }
  0x61   : > { %516 = vmatprep.subr.bf16.mxu0 %v975_v13  ;;  %559 = vmatprep.subr.bf16.mxu1 %v977_v14  ;;  %p302_p11 = scmp.lt.s32.totalorder %s851_s8, 31  ;;  %v626_v41 = vld [vmem:[%s1304_s25] sm:$0xf]  ;;  %s293_s29 = scalar_lea.vmem [#allocation6], %s850_s13 }
  0x62   : > { %v600_v36 = vsub.s32 0, %v599_v35  ;;  %v608_v37 = vsub.s32 2, %v599_v35  ;;  %v604_v39 = vsub.s32 1, %v599_v35  ;;  %v612_v40 = vsub.s32 3, %v599_v35  ;;  %p1389_p0 = scmp.ne.s32.totalorder %s1383_s28, 0 }
  0x63   : > { %s1398_s8 = smov (!%p302_p11, %s851_s8), 31  ;;  %s892_s14 = sshll.u32 (%p1389_p0), %s1112_s18, 5 }
  0x64   : > { %517 = vmatpush1.bf16.msra.mxu0 %v979_v15  ;;  %560 = vmatpush1.bf16.msra.mxu1 %v980_v16  ;;  %s304_s9 = scalar_lea.vmem %s1377_s2, %s1398_s8  ;;  %v631_v46 = vrot.slane %v626_v41, %v600_v36  ;;  %v639_v47 = vrot.slane %v626_v41, %v608_v37  ;;  %v635_v50 = vrot.slane %v626_v41, %v604_v39  ;;  %s684_s24 = scalar_lea.vmem (%p1389_p0), %s1379_s4, %s892_s14 }
  0x65   : > { %518 = vmatprep.subr.bf16.mxu0 %v981_v17  ;;  %561 = vmatprep.subr.bf16.mxu1 %v983_v18  ;;  %v596_v38 = vld [vmem:[%s304_s9] sm:$0xf]  ;;  %v643_v51 = vrot.slane %v626_v41, %v612_v40 }
  0x66   : > { %v601_v42 = vrot.slane %v596_v38, %v600_v36  ;;  %v609_v43 = vrot.slane %v596_v38, %v608_v37  ;;  %v605_v44 = vrot.slane %v596_v38, %v604_v39  ;;  %v613_v45 = vrot.slane %v596_v38, %v612_v40 }
  0x68   : > { %519 = vmatpush1.bf16.msra.mxu0 %v985_v19  ;;  %562 = vmatpush1.bf16.msra.mxu1 %v986_v20 }
  0x69   : > { %520 = vmatprep.subr.bf16.mxu0 %v987_v21  ;;  %563 = vmatprep.subr.bf16.mxu1 %v989_v22 }
  0x6c   : > { %521 = vmatpush1.bf16.msra.mxu0 %v991_v23  ;;  %564 = vmatpush1.bf16.msra.mxu1 %v992_v24 }
  0x6d   : > { %522 = vmatprep.subr.bf16.mxu0 %v993_v25  ;;  %565 = vmatprep.subr.bf16.mxu1 %v995_v26 }
  0x70   : > { %523 = vmatpush1.bf16.msra.mxu0 %v997_v27  ;;  %566 = vmatpush1.bf16.msra.mxu1 %v998_v28 }
  0x71   : > { %524 = vmatprep.subr.bf16.mxu0 %v999_v29  ;;  %567 = vmatprep.subr.bf16.mxu1 %v1001_v30 }
  0x74   : > { %525 = vmatpush1.bf16.msra.mxu0 %v1003_v31  ;;  %568 = vmatpush1.bf16.msra.mxu1 %v1004_v32 }
  0x77   : > { %543 = vmatmul.mubr.bf16.vlgmr.msra.gmra.mrb[0].mxu0 %v1005_v33  ;;  %586 = vmatmul.mubr.bf16.vlgmr.msra.gmra.mrb[0].mxu1 %v1005_v33 }
 0x14a   : > { %v544_v48 = vpop.f32.mrb[0].mxu0  ;;  %v587_v49 = vpop.f32.mrb[0].mxu1 }
 0x14b   : > { %v618_v52 = vmul.f32 %v601_v42, %v544_v48  ;;  %v620_v53 = vmul.f32 %v609_v43, %v587_v49  ;;  %v546_v54 = vpop.f32.mrb[1].mxu0  ;;  %v589_v55 = vpop.f32.mrb[1].mxu1 }
 0x14c   : > { %v619_v56 = vmul.f32 %v605_v44, %v546_v54  ;;  %v621_v57 = vmul.f32 %v613_v45, %v589_v55  ;;  %v548_v58 = vpop.f32.mrb[2].mxu0  ;;  %v591_v59 = vpop.f32.mrb[2].mxu1 }
 0x14d   : > { %v648_v60 = vadd.f32 %v631_v46, %v618_v52  ;;  %v650_v61 = vadd.f32 %v639_v47, %v620_v53  ;;  %v622_v62 = vmul.f32 %v601_v42, %v548_v58  ;;  %v624_v63 = vmul.f32 %v609_v43, %v591_v59  ;;  %v550_v0 = vpop.f32.mrb[3].mxu0  ;;  %v593_v1 = vpop.f32.mrb[3].mxu1 }
 0x14e   : > { %v649_v2 = vadd.f32 %v635_v50, %v619_v56  ;;  %v651_v3 = vadd.f32 %v643_v51, %v621_v57  ;;  %v623_v4 = vmul.f32 %v605_v44, %v550_v0  ;;  %v625_v5 = vmul.f32 %v613_v45, %v593_v1  ;;  %678 = sbr.rel (!%p1389_p0) target bundleno = 349 (0x15d), region = 48 }
 0x14f   : > { %v656_v6 = vmax.f32 %v648_v60, 0.0  ;;  %v658_v7 = vmax.f32 %v650_v61, 0.0  ;;  %v652_v8 = vadd.f32 %v631_v46, %v622_v62  ;;  %v654_v9 = vadd.f32 %v639_v47, %v624_v63 }
 0x150   : > { %v657_v10 = vmax.f32 %v649_v2, 0.0  ;;  %v659_v11 = vmax.f32 %v651_v3, 0.0  ;;  %v653_v12 = vadd.f32 %v635_v50, %v623_v4  ;;  %v655_v13 = vadd.f32 %v643_v51, %v625_v5 }
 0x151   : > { %664 = vst [vmem:[%s293_s29] sm:$0xff] %v656_v6  ;;  %666 = vst [vmem:[%s293_s29 + $0x10] sm:$0xff] %v658_v7  ;;  %v660_v14 = vmax.f32 %v652_v8, 0.0  ;;  %v662_v15 = vmax.f32 %v654_v9, 0.0 }
 0x152   : > { %665 = vst [vmem:[%s293_s29 + $0x8] sm:$0xff] %v657_v10  ;;  %667 = vst [vmem:[%s293_s29 + $0x18] sm:$0xff] %v659_v11  ;;  %v661_v16 = vmax.f32 %v653_v12, 0.0  ;;  %v663_v17 = vmax.f32 %v655_v13, 0.0 }
 0x153   : > { %668 = vst [vmem:[%s293_s29 + $0x20] sm:$0xff] %v660_v14  ;;  %670 = vst [vmem:[%s293_s29 + $0x30] sm:$0xff] %v662_v15 }
 0x154   : > { %669 = vst [vmem:[%s293_s29 + $0x28] sm:$0xff] %v661_v16  ;;  %671 = vst [vmem:[%s293_s29 + $0x38] sm:$0xff] %v663_v17 }
 0x158   : > { %v697_v18 = vld [vmem:[%s293_s29] sm:$0xff]  ;;  %v701_v20 = vld [vmem:[%s293_s29 + $0x10] sm:$0xff] }
 0x159   : > { %v699_v19 = vld [vmem:[%s293_s29 + $0x8] sm:$0xff]  ;;  %v703_v21 = vld [vmem:[%s293_s29 + $0x18] sm:$0xff]  ;;  %698 = vst [vmem:[%s684_s24] sm:$0xff] %v697_v18  ;;  %702 = vst [vmem:[%s684_s24 + $0x10] sm:$0xff] %v701_v20 }
 0x15a   : > { %v705_v22 = vld [vmem:[%s293_s29 + $0x20] sm:$0xff]  ;;  %700 = vst [vmem:[%s684_s24 + $0x8] sm:$0xff] %v699_v19  ;;  %704 = vst [vmem:[%s684_s24 + $0x18] sm:$0xff] %v703_v21  ;;  %v709_v24 = vld [vmem:[%s293_s29 + $0x30] sm:$0xff] }
 0x15b   : > { %v707_v23 = vld [vmem:[%s293_s29 + $0x28] sm:$0xff]  ;;  %706 = vst [vmem:[%s684_s24 + $0x100] sm:$0xff] %v705_v22  ;;  %v711_v25 = vld [vmem:[%s293_s29 + $0x38] sm:$0xff]  ;;  %710 = vst [vmem:[%s684_s24 + $0x110] sm:$0xff] %v709_v24 }
 0x15c   : > { %708 = vst [vmem:[%s684_s24 + $0x108] sm:$0xff] %v707_v23  ;;  %712 = vst [vmem:[%s684_s24 + $0x118] sm:$0xff] %v711_v25 }
 0x15d PF: > { %s20_s20 = sadd.s32 1, %s1120_s20   ;;  %s1390_s15 = smov %s1104_s16 }
 0x15e   : > { %p17_p12 = scmp.ge.s32.totalorder %s20_s20, 10   ;;  %s1391_s16 = smov %s1108_s17 }
 0x15f   : > { %s1392_s17 = smov %s1201_s27  ;;  %s1393_s18 = smov %s1116_s19 }
 0x160   : > { %s1394_s19 = smov %s1396_s22  ;;  %19 = sbr.rel (!%p17_p12) target bundleno = 6 (0x6), region = 118 }
 0x167   :  { %728 = vsyncpa [#allocation3], 1 }
 0x168   :  { %730 = vsyncpa [#allocation3 + $0x1], 1 }
 0x169   :  { %731 = vsyncpa [#allocation5], 1 }
 0x16a   :  { %733 = vsyncpa [#allocation5 + $0x1], 1 }

// kernel: discriminator64_forward.10
= control target key start
LH: loop header
LB: loop body
LE: loop exit
PB: predicated region body
PF: predicated region fallthrough
CT: control target
= control target key end

     0   :  { %s1693_s15 = smov 0   ;;  %s1695_s16 = smov 0   ;;  %s2022_s0 = inlined_call_operand.vmem [shape: bf16[2048,128], index: 0, kind: input, shape index: {}]   ;;  %s2023_s1 = inlined_call_operand.vmem [shape: bf16[128,128], index: 1, kind: input, shape index: {}]   ;;  %s2024_s2 = inlined_call_operand.vmem [shape: f32[1,128], index: 2, kind: input, shape index: {}]   ;;  %s2025_s3 = inlined_call_operand.vmem [shape: f32[1,128], index: 3, kind: input, shape index: {}]   ;;  %s2026_s4 = inlined_call_operand.vmem [shape: f32[2048,128], index: 4, kind: output, shape index: {}]  }
   0x1   :  { %s1697_s17 = smov 0  }
   0x2 LB: > { %s26_s18 = sadd.s32 1, %s1662_s16  ;;  %p1395_p0 = scmp.ge.s32.totalorder %s1666_s17, 1  ;;  %s1666_s17 = sphi %s1697_s17, %s14_s17   ;;  %s1662_s16 = sphi %s1695_s16, %s2028_s16   ;;  %s1658_s15 = sphi %s1693_s15, %s2027_s15  }
   0x3   : > { %p28_p1 = scmp.ge.s32.totalorder %s26_s18, 4  ;;  %p202_p2 = scmp.lt.s32.totalorder %s1666_s17, 5 }
   0x5   : > { %s2030_s18 = smov (%p28_p1, %s26_s18), 0  ;;  %p203_p3 = pnand %p1395_p0, %p202_p2 }
   0x6   : > { %v1604_v0 = vld [vmem:[%s2023_s1] sm:$0xff] (!%p203_p3)   ;;  %s1396_s21 = sshll.u32 (!%p203_p3), %s1658_s15, 6  ;;  %v1605_v1 = vld [vmem:[%s2023_s1 + $0x8] sm:$0xff] (!%p203_p3)   ;;  %v1606_v2 = vld [vmem:[%s2023_s1 + $0x10] sm:$0xff] (!%p203_p3)  }
   0x7   : > { %206 = sbr.rel (%p203_p3) target bundleno = 337 (0x151), region = 36  ;;  %p242_p4 = scmp.lt.s32.totalorder (!%p203_p3), %s1396_s21, 255  ;;  %1484 = vmatprep.subr.bf16.mxu0 (!%p203_p3), %v1604_v0  ;;  %1564 = vmatprep.subr.bf16.mxu1 (!%p203_p3), %v1604_v0  ;;  %v1607_v3 = vld [vmem:[%s2023_s1 + $0x18] sm:$0xff] (!%p203_p3)   ;;  %v1608_v6 = vld [vmem:[%s2023_s1 + $0x20] sm:$0xff] (!%p203_p3)   ;;  %v1609_v7 = vld [vmem:[%s2023_s1 + $0x28] sm:$0xff] (!%p203_p3)  }
   0x8   : > { %1485 = vmatpush3.bf16.msra.mxu0 (!%p203_p3), %v1604_v0  ;;  %1572 = vmatpush3.bf16.msra.mxu1 (!%p203_p3), %v1604_v0  ;;  %v1610_v8 = vld [vmem:[%s2023_s1 + $0x30] sm:$0xff] (!%p203_p3)   ;;  %v1611_v9 = vld [vmem:[%s2023_s1 + $0x38] sm:$0xff] (!%p203_p3)   ;;  %v1778_v40 = vld [vmem:[%s2024_s2] ss:$0 sm:$0xff] (!%p203_p3) }
   0x9   : > { %1486 = vmatprep.subr.bf16.mxu0 (!%p203_p3), %v1605_v1  ;;  %1565 = vmatprep.subr.bf16.mxu1 (!%p203_p3), %v1605_v1  ;;  %v1783_v42 = vld [vmem:[%s2025_s3] ss:$0 sm:$0xff] (!%p203_p3) }
   0xc   : > { %1487 = vmatpush3.bf16.msra.mxu0 (!%p203_p3), %v1605_v1  ;;  %1573 = vmatpush3.bf16.msra.mxu1 (!%p203_p3), %v1605_v1 }
   0xd   : > { %1488 = vmatprep.subr.bf16.mxu0 (!%p203_p3), %v1606_v2  ;;  %1566 = vmatprep.subr.bf16.mxu1 (!%p203_p3), %v1606_v2 }
   0xe   : > { %s2032_s21 = smov (!%p242_p4, %s1396_s21), 255 }
   0xf   : > { %s1397_s26 = sshll.u32 %s2032_s21, 2  ;;  %s1399_s22 = sshll.u32 %s2032_s21, 3 }
  0x10   : > { %s1726_s29 = scalar_lea.vmem %s2022_s0, %s1397_s26  ;;  %1489 = vmatpush3.bf16.msra.mxu0 %v1606_v2  ;;  %1574 = vmatpush3.bf16.msra.mxu1 %v1606_v2  ;;  %s1801_s24 = scalar_lea.vmem %s2026_s4, %s1399_s22 }
  0x11   : > { %v1612_v4 = vld [vmem:[%s1726_s29] sm:$0xff]   ;;  %1490 = vmatprep.subr.bf16.mxu0 %v1607_v3  ;;  %1567 = vmatprep.subr.bf16.mxu1 %v1607_v3  ;;  %v1614_v10 = vld [vmem:[%s1726_s29 + $0x8] sm:$0xff]   ;;  %v1616_v12 = vld [vmem:[%s1726_s29 + $0x10] sm:$0xff]  }
  0x12   : > { %v1613_v5 = vld [vmem:[%s1726_s29 + $0x80] sm:$0xff]   ;;  %1500 = vmatprep.mubr.bf16.mxu0 %v1612_v4  ;;  %v1615_v11 = vld [vmem:[%s1726_s29 + $0x88] sm:$0xff]   ;;  %v1617_v13 = vld [vmem:[%s1726_s29 + $0x90] sm:$0xff]  }
  0x13   : > { %1532 = vmatprep.mubr.bf16.mxu1 %v1613_v5  ;;  %v1618_v14 = vld [vmem:[%s1726_s29 + $0x18] sm:$0xff]   ;;  %v1620_v16 = vld [vmem:[%s1726_s29 + $0x20] sm:$0xff]   ;;  %v1622_v18 = vld [vmem:[%s1726_s29 + $0x28] sm:$0xff]  }
  0x14   : > { %1491 = vmatpush3.bf16.msra.mxu0 %v1607_v3  ;;  %1575 = vmatpush3.bf16.msra.mxu1 %v1607_v3  ;;  %v1619_v15 = vld [vmem:[%s1726_s29 + $0x98] sm:$0xff]   ;;  %v1621_v17 = vld [vmem:[%s1726_s29 + $0xa0] sm:$0xff]   ;;  %v1623_v19 = vld [vmem:[%s1726_s29 + $0xa8] sm:$0xff]  }
  0x15   : > { %1492 = vmatprep.subr.bf16.mxu0 %v1608_v6  ;;  %1568 = vmatprep.subr.bf16.mxu1 %v1608_v6  ;;  %v1624_v20 = vld [vmem:[%s1726_s29 + $0x30] sm:$0xff]   ;;  %v1626_v22 = vld [vmem:[%s1726_s29 + $0x38] sm:$0xff]   ;;  %v1628_v24 = vld [vmem:[%s1726_s29 + $0x40] sm:$0xff]  }
  0x16   : > { %v1625_v21 = vld [vmem:[%s1726_s29 + $0xb0] sm:$0xff]   ;;  %v1627_v23 = vld [vmem:[%s1726_s29 + $0xb8] sm:$0xff]   ;;  %v1629_v25 = vld [vmem:[%s1726_s29 + $0xc0] sm:$0xff]  }
  0x17   : > { %v1630_v26 = vld [vmem:[%s1726_s29 + $0x48] sm:$0xff]   ;;  %v1632_v28 = vld [vmem:[%s1726_s29 + $0x50] sm:$0xff]   ;;  %v1634_v30 = vld [vmem:[%s1726_s29 + $0x58] sm:$0xff]  }
  0x18   : > { %1493 = vmatpush3.bf16.msra.mxu0 %v1608_v6  ;;  %1576 = vmatpush3.bf16.msra.mxu1 %v1608_v6  ;;  %v1631_v27 = vld [vmem:[%s1726_s29 + $0xc8] sm:$0xff]   ;;  %v1633_v29 = vld [vmem:[%s1726_s29 + $0xd0] sm:$0xff]   ;;  %v1635_v31 = vld [vmem:[%s1726_s29 + $0xd8] sm:$0xff]  }
  0x19   : > { %1494 = vmatprep.subr.bf16.mxu0 %v1609_v7  ;;  %1569 = vmatprep.subr.bf16.mxu1 %v1609_v7  ;;  %v1636_v32 = vld [vmem:[%s1726_s29 + $0x60] sm:$0xff]   ;;  %v1638_v34 = vld [vmem:[%s1726_s29 + $0x68] sm:$0xff]   ;;  %v1640_v36 = vld [vmem:[%s1726_s29 + $0x70] sm:$0xff]  }
  0x1a   : > { %v1637_v33 = vld [vmem:[%s1726_s29 + $0xe0] sm:$0xff]   ;;  %v1639_v35 = vld [vmem:[%s1726_s29 + $0xe8] sm:$0xff]   ;;  %v1641_v37 = vld [vmem:[%s1726_s29 + $0xf0] sm:$0xff]  }
  0x1b   : > { %v1642_v38 = vld [vmem:[%s1726_s29 + $0x78] sm:$0xff]  }
  0x1c   : > { %1495 = vmatpush3.bf16.msra.mxu0 %v1609_v7  ;;  %1577 = vmatpush3.bf16.msra.mxu1 %v1609_v7  ;;  %v1643_v39 = vld [vmem:[%s1726_s29 + $0xf8] sm:$0xff]  }
  0x1d   : > { %1496 = vmatprep.subr.bf16.mxu0 %v1610_v8  ;;  %1570 = vmatprep.subr.bf16.mxu1 %v1610_v8 }
  0x20   : > { %1497 = vmatpush3.bf16.msra.mxu0 %v1610_v8  ;;  %1578 = vmatpush3.bf16.msra.mxu1 %v1610_v8 }
  0x21   : > { %1498 = vmatprep.subr.bf16.mxu0 %v1611_v9  ;;  %1571 = vmatprep.subr.bf16.mxu1 %v1611_v9 }
  0x24   : > { %1499 = vmatpush3.bf16.msra.mxu0 %v1611_v9  ;;  %1579 = vmatpush3.bf16.msra.mxu1 %v1611_v9 }
  0x27   : > { %1501 = vmatmul.mubr.bf16.vlgmr.msra.gmra.mrb[0].mxu0 %v1614_v10  ;;  %1533 = vmatmul.mubr.bf16.vlgmr.msra.gmra.mrb[0].mxu1 %v1615_v11 }
  0x28   : > { %1504 = vmatprep.mubr.bf16.mxu0 %v1616_v12  ;;  %1536 = vmatprep.mubr.bf16.mxu1 %v1617_v13 }
  0x2f   : > { %1505 = vmatmul.mubr.bf16.gmra.mrb[4].mxu0 %v1618_v14  ;;  %1537 = vmatmul.mubr.bf16.gmra.mrb[4].mxu1 %v1619_v15 }
  0x30   : > { %1508 = vmatprep.mubr.bf16.mxu0 %v1620_v16  ;;  %1540 = vmatprep.mubr.bf16.mxu1 %v1621_v17 }
  0x37   : > { %1509 = vmatmul.mubr.bf16.gmra.mrb[8].mxu0 %v1622_v18  ;;  %1541 = vmatmul.mubr.bf16.gmra.mrb[8].mxu1 %v1623_v19 }
  0x38   : > { %1512 = vmatprep.mubr.bf16.mxu0 %v1624_v20  ;;  %1544 = vmatprep.mubr.bf16.mxu1 %v1625_v21 }
  0x3f   : > { %1513 = vmatmul.mubr.bf16.gmra.mrb[12].mxu0 %v1626_v22  ;;  %1545 = vmatmul.mubr.bf16.gmra.mrb[12].mxu1 %v1627_v23 }
  0x40   : > { %1516 = vmatprep.mubr.bf16.mxu0 %v1628_v24  ;;  %1548 = vmatprep.mubr.bf16.mxu1 %v1629_v25 }
  0x47   : > { %1517 = vmatmul.mubr.bf16.gmra.mrb[16].mxu0 %v1630_v26  ;;  %1549 = vmatmul.mubr.bf16.gmra.mrb[16].mxu1 %v1631_v27 }
  0x48   : > { %1520 = vmatprep.mubr.bf16.mxu0 %v1632_v28  ;;  %1552 = vmatprep.mubr.bf16.mxu1 %v1633_v29 }
  0x4f   : > { %1521 = vmatmul.mubr.bf16.gmra.mrb[20].mxu0 %v1634_v30  ;;  %1553 = vmatmul.mubr.bf16.gmra.mrb[20].mxu1 %v1635_v31 }
  0x50   : > { %1524 = vmatprep.mubr.bf16.mxu0 %v1636_v32  ;;  %1556 = vmatprep.mubr.bf16.mxu1 %v1637_v33 }
  0x57   : > { %1525 = vmatmul.mubr.bf16.gmra.mrb[24].mxu0 %v1638_v34  ;;  %1557 = vmatmul.mubr.bf16.gmra.mrb[24].mxu1 %v1639_v35 }
  0x58   : > { %1528 = vmatprep.mubr.bf16.mxu0 %v1640_v36  ;;  %1560 = vmatprep.mubr.bf16.mxu1 %v1641_v37 }
  0x5f   : > { %1529 = vmatmul.mubr.bf16.gmra.mrb[28].mxu0 %v1642_v38  ;;  %1561 = vmatmul.mubr.bf16.gmra.mrb[28].mxu1 %v1643_v39 }
  0xfa   : > { %v1502_v41 = vpop.f32.mrb[0].mxu0  ;;  %v1534_v43 = vpop.f32.mrb[0].mxu1 }
  0xfb   : > { %v885_v44 = vmul.f32 %v1502_v41, %v1778_v40  ;;  %v917_v45 = vmul.f32 %v1534_v43, %v1778_v40  ;;  %v621_v46 = vpop.f32.mrb[1].mxu0  ;;  %v749_v47 = vpop.f32.mrb[1].mxu1 }
  0xfc   : > { %v883_v48 = vmul.f32 %v1778_v40, %v621_v46  ;;  %v915_v49 = vmul.f32 %v1778_v40, %v749_v47  ;;  %v1503_v50 = vpop.f32.mrb[2].mxu0  ;;  %v1535_v51 = vpop.f32.mrb[2].mxu1 }
  0xfd   : > { %v956_v52 = vadd.f32 %v1783_v42, %v885_v44  ;;  %v988_v53 = vadd.f32 %v1783_v42, %v917_v45  ;;  %v886_v54 = vmul.f32 %v1503_v50, %v1778_v40  ;;  %v918_v55 = vmul.f32 %v1535_v51, %v1778_v40  ;;  %v624_v56 = vpop.f32.mrb[3].mxu0  ;;  %v752_v57 = vpop.f32.mrb[3].mxu1 }
  0xfe   : > { %v954_v58 = vadd.f32 %v1783_v42, %v883_v48  ;;  %v986_v59 = vadd.f32 %v1783_v42, %v915_v49  ;;  %v884_v60 = vmul.f32 %v1778_v40, %v624_v56  ;;  %v916_v61 = vmul.f32 %v1778_v40, %v752_v57 }
  0xff   : > { %vm1020_vm0 = vcmp.gt.f32.partialorder %v956_v52, 0.0  ;;  %v1084_v62 = vmul.f32 0.2, %v956_v52  ;;  %vm1052_vm1 = vcmp.gt.f32.partialorder %v988_v53, 0.0  ;;  %v1116_v63 = vmul.f32 0.2, %v988_v53 }
 0x100   : > { %vm1018_vm2 = vcmp.gt.f32.partialorder %v954_v58, 0.0  ;;  %v1082_v0 = vmul.f32 0.2, %v954_v58  ;;  %vm1050_vm3 = vcmp.gt.f32.partialorder %v986_v59, 0.0  ;;  %v1114_v1 = vmul.f32 0.2, %v986_v59 }
 0x101   : > { %v1148_v2 = vsel %vm1020_vm0, %v956_v52, %v1084_v62  ;;  %v1180_v3 = vsel %vm1052_vm1, %v988_v53, %v1116_v63  ;;  %v957_v4 = vadd.f32 %v1783_v42, %v886_v54  ;;  %v989_v5 = vadd.f32 %v1783_v42, %v918_v55 }
 0x102   : > { %1212 = vst [vmem:[%s1801_s24 + $0x10] sm:$0xff] %v1148_v2  ;;  %1244 = vst [vmem:[%s1801_s24 + $0x110] sm:$0xff] %v1180_v3  ;;  %v1146_v6 = vsel %vm1018_vm2, %v954_v58, %v1082_v0  ;;  %v1178_v7 = vsel %vm1050_vm3, %v986_v59, %v1114_v1  ;;  %v955_v8 = vadd.f32 %v1783_v42, %v884_v60  ;;  %v1506_v10 = vpop.f32.mrb[4].mxu0  ;;  %v1538_v11 = vpop.f32.mrb[4].mxu1 }
 0x103   : > { %v987_v9 = vadd.f32 %v1783_v42, %v916_v61  ;;  %1210 = vst [vmem:[%s1801_s24] sm:$0xff] %v1146_v6  ;;  %1242 = vst [vmem:[%s1801_s24 + $0x100] sm:$0xff] %v1178_v7  ;;  %vm1021_vm4 = vcmp.gt.f32.partialorder %v957_v4, 0.0  ;;  %v1085_v12 = vmul.f32 0.2, %v957_v4  ;;  %vm1053_vm5 = vcmp.gt.f32.partialorder %v989_v5, 0.0  ;;  %v637_v20 = vpop.f32.mrb[5].mxu0 }
 0x104   : > { %v1117_v13 = vmul.f32 0.2, %v989_v5  ;;  %vm1019_vm6 = vcmp.gt.f32.partialorder %v955_v8, 0.0  ;;  %v1083_v14 = vmul.f32 0.2, %v955_v8  ;;  %v889_v18 = vmul.f32 %v1506_v10, %v1778_v40  ;;  %v765_v21 = vpop.f32.mrb[5].mxu1 }
 0x105   : > { %vm1051_vm7 = vcmp.gt.f32.partialorder %v987_v9, 0.0  ;;  %v1115_v15 = vmul.f32 0.2, %v987_v9  ;;  %v1149_v16 = vsel %vm1021_vm4, %v957_v4, %v1085_v12  ;;  %v921_v19 = vmul.f32 %v1538_v11, %v1778_v40  ;;  %v1507_v26 = vpop.f32.mrb[6].mxu0  ;;  %v1539_v27 = vpop.f32.mrb[6].mxu1 }
 0x106   : > { %v1181_v17 = vsel %vm1053_vm5, %v989_v5, %v1117_v13  ;;  %1213 = vst [vmem:[%s1801_s24 + $0x18] sm:$0xff] %v1149_v16  ;;  %v1147_v22 = vsel %vm1019_vm6, %v955_v8, %v1083_v14  ;;  %v887_v24 = vmul.f32 %v1778_v40, %v637_v20  ;;  %v919_v25 = vmul.f32 %v1778_v40, %v765_v21  ;;  %v640_v32 = vpop.f32.mrb[7].mxu0  ;;  %v768_v33 = vpop.f32.mrb[7].mxu1 }
 0x107   : > { %1245 = vst [vmem:[%s1801_s24 + $0x118] sm:$0xff] %v1181_v17  ;;  %v1179_v23 = vsel %vm1051_vm7, %v987_v9, %v1115_v15  ;;  %1211 = vst [vmem:[%s1801_s24 + $0x8] sm:$0xff] %v1147_v22  ;;  %v960_v28 = vadd.f32 %v1783_v42, %v889_v18  ;;  %v992_v29 = vadd.f32 %v1783_v42, %v921_v19 }
 0x108   : > { %1243 = vst [vmem:[%s1801_s24 + $0x108] sm:$0xff] %v1179_v23  ;;  %v890_v30 = vmul.f32 %v1507_v26, %v1778_v40  ;;  %v922_v31 = vmul.f32 %v1539_v27, %v1778_v40  ;;  %v958_v34 = vadd.f32 %v1783_v42, %v887_v24  ;;  %v990_v35 = vadd.f32 %v1783_v42, %v919_v25 }
 0x109   : > { %v888_v36 = vmul.f32 %v1778_v40, %v640_v32  ;;  %v920_v37 = vmul.f32 %v1778_v40, %v768_v33  ;;  %vm1024_vm8 = vcmp.gt.f32.partialorder %v960_v28, 0.0  ;;  %v1088_v38 = vmul.f32 0.2, %v960_v28 }
 0x10a   : > { %vm1056_vm9 = vcmp.gt.f32.partialorder %v992_v29, 0.0  ;;  %v1120_v39 = vmul.f32 0.2, %v992_v29  ;;  %vm1022_vm10 = vcmp.gt.f32.partialorder %v958_v34, 0.0  ;;  %v1086_v41 = vmul.f32 0.2, %v958_v34 }
 0x10b   : > { %vm1054_vm11 = vcmp.gt.f32.partialorder %v990_v35, 0.0  ;;  %v1118_v43 = vmul.f32 0.2, %v990_v35  ;;  %v1152_v44 = vsel %vm1024_vm8, %v960_v28, %v1088_v38  ;;  %v961_v46 = vadd.f32 %v1783_v42, %v890_v30  ;;  %v1510_v48 = vpop.f32.mrb[8].mxu0  ;;  %v1542_v49 = vpop.f32.mrb[8].mxu1 }
 0x10c   : > { %v1184_v45 = vsel %vm1056_vm9, %v992_v29, %v1120_v39  ;;  %v993_v47 = vadd.f32 %v1783_v42, %v922_v31  ;;  %1216 = vst [vmem:[%s1801_s24 + $0x30] sm:$0xff] %v1152_v44  ;;  %v1150_v50 = vsel %vm1022_vm10, %v958_v34, %v1086_v41  ;;  %v959_v52 = vadd.f32 %v1783_v42, %v888_v36  ;;  %v653_v54 = vpop.f32.mrb[9].mxu0  ;;  %v781_v55 = vpop.f32.mrb[9].mxu1 }
 0x10d   : > { %1248 = vst [vmem:[%s1801_s24 + $0x130] sm:$0xff] %v1184_v45  ;;  %v1182_v51 = vsel %vm1054_vm11, %v990_v35, %v1118_v43  ;;  %v991_v53 = vadd.f32 %v1783_v42, %v920_v37  ;;  %1214 = vst [vmem:[%s1801_s24 + $0x20] sm:$0xff] %v1150_v50  ;;  %vm1025_vm12 = vcmp.gt.f32.partialorder %v961_v46, 0.0  ;;  %v1089_v56 = vmul.f32 0.2, %v961_v46  ;;  %v1511_v0 = vpop.f32.mrb[10].mxu0 }
 0x10e   : > { %1246 = vst [vmem:[%s1801_s24 + $0x120] sm:$0xff] %v1182_v51  ;;  %vm1057_vm13 = vcmp.gt.f32.partialorder %v993_v47, 0.0  ;;  %v1121_v57 = vmul.f32 0.2, %v993_v47  ;;  %vm1023_vm14 = vcmp.gt.f32.partialorder %v959_v52, 0.0  ;;  %v893_v62 = vmul.f32 %v1510_v48, %v1778_v40  ;;  %v1543_v1 = vpop.f32.mrb[10].mxu1 }
 0x10f   : > { %v1087_v58 = vmul.f32 0.2, %v959_v52  ;;  %vm1055_vm15 = vcmp.gt.f32.partialorder %v991_v53, 0.0  ;;  %v1119_v59 = vmul.f32 0.2, %v991_v53  ;;  %v1153_v60 = vsel %vm1025_vm12, %v961_v46, %v1089_v56  ;;  %v656_v6 = vpop.f32.mrb[11].mxu0 }
 0x110   : > { %v1185_v61 = vsel %vm1057_vm13, %v993_v47, %v1121_v57  ;;  %v925_v63 = vmul.f32 %v1542_v49, %v1778_v40  ;;  %1217 = vst [vmem:[%s1801_s24 + $0x38] sm:$0xff] %v1153_v60  ;;  %v891_v4 = vmul.f32 %v1778_v40, %v653_v54  ;;  %v923_v5 = vmul.f32 %v1778_v40, %v781_v55  ;;  %v784_v7 = vpop.f32.mrb[11].mxu1 }
 0x111   : > { %1249 = vst [vmem:[%s1801_s24 + $0x138] sm:$0xff] %v1185_v61  ;;  %v1151_v2 = vsel %vm1023_vm14, %v959_v52, %v1087_v58  ;;  %v1183_v3 = vsel %vm1055_vm15, %v991_v53, %v1119_v59  ;;  %v964_v8 = vadd.f32 %v1783_v42, %v893_v62  ;;  %v894_v10 = vmul.f32 %v1511_v0, %v1778_v40 }
 0x112   : > { %1215 = vst [vmem:[%s1801_s24 + $0x28] sm:$0xff] %v1151_v2  ;;  %1247 = vst [vmem:[%s1801_s24 + $0x128] sm:$0xff] %v1183_v3  ;;  %v996_v9 = vadd.f32 %v1783_v42, %v925_v63  ;;  %v926_v11 = vmul.f32 %v1543_v1, %v1778_v40  ;;  %v962_v12 = vadd.f32 %v1783_v42, %v891_v4  ;;  %v1514_v16 = vpop.f32.mrb[12].mxu0  ;;  %v1546_v17 = vpop.f32.mrb[12].mxu1 }
 0x113   : > { %v994_v13 = vadd.f32 %v1783_v42, %v923_v5  ;;  %v892_v14 = vmul.f32 %v1778_v40, %v656_v6  ;;  %v924_v15 = vmul.f32 %v1778_v40, %v784_v7  ;;  %vm1028_vm0 = vcmp.gt.f32.partialorder %v964_v8, 0.0  ;;  %v669_v26 = vpop.f32.mrb[13].mxu0  ;;  %v797_v27 = vpop.f32.mrb[13].mxu1 }
 0x114   : > { %v1092_v18 = vmul.f32 0.2, %v964_v8  ;;  %vm1060_vm1 = vcmp.gt.f32.partialorder %v996_v9, 0.0  ;;  %v1124_v19 = vmul.f32 0.2, %v996_v9  ;;  %vm1026_vm2 = vcmp.gt.f32.partialorder %v962_v12, 0.0 }
 0x115   : > { %v1090_v20 = vmul.f32 0.2, %v962_v12  ;;  %vm1058_vm3 = vcmp.gt.f32.partialorder %v994_v13, 0.0  ;;  %v1122_v21 = vmul.f32 0.2, %v994_v13  ;;  %v965_v24 = vadd.f32 %v1783_v42, %v894_v10  ;;  %v1515_v32 = vpop.f32.mrb[14].mxu0 }
 0x116   : > { %v1156_v22 = vsel %vm1028_vm0, %v964_v8, %v1092_v18  ;;  %v1188_v23 = vsel %vm1060_vm1, %v996_v9, %v1124_v19  ;;  %v997_v25 = vadd.f32 %v1783_v42, %v926_v11  ;;  %v963_v30 = vadd.f32 %v1783_v42, %v892_v14  ;;  %v1547_v33 = vpop.f32.mrb[14].mxu1  ;;  %v672_v44 = vpop.f32.mrb[15].mxu0 }
 0x117   : > { %1220 = vst [vmem:[%s1801_s24 + $0x50] sm:$0xff] %v1156_v22  ;;  %1252 = vst [vmem:[%s1801_s24 + $0x150] sm:$0xff] %v1188_v23  ;;  %v1154_v28 = vsel %vm1026_vm2, %v962_v12, %v1090_v20  ;;  %v1186_v29 = vsel %vm1058_vm3, %v994_v13, %v1122_v21  ;;  %v995_v31 = vadd.f32 %v1783_v42, %v924_v15  ;;  %vm1029_vm4 = vcmp.gt.f32.partialorder %v965_v24, 0.0  ;;  %v800_v45 = vpop.f32.mrb[15].mxu1 }
 0x118   : > { %1218 = vst [vmem:[%s1801_s24 + $0x40] sm:$0xff] %v1154_v28  ;;  %1250 = vst [vmem:[%s1801_s24 + $0x140] sm:$0xff] %v1186_v29  ;;  %v1093_v34 = vmul.f32 0.2, %v965_v24  ;;  %vm1061_vm5 = vcmp.gt.f32.partialorder %v997_v25, 0.0  ;;  %vm1027_vm6 = vcmp.gt.f32.partialorder %v963_v30, 0.0  ;;  %v897_v41 = vmul.f32 %v1514_v16, %v1778_v40 }
 0x119   : > { %v1125_v35 = vmul.f32 0.2, %v997_v25  ;;  %v1091_v36 = vmul.f32 0.2, %v963_v30  ;;  %vm1059_vm7 = vcmp.gt.f32.partialorder %v995_v31, 0.0  ;;  %v929_v43 = vmul.f32 %v1546_v17, %v1778_v40 }
 0x11a   : > { %v1123_v37 = vmul.f32 0.2, %v995_v31  ;;  %v1157_v38 = vsel %vm1029_vm4, %v965_v24, %v1093_v34  ;;  %v895_v48 = vmul.f32 %v1778_v40, %v669_v26  ;;  %v927_v49 = vmul.f32 %v1778_v40, %v797_v27  ;;  %v1518_v50 = vpop.f32.mrb[16].mxu0  ;;  %v1550_v51 = vpop.f32.mrb[16].mxu1 }
 0x11b   : > { %v1189_v39 = vsel %vm1061_vm5, %v997_v25, %v1125_v35  ;;  %1221 = vst [vmem:[%s1801_s24 + $0x58] sm:$0xff] %v1157_v38  ;;  %v1155_v46 = vsel %vm1027_vm6, %v963_v30, %v1091_v36  ;;  %v968_v52 = vadd.f32 %v1783_v42, %v897_v41  ;;  %v1000_v53 = vadd.f32 %v1783_v42, %v929_v43  ;;  %v685_v56 = vpop.f32.mrb[17].mxu0  ;;  %v813_v57 = vpop.f32.mrb[17].mxu1 }
 0x11c   : > { %1253 = vst [vmem:[%s1801_s24 + $0x158] sm:$0xff] %v1189_v39  ;;  %v1187_v47 = vsel %vm1059_vm7, %v995_v31, %v1123_v37  ;;  %1219 = vst [vmem:[%s1801_s24 + $0x48] sm:$0xff] %v1155_v46  ;;  %v898_v54 = vmul.f32 %v1515_v32, %v1778_v40  ;;  %v930_v55 = vmul.f32 %v1547_v33, %v1778_v40  ;;  %v1519_v62 = vpop.f32.mrb[18].mxu0  ;;  %v1551_v63 = vpop.f32.mrb[18].mxu1 }
 0x11d   : > { %1251 = vst [vmem:[%s1801_s24 + $0x148] sm:$0xff] %v1187_v47  ;;  %v966_v58 = vadd.f32 %v1783_v42, %v895_v48  ;;  %v998_v59 = vadd.f32 %v1783_v42, %v927_v49  ;;  %v896_v60 = vmul.f32 %v1778_v40, %v672_v44  ;;  %v928_v61 = vmul.f32 %v1778_v40, %v800_v45  ;;  %v688_v8 = vpop.f32.mrb[19].mxu0  ;;  %v816_v9 = vpop.f32.mrb[19].mxu1 }
 0x11e   : > { %vm1032_vm8 = vcmp.gt.f32.partialorder %v968_v52, 0.0  ;;  %v1096_v0 = vmul.f32 0.2, %v968_v52  ;;  %vm1064_vm9 = vcmp.gt.f32.partialorder %v1000_v53, 0.0  ;;  %v1128_v1 = vmul.f32 0.2, %v1000_v53 }
 0x11f   : > { %vm1030_vm10 = vcmp.gt.f32.partialorder %v966_v58, 0.0  ;;  %v1094_v2 = vmul.f32 0.2, %v966_v58  ;;  %vm1062_vm11 = vcmp.gt.f32.partialorder %v998_v59, 0.0  ;;  %v1126_v3 = vmul.f32 0.2, %v998_v59 }
 0x120   : > { %v1160_v4 = vsel %vm1032_vm8, %v968_v52, %v1096_v0  ;;  %v1192_v5 = vsel %vm1064_vm9, %v1000_v53, %v1128_v1  ;;  %v969_v6 = vadd.f32 %v1783_v42, %v898_v54  ;;  %v1001_v7 = vadd.f32 %v1783_v42, %v930_v55 }
 0x121   : > { %1224 = vst [vmem:[%s1801_s24 + $0x70] sm:$0xff] %v1160_v4  ;;  %1256 = vst [vmem:[%s1801_s24 + $0x170] sm:$0xff] %v1192_v5  ;;  %v1158_v10 = vsel %vm1030_vm10, %v966_v58, %v1094_v2  ;;  %v1190_v11 = vsel %vm1062_vm11, %v998_v59, %v1126_v3  ;;  %v967_v12 = vadd.f32 %v1783_v42, %v896_v60 }
 0x122   : > { %v999_v13 = vadd.f32 %v1783_v42, %v928_v61  ;;  %1222 = vst [vmem:[%s1801_s24 + $0x60] sm:$0xff] %v1158_v10  ;;  %1254 = vst [vmem:[%s1801_s24 + $0x160] sm:$0xff] %v1190_v11  ;;  %vm1033_vm12 = vcmp.gt.f32.partialorder %v969_v6, 0.0  ;;  %v1097_v14 = vmul.f32 0.2, %v969_v6  ;;  %vm1065_vm13 = vcmp.gt.f32.partialorder %v1001_v7, 0.0 }
 0x123   : > { %v1129_v15 = vmul.f32 0.2, %v1001_v7  ;;  %vm1031_vm14 = vcmp.gt.f32.partialorder %v967_v12, 0.0  ;;  %v1095_v16 = vmul.f32 0.2, %v967_v12  ;;  %v901_v20 = vmul.f32 %v1518_v50, %v1778_v40  ;;  %v1522_v22 = vpop.f32.mrb[20].mxu0 }
 0x124   : > { %vm1063_vm15 = vcmp.gt.f32.partialorder %v999_v13, 0.0  ;;  %v1127_v17 = vmul.f32 0.2, %v999_v13  ;;  %v1161_v18 = vsel %vm1033_vm12, %v969_v6, %v1097_v14  ;;  %v933_v21 = vmul.f32 %v1550_v51, %v1778_v40  ;;  %v1554_v23 = vpop.f32.mrb[20].mxu1  ;;  %v701_v28 = vpop.f32.mrb[21].mxu0 }
 0x125   : > { %v1193_v19 = vsel %vm1065_vm13, %v1001_v7, %v1129_v15  ;;  %1225 = vst [vmem:[%s1801_s24 + $0x78] sm:$0xff] %v1161_v18  ;;  %v1159_v24 = vsel %vm1031_vm14, %v967_v12, %v1095_v16  ;;  %v899_v26 = vmul.f32 %v1778_v40, %v685_v56  ;;  %v931_v27 = vmul.f32 %v1778_v40, %v813_v57  ;;  %v829_v29 = vpop.f32.mrb[21].mxu1  ;;  %v1523_v34 = vpop.f32.mrb[22].mxu0 }
 0x126   : > { %1257 = vst [vmem:[%s1801_s24 + $0x178] sm:$0xff] %v1193_v19  ;;  %v1191_v25 = vsel %vm1063_vm15, %v999_v13, %v1127_v17  ;;  %1223 = vst [vmem:[%s1801_s24 + $0x68] sm:$0xff] %v1159_v24  ;;  %v972_v30 = vadd.f32 %v1783_v42, %v901_v20  ;;  %v1004_v31 = vadd.f32 %v1783_v42, %v933_v21  ;;  %v1555_v35 = vpop.f32.mrb[22].mxu1  ;;  %v704_v41 = vpop.f32.mrb[23].mxu0 }
 0x127   : > { %1255 = vst [vmem:[%s1801_s24 + $0x168] sm:$0xff] %v1191_v25  ;;  %v902_v32 = vmul.f32 %v1519_v62, %v1778_v40  ;;  %v934_v33 = vmul.f32 %v1551_v63, %v1778_v40  ;;  %v970_v36 = vadd.f32 %v1783_v42, %v899_v26  ;;  %v1002_v37 = vadd.f32 %v1783_v42, %v931_v27  ;;  %v832_v43 = vpop.f32.mrb[23].mxu1 }
 0x128   : > { %v900_v38 = vmul.f32 %v1778_v40, %v688_v8  ;;  %v932_v39 = vmul.f32 %v1778_v40, %v816_v9  ;;  %vm1036_vm0 = vcmp.gt.f32.partialorder %v972_v30, 0.0  ;;  %v1100_v44 = vmul.f32 0.2, %v972_v30 }
 0x129   : > { %vm1068_vm1 = vcmp.gt.f32.partialorder %v1004_v31, 0.0  ;;  %v1132_v45 = vmul.f32 0.2, %v1004_v31  ;;  %vm1034_vm2 = vcmp.gt.f32.partialorder %v970_v36, 0.0  ;;  %v1098_v46 = vmul.f32 0.2, %v970_v36 }
 0x12a   : > { %vm1066_vm3 = vcmp.gt.f32.partialorder %v1002_v37, 0.0  ;;  %v1130_v47 = vmul.f32 0.2, %v1002_v37  ;;  %v1164_v48 = vsel %vm1036_vm0, %v972_v30, %v1100_v44  ;;  %v973_v50 = vadd.f32 %v1783_v42, %v902_v32  ;;  %v1905_v56 = vpop.f32.mrb[24].mxu0  ;;  %v1907_v57 = vpop.f32.mrb[24].mxu1 }
 0x12b   : > { %v1196_v49 = vsel %vm1068_vm1, %v1004_v31, %v1132_v45  ;;  %v1005_v51 = vadd.f32 %v1783_v42, %v934_v33  ;;  %1228 = vst [vmem:[%s1801_s24 + $0x90] sm:$0xff] %v1164_v48  ;;  %v1162_v52 = vsel %vm1034_vm2, %v970_v36, %v1098_v46  ;;  %v971_v54 = vadd.f32 %v1783_v42, %v900_v38  ;;  %v1913_v2 = vpop.f32.mrb[25].mxu0  ;;  %v1915_v3 = vpop.f32.mrb[25].mxu1 }
 0x12c   : > { %1260 = vst [vmem:[%s1801_s24 + $0x190] sm:$0xff] %v1196_v49  ;;  %v1194_v53 = vsel %vm1066_vm3, %v1002_v37, %v1130_v47  ;;  %v1003_v55 = vadd.f32 %v1783_v42, %v932_v39  ;;  %1226 = vst [vmem:[%s1801_s24 + $0x80] sm:$0xff] %v1162_v52  ;;  %vm1037_vm4 = vcmp.gt.f32.partialorder %v973_v50, 0.0  ;;  %v1101_v58 = vmul.f32 0.2, %v973_v50  ;;  %v1921_v8 = vpop.f32.mrb[26].mxu0 }
 0x12d   : > { %1258 = vst [vmem:[%s1801_s24 + $0x180] sm:$0xff] %v1194_v53  ;;  %vm1069_vm5 = vcmp.gt.f32.partialorder %v1005_v51, 0.0  ;;  %v1133_v59 = vmul.f32 0.2, %v1005_v51  ;;  %vm1035_vm6 = vcmp.gt.f32.partialorder %v971_v54, 0.0  ;;  %v905_v0 = vmul.f32 %v1522_v22, %v1778_v40  ;;  %v1923_v9 = vpop.f32.mrb[26].mxu1 }
 0x12e   : > { %v1099_v60 = vmul.f32 0.2, %v971_v54  ;;  %vm1067_vm7 = vcmp.gt.f32.partialorder %v1003_v55, 0.0  ;;  %v1131_v61 = vmul.f32 0.2, %v1003_v55  ;;  %v1165_v62 = vsel %vm1037_vm4, %v973_v50, %v1101_v58  ;;  %v720_v14 = vpop.f32.mrb[27].mxu0 }
 0x12f   : > { %v1197_v63 = vsel %vm1069_vm5, %v1005_v51, %v1133_v59  ;;  %v937_v1 = vmul.f32 %v1554_v23, %v1778_v40  ;;  %1229 = vst [vmem:[%s1801_s24 + $0x98] sm:$0xff] %v1165_v62  ;;  %v903_v6 = vmul.f32 %v1778_v40, %v701_v28  ;;  %v935_v7 = vmul.f32 %v1778_v40, %v829_v29  ;;  %v848_v15 = vpop.f32.mrb[27].mxu1 }
 0x130   : > { %1261 = vst [vmem:[%s1801_s24 + $0x198] sm:$0xff] %v1197_v63  ;;  %v1163_v4 = vsel %vm1035_vm6, %v971_v54, %v1099_v60  ;;  %v1195_v5 = vsel %vm1067_vm7, %v1003_v55, %v1131_v61  ;;  %v976_v10 = vadd.f32 %v1783_v42, %v905_v0  ;;  %v906_v12 = vmul.f32 %v1523_v34, %v1778_v40 }
 0x131   : > { %1227 = vst [vmem:[%s1801_s24 + $0x88] sm:$0xff] %v1163_v4  ;;  %1259 = vst [vmem:[%s1801_s24 + $0x188] sm:$0xff] %v1195_v5  ;;  %v1008_v11 = vadd.f32 %v1783_v42, %v937_v1  ;;  %v938_v13 = vmul.f32 %v1555_v35, %v1778_v40  ;;  %v974_v16 = vadd.f32 %v1783_v42, %v903_v6 }
 0x132   : > { %v1006_v17 = vadd.f32 %v1783_v42, %v935_v7  ;;  %v904_v18 = vmul.f32 %v1778_v40, %v704_v41  ;;  %v936_v19 = vmul.f32 %v1778_v40, %v832_v43  ;;  %vm1040_vm8 = vcmp.gt.f32.partialorder %v976_v10, 0.0  ;;  %v1937_v28 = vpop.f32.mrb[28].mxu0  ;;  %v1939_v29 = vpop.f32.mrb[28].mxu1 }
 0x133   : > { %v1104_v20 = vmul.f32 0.2, %v976_v10  ;;  %vm1072_vm9 = vcmp.gt.f32.partialorder %v1008_v11, 0.0  ;;  %v1136_v21 = vmul.f32 0.2, %v1008_v11  ;;  %vm1038_vm10 = vcmp.gt.f32.partialorder %v974_v16, 0.0 }
 0x134   : > { %v1102_v22 = vmul.f32 0.2, %v974_v16  ;;  %vm1070_vm11 = vcmp.gt.f32.partialorder %v1006_v17, 0.0  ;;  %v1134_v23 = vmul.f32 0.2, %v1006_v17  ;;  %v977_v26 = vadd.f32 %v1783_v42, %v906_v12  ;;  %v1945_v34 = vpop.f32.mrb[29].mxu0 }
 0x135   : > { %v1168_v24 = vsel %vm1040_vm8, %v976_v10, %v1104_v20  ;;  %v1200_v25 = vsel %vm1072_vm9, %v1008_v11, %v1136_v21  ;;  %v1009_v27 = vadd.f32 %v1783_v42, %v938_v13  ;;  %v975_v32 = vadd.f32 %v1783_v42, %v904_v18  ;;  %v1947_v35 = vpop.f32.mrb[29].mxu1  ;;  %v1531_v46 = vpop.f32.mrb[30].mxu0 }
 0x136   : > { %1232 = vst [vmem:[%s1801_s24 + $0xb0] sm:$0xff] %v1168_v24  ;;  %1264 = vst [vmem:[%s1801_s24 + $0x1b0] sm:$0xff] %v1200_v25  ;;  %v1166_v30 = vsel %vm1038_vm10, %v974_v16, %v1102_v22  ;;  %v1198_v31 = vsel %vm1070_vm11, %v1006_v17, %v1134_v23  ;;  %v1007_v33 = vadd.f32 %v1783_v42, %v936_v19  ;;  %vm1041_vm12 = vcmp.gt.f32.partialorder %v977_v26, 0.0  ;;  %v1563_v47 = vpop.f32.mrb[30].mxu1  ;;  %v736_v52 = vpop.f32.mrb[31].mxu0 }
 0x137   : > { %1230 = vst [vmem:[%s1801_s24 + $0xa0] sm:$0xff] %v1166_v30  ;;  %1262 = vst [vmem:[%s1801_s24 + $0x1a0] sm:$0xff] %v1198_v31  ;;  %v1105_v36 = vmul.f32 0.2, %v977_v26  ;;  %vm1073_vm13 = vcmp.gt.f32.partialorder %v1009_v27, 0.0  ;;  %vm1039_vm14 = vcmp.gt.f32.partialorder %v975_v32, 0.0  ;;  %v909_v44 = vmul.f32 %v1905_v56, %v1778_v40 }
 0x138   : > { %v1137_v37 = vmul.f32 0.2, %v1009_v27  ;;  %v1103_v38 = vmul.f32 0.2, %v975_v32  ;;  %vm1071_vm15 = vcmp.gt.f32.partialorder %v1007_v33, 0.0  ;;  %v941_v45 = vmul.f32 %v1907_v57, %v1778_v40  ;;  %v864_v53 = vpop.f32.mrb[31].mxu1 }
 0x139   : > { %v1135_v39 = vmul.f32 0.2, %v1007_v33  ;;  %v1169_v41 = vsel %vm1041_vm12, %v977_v26, %v1105_v36  ;;  %v907_v50 = vmul.f32 %v1778_v40, %v1913_v2  ;;  %v939_v51 = vmul.f32 %v1778_v40, %v1915_v3 }
 0x13a   : > { %v1201_v43 = vsel %vm1073_vm13, %v1009_v27, %v1137_v37  ;;  %1233 = vst [vmem:[%s1801_s24 + $0xb8] sm:$0xff] %v1169_v41  ;;  %v1167_v48 = vsel %vm1039_vm14, %v975_v32, %v1103_v38  ;;  %v980_v54 = vadd.f32 %v1783_v42, %v909_v44  ;;  %v1012_v55 = vadd.f32 %v1783_v42, %v941_v45 }
 0x13b   : > { %1265 = vst [vmem:[%s1801_s24 + $0x1b8] sm:$0xff] %v1201_v43  ;;  %v1199_v49 = vsel %vm1071_vm15, %v1007_v33, %v1135_v39  ;;  %1231 = vst [vmem:[%s1801_s24 + $0xa8] sm:$0xff] %v1167_v48  ;;  %v910_v56 = vmul.f32 %v1921_v8, %v1778_v40  ;;  %v942_v57 = vmul.f32 %v1923_v9, %v1778_v40 }
 0x13c   : > { %1263 = vst [vmem:[%s1801_s24 + $0x1a8] sm:$0xff] %v1199_v49  ;;  %v978_v58 = vadd.f32 %v1783_v42, %v907_v50  ;;  %v1010_v59 = vadd.f32 %v1783_v42, %v939_v51  ;;  %v908_v60 = vmul.f32 %v1778_v40, %v720_v14  ;;  %v940_v61 = vmul.f32 %v1778_v40, %v848_v15 }
 0x13d   : > { %vm1044_vm0 = vcmp.gt.f32.partialorder %v980_v54, 0.0  ;;  %v1108_v62 = vmul.f32 0.2, %v980_v54  ;;  %vm1076_vm1 = vcmp.gt.f32.partialorder %v1012_v55, 0.0  ;;  %v1140_v63 = vmul.f32 0.2, %v1012_v55 }
 0x13e   : > { %vm1042_vm2 = vcmp.gt.f32.partialorder %v978_v58, 0.0  ;;  %v1106_v0 = vmul.f32 0.2, %v978_v58  ;;  %vm1074_vm3 = vcmp.gt.f32.partialorder %v1010_v59, 0.0  ;;  %v1138_v1 = vmul.f32 0.2, %v1010_v59 }
 0x13f   : > { %v1172_v2 = vsel %vm1044_vm0, %v980_v54, %v1108_v62  ;;  %v1204_v3 = vsel %vm1076_vm1, %v1012_v55, %v1140_v63  ;;  %v981_v4 = vadd.f32 %v1783_v42, %v910_v56  ;;  %v1013_v5 = vadd.f32 %v1783_v42, %v942_v57 }
 0x140   : > { %1236 = vst [vmem:[%s1801_s24 + $0xd0] sm:$0xff] %v1172_v2  ;;  %1268 = vst [vmem:[%s1801_s24 + $0x1d0] sm:$0xff] %v1204_v3  ;;  %v1170_v6 = vsel %vm1042_vm2, %v978_v58, %v1106_v0  ;;  %v1202_v7 = vsel %vm1074_vm3, %v1010_v59, %v1138_v1  ;;  %v979_v8 = vadd.f32 %v1783_v42, %v908_v60 }
 0x141   : > { %v1011_v9 = vadd.f32 %v1783_v42, %v940_v61  ;;  %1234 = vst [vmem:[%s1801_s24 + $0xc0] sm:$0xff] %v1170_v6  ;;  %1266 = vst [vmem:[%s1801_s24 + $0x1c0] sm:$0xff] %v1202_v7  ;;  %vm1045_vm4 = vcmp.gt.f32.partialorder %v981_v4, 0.0  ;;  %v1109_v10 = vmul.f32 0.2, %v981_v4  ;;  %vm1077_vm5 = vcmp.gt.f32.partialorder %v1013_v5, 0.0 }
 0x142   : > { %v1141_v11 = vmul.f32 0.2, %v1013_v5  ;;  %vm1043_vm6 = vcmp.gt.f32.partialorder %v979_v8, 0.0  ;;  %v1107_v12 = vmul.f32 0.2, %v979_v8  ;;  %v913_v16 = vmul.f32 %v1937_v28, %v1778_v40 }
 0x143   : > { %vm1075_vm7 = vcmp.gt.f32.partialorder %v1011_v9, 0.0  ;;  %v1139_v13 = vmul.f32 0.2, %v1011_v9  ;;  %v1173_v14 = vsel %vm1045_vm4, %v981_v4, %v1109_v10  ;;  %v945_v17 = vmul.f32 %v1939_v29, %v1778_v40 }
 0x144   : > { %v1205_v15 = vsel %vm1077_vm5, %v1013_v5, %v1141_v11  ;;  %1237 = vst [vmem:[%s1801_s24 + $0xd8] sm:$0xff] %v1173_v14  ;;  %v1171_v18 = vsel %vm1043_vm6, %v979_v8, %v1107_v12  ;;  %v911_v20 = vmul.f32 %v1778_v40, %v1945_v34  ;;  %v943_v21 = vmul.f32 %v1778_v40, %v1947_v35 }
 0x145   : > { %1269 = vst [vmem:[%s1801_s24 + $0x1d8] sm:$0xff] %v1205_v15  ;;  %v1203_v19 = vsel %vm1075_vm7, %v1011_v9, %v1139_v13  ;;  %1235 = vst [vmem:[%s1801_s24 + $0xc8] sm:$0xff] %v1171_v18  ;;  %v984_v22 = vadd.f32 %v1783_v42, %v913_v16  ;;  %v1016_v23 = vadd.f32 %v1783_v42, %v945_v17 }
 0x146   : > { %1267 = vst [vmem:[%s1801_s24 + $0x1c8] sm:$0xff] %v1203_v19  ;;  %v914_v24 = vmul.f32 %v1531_v46, %v1778_v40  ;;  %v946_v25 = vmul.f32 %v1563_v47, %v1778_v40  ;;  %v982_v26 = vadd.f32 %v1783_v42, %v911_v20  ;;  %v1014_v27 = vadd.f32 %v1783_v42, %v943_v21 }
 0x147   : > { %v912_v28 = vmul.f32 %v1778_v40, %v736_v52  ;;  %v944_v29 = vmul.f32 %v1778_v40, %v864_v53  ;;  %vm1048_vm8 = vcmp.gt.f32.partialorder %v984_v22, 0.0  ;;  %v1112_v30 = vmul.f32 0.2, %v984_v22 }
 0x148   : > { %vm1080_vm9 = vcmp.gt.f32.partialorder %v1016_v23, 0.0  ;;  %v1144_v31 = vmul.f32 0.2, %v1016_v23  ;;  %vm1046_vm10 = vcmp.gt.f32.partialorder %v982_v26, 0.0  ;;  %v1110_v32 = vmul.f32 0.2, %v982_v26 }
 0x149   : > { %vm1078_vm11 = vcmp.gt.f32.partialorder %v1014_v27, 0.0  ;;  %v1142_v33 = vmul.f32 0.2, %v1014_v27  ;;  %v1176_v34 = vsel %vm1048_vm8, %v984_v22, %v1112_v30  ;;  %v985_v36 = vadd.f32 %v1783_v42, %v914_v24 }
 0x14a   : > { %v1208_v35 = vsel %vm1080_vm9, %v1016_v23, %v1144_v31  ;;  %v1017_v37 = vadd.f32 %v1783_v42, %v946_v25  ;;  %1240 = vst [vmem:[%s1801_s24 + $0xf0] sm:$0xff] %v1176_v34  ;;  %v1174_v38 = vsel %vm1046_vm10, %v982_v26, %v1110_v32  ;;  %v983_v39 = vadd.f32 %v1783_v42, %v912_v28 }
 0x14b   : > { %1272 = vst [vmem:[%s1801_s24 + $0x1f0] sm:$0xff] %v1208_v35  ;;  %v1206_v40 = vsel %vm1078_vm11, %v1014_v27, %v1142_v33  ;;  %v1015_v41 = vadd.f32 %v1783_v42, %v944_v29  ;;  %1238 = vst [vmem:[%s1801_s24 + $0xe0] sm:$0xff] %v1174_v38  ;;  %vm1049_vm12 = vcmp.gt.f32.partialorder %v985_v36, 0.0  ;;  %v1113_v43 = vmul.f32 0.2, %v985_v36 }
 0x14c   : > { %1270 = vst [vmem:[%s1801_s24 + $0x1e0] sm:$0xff] %v1206_v40  ;;  %vm1081_vm13 = vcmp.gt.f32.partialorder %v1017_v37, 0.0  ;;  %v1145_v44 = vmul.f32 0.2, %v1017_v37  ;;  %vm1047_vm14 = vcmp.gt.f32.partialorder %v983_v39, 0.0 }
 0x14d   : > { %v1111_v45 = vmul.f32 0.2, %v983_v39  ;;  %vm1079_vm15 = vcmp.gt.f32.partialorder %v1015_v41, 0.0  ;;  %v1143_v46 = vmul.f32 0.2, %v1015_v41  ;;  %v1177_v47 = vsel %vm1049_vm12, %v985_v36, %v1113_v43 }
 0x14e   : > { %v1209_v48 = vsel %vm1081_vm13, %v1017_v37, %v1145_v44  ;;  %1241 = vst [vmem:[%s1801_s24 + $0xf8] sm:$0xff] %v1177_v47 }
 0x14f   : > { %1273 = vst [vmem:[%s1801_s24 + $0x1f8] sm:$0xff] %v1209_v48  ;;  %v1175_v49 = vsel %vm1047_vm14, %v983_v39, %v1111_v45  ;;  %v1207_v50 = vsel %vm1079_vm15, %v1015_v41, %v1143_v46 }
 0x150   : > { %1239 = vst [vmem:[%s1801_s24 + $0xe8] sm:$0xff] %v1175_v49  ;;  %1271 = vst [vmem:[%s1801_s24 + $0x1e8] sm:$0xff] %v1207_v50 }
 0x151 PF: > { %s14_s17 = sadd.s32 1, %s1666_s17   ;;  %s2027_s15 = smov %s1662_s16 }
 0x152   : > { %p11_p5 = scmp.ge.s32.totalorder %s14_s17, 6   ;;  %s2028_s16 = smov %s2030_s18 }
 0x154   :  { %13 = sbr.rel (!%p11_p5) target bundleno = 2 (0x2), region = 75 }

// kernel: discriminator64_forward.11
= control target key start
LH: loop header
LB: loop body
LE: loop exit
PB: predicated region body
PF: predicated region fallthrough
CT: control target
= control target key end

     0   :  { %s1530_s1 = inlined_call_operand.vmem [shape: bf16[128,128], index: 1, kind: input, shape index: {}]   ;;  %s1531_s0 = inlined_call_operand.vmem [shape: bf16[512,128], index: 0, kind: input, shape index: {}]   ;;  %s1532_s2 = inlined_call_operand.vmem [shape: f32[1,128], index: 2, kind: input, shape index: {}]   ;;  %s1533_s3 = inlined_call_operand.vmem [shape: f32[1,128], index: 3, kind: input, shape index: {}]   ;;  %s1534_s4 = inlined_call_operand.vmem [shape: f32[512,128], index: 4, kind: output, shape index: {}]  }
   0x1   :  { %v1015_v0 = vld [vmem:[%s1530_s1] sm:$0xff]   ;;  %v1016_v1 = vld [vmem:[%s1530_s1 + $0x8] sm:$0xff]   ;;  %v1017_v2 = vld [vmem:[%s1530_s1 + $0x10] sm:$0xff]  }
   0x2   :  { %919 = vmatprep.subr.bf16.mxu0 %v1015_v0  ;;  %999 = vmatprep.subr.bf16.mxu1 %v1015_v0  ;;  %v1018_v3 = vld [vmem:[%s1530_s1 + $0x18] sm:$0xff]   ;;  %v1023_v4 = vld [vmem:[%s1531_s0] sm:$0xff]   ;;  %v1020_v7 = vld [vmem:[%s1530_s1 + $0x28] sm:$0xff]  }
   0x3   :  { %920 = vmatpush3.bf16.msra.mxu0 %v1015_v0  ;;  %1007 = vmatpush3.bf16.msra.mxu1 %v1015_v0  ;;  %v1024_v5 = vld [vmem:[%s1531_s0 + $0x80] sm:$0xff]   ;;  %v1021_v8 = vld [vmem:[%s1530_s1 + $0x30] sm:$0xff]   ;;  %v1022_v9 = vld [vmem:[%s1530_s1 + $0x38] sm:$0xff]  }
   0x4   :  { %921 = vmatprep.subr.bf16.mxu0 %v1016_v1  ;;  %1000 = vmatprep.subr.bf16.mxu1 %v1016_v1  ;;  %v1019_v6 = vld [vmem:[%s1530_s1 + $0x20] sm:$0xff]   ;;  %v1025_v10 = vld [vmem:[%s1531_s0 + $0x8] sm:$0xff]   ;;  %v1027_v12 = vld [vmem:[%s1531_s0 + $0x10] sm:$0xff]  }
   0x5   :  { %935 = vmatprep.mubr.bf16.mxu0 %v1023_v4  ;;  %967 = vmatprep.mubr.bf16.mxu1 %v1024_v5  ;;  %v1026_v11 = vld [vmem:[%s1531_s0 + $0x88] sm:$0xff]   ;;  %v1028_v13 = vld [vmem:[%s1531_s0 + $0x90] sm:$0xff]   ;;  %v1029_v14 = vld [vmem:[%s1531_s0 + $0x18] sm:$0xff]  }
   0x6   :  { %v1030_v15 = vld [vmem:[%s1531_s0 + $0x98] sm:$0xff]   ;;  %v1031_v16 = vld [vmem:[%s1531_s0 + $0x20] sm:$0xff]   ;;  %v1033_v18 = vld [vmem:[%s1531_s0 + $0x28] sm:$0xff]  }
   0x7   :  { %922 = vmatpush3.bf16.msra.mxu0 %v1016_v1  ;;  %1008 = vmatpush3.bf16.msra.mxu1 %v1016_v1  ;;  %v1032_v17 = vld [vmem:[%s1531_s0 + $0xa0] sm:$0xff]   ;;  %v1034_v19 = vld [vmem:[%s1531_s0 + $0xa8] sm:$0xff]   ;;  %v1035_v20 = vld [vmem:[%s1531_s0 + $0x30] sm:$0xff]  }
   0x8   :  { %923 = vmatprep.subr.bf16.mxu0 %v1017_v2  ;;  %1001 = vmatprep.subr.bf16.mxu1 %v1017_v2  ;;  %v1036_v21 = vld [vmem:[%s1531_s0 + $0xb0] sm:$0xff]   ;;  %v1037_v22 = vld [vmem:[%s1531_s0 + $0x38] sm:$0xff]   ;;  %v1039_v24 = vld [vmem:[%s1531_s0 + $0x40] sm:$0xff]  }
   0x9   :  { %v1038_v23 = vld [vmem:[%s1531_s0 + $0xb8] sm:$0xff]   ;;  %v1040_v25 = vld [vmem:[%s1531_s0 + $0xc0] sm:$0xff]   ;;  %v1041_v26 = vld [vmem:[%s1531_s0 + $0x48] sm:$0xff]  }
   0xa   :  { %v1042_v27 = vld [vmem:[%s1531_s0 + $0xc8] sm:$0xff]   ;;  %v1043_v28 = vld [vmem:[%s1531_s0 + $0x50] sm:$0xff]   ;;  %v1045_v30 = vld [vmem:[%s1531_s0 + $0x58] sm:$0xff]  }
   0xb   :  { %924 = vmatpush3.bf16.msra.mxu0 %v1017_v2  ;;  %1009 = vmatpush3.bf16.msra.mxu1 %v1017_v2  ;;  %v1044_v29 = vld [vmem:[%s1531_s0 + $0xd0] sm:$0xff]   ;;  %v1046_v31 = vld [vmem:[%s1531_s0 + $0xd8] sm:$0xff]   ;;  %v1047_v32 = vld [vmem:[%s1531_s0 + $0x60] sm:$0xff]  }
   0xc   :  { %925 = vmatprep.subr.bf16.mxu0 %v1018_v3  ;;  %1002 = vmatprep.subr.bf16.mxu1 %v1018_v3  ;;  %v1048_v33 = vld [vmem:[%s1531_s0 + $0xe0] sm:$0xff]   ;;  %v1049_v34 = vld [vmem:[%s1531_s0 + $0x68] sm:$0xff]   ;;  %v1051_v36 = vld [vmem:[%s1531_s0 + $0x70] sm:$0xff]  }
   0xd   :  { %v1050_v35 = vld [vmem:[%s1531_s0 + $0xe8] sm:$0xff]   ;;  %v1052_v37 = vld [vmem:[%s1531_s0 + $0xf0] sm:$0xff]   ;;  %v1053_v38 = vld [vmem:[%s1531_s0 + $0x78] sm:$0xff]  }
   0xe   :  { %v1054_v39 = vld [vmem:[%s1531_s0 + $0xf8] sm:$0xff]   ;;  %v1203_v40 = vld [vmem:[%s1532_s2] ss:$0 sm:$0xff] }
   0xf   :  { %926 = vmatpush3.bf16.msra.mxu0 %v1018_v3  ;;  %1010 = vmatpush3.bf16.msra.mxu1 %v1018_v3  ;;  %v1208_v42 = vld [vmem:[%s1533_s3] ss:$0 sm:$0xff] }
  0x10   :  { %927 = vmatprep.subr.bf16.mxu0 %v1019_v6  ;;  %1003 = vmatprep.subr.bf16.mxu1 %v1019_v6 }
  0x13   :  { %928 = vmatpush3.bf16.msra.mxu0 %v1019_v6  ;;  %1011 = vmatpush3.bf16.msra.mxu1 %v1019_v6 }
  0x14   :  { %929 = vmatprep.subr.bf16.mxu0 %v1020_v7  ;;  %1004 = vmatprep.subr.bf16.mxu1 %v1020_v7 }
  0x17   :  { %930 = vmatpush3.bf16.msra.mxu0 %v1020_v7  ;;  %1012 = vmatpush3.bf16.msra.mxu1 %v1020_v7 }
  0x18   :  { %931 = vmatprep.subr.bf16.mxu0 %v1021_v8  ;;  %1005 = vmatprep.subr.bf16.mxu1 %v1021_v8 }
  0x1b   :  { %932 = vmatpush3.bf16.msra.mxu0 %v1021_v8  ;;  %1013 = vmatpush3.bf16.msra.mxu1 %v1021_v8 }
  0x1c   :  { %933 = vmatprep.subr.bf16.mxu0 %v1022_v9  ;;  %1006 = vmatprep.subr.bf16.mxu1 %v1022_v9 }
  0x1f   :  { %934 = vmatpush3.bf16.msra.mxu0 %v1022_v9  ;;  %1014 = vmatpush3.bf16.msra.mxu1 %v1022_v9 }
  0x22   :  { %936 = vmatmul.mubr.bf16.vlgmr.msra.gmra.mrb[0].mxu0 %v1025_v10  ;;  %968 = vmatmul.mubr.bf16.vlgmr.msra.gmra.mrb[0].mxu1 %v1026_v11 }
  0x23   :  { %939 = vmatprep.mubr.bf16.mxu0 %v1027_v12  ;;  %971 = vmatprep.mubr.bf16.mxu1 %v1028_v13 }
  0x2a   :  { %940 = vmatmul.mubr.bf16.gmra.mrb[4].mxu0 %v1029_v14  ;;  %972 = vmatmul.mubr.bf16.gmra.mrb[4].mxu1 %v1030_v15 }
  0x2b   :  { %943 = vmatprep.mubr.bf16.mxu0 %v1031_v16  ;;  %975 = vmatprep.mubr.bf16.mxu1 %v1032_v17 }
  0x32   :  { %944 = vmatmul.mubr.bf16.gmra.mrb[8].mxu0 %v1033_v18  ;;  %976 = vmatmul.mubr.bf16.gmra.mrb[8].mxu1 %v1034_v19 }
  0x33   :  { %947 = vmatprep.mubr.bf16.mxu0 %v1035_v20  ;;  %979 = vmatprep.mubr.bf16.mxu1 %v1036_v21 }
  0x3a   :  { %948 = vmatmul.mubr.bf16.gmra.mrb[12].mxu0 %v1037_v22  ;;  %980 = vmatmul.mubr.bf16.gmra.mrb[12].mxu1 %v1038_v23 }
  0x3b   :  { %951 = vmatprep.mubr.bf16.mxu0 %v1039_v24  ;;  %983 = vmatprep.mubr.bf16.mxu1 %v1040_v25 }
  0x42   :  { %952 = vmatmul.mubr.bf16.gmra.mrb[16].mxu0 %v1041_v26  ;;  %984 = vmatmul.mubr.bf16.gmra.mrb[16].mxu1 %v1042_v27 }
  0x43   :  { %955 = vmatprep.mubr.bf16.mxu0 %v1043_v28  ;;  %987 = vmatprep.mubr.bf16.mxu1 %v1044_v29 }
  0x4a   :  { %956 = vmatmul.mubr.bf16.gmra.mrb[20].mxu0 %v1045_v30  ;;  %988 = vmatmul.mubr.bf16.gmra.mrb[20].mxu1 %v1046_v31 }
  0x4b   :  { %959 = vmatprep.mubr.bf16.mxu0 %v1047_v32  ;;  %991 = vmatprep.mubr.bf16.mxu1 %v1048_v33 }
  0x52   :  { %960 = vmatmul.mubr.bf16.gmra.mrb[24].mxu0 %v1049_v34  ;;  %992 = vmatmul.mubr.bf16.gmra.mrb[24].mxu1 %v1050_v35 }
  0x53   :  { %963 = vmatprep.mubr.bf16.mxu0 %v1051_v36  ;;  %995 = vmatprep.mubr.bf16.mxu1 %v1052_v37 }
  0x5a   :  { %964 = vmatmul.mubr.bf16.gmra.mrb[28].mxu0 %v1053_v38  ;;  %996 = vmatmul.mubr.bf16.gmra.mrb[28].mxu1 %v1054_v39 }
  0xf5   :  { %v937_v41 = vpop.f32.mrb[0].mxu0  ;;  %v969_v43 = vpop.f32.mrb[0].mxu1 }
  0xf6   :  { %v636_v44 = vmul.f32 %v937_v41, %v1203_v40  ;;  %v668_v45 = vmul.f32 %v969_v43, %v1203_v40  ;;  %v372_v46 = vpop.f32.mrb[1].mxu0  ;;  %v500_v47 = vpop.f32.mrb[1].mxu1 }
  0xf7   :  { %v634_v48 = vmul.f32 %v1203_v40, %v372_v46  ;;  %v666_v49 = vmul.f32 %v1203_v40, %v500_v47  ;;  %v938_v50 = vpop.f32.mrb[2].mxu0  ;;  %v970_v51 = vpop.f32.mrb[2].mxu1 }
  0xf8   :  { %v707_v52 = vadd.f32 %v1208_v42, %v636_v44  ;;  %v739_v53 = vadd.f32 %v1208_v42, %v668_v45  ;;  %v637_v54 = vmul.f32 %v938_v50, %v1203_v40  ;;  %v669_v55 = vmul.f32 %v970_v51, %v1203_v40  ;;  %v375_v56 = vpop.f32.mrb[3].mxu0  ;;  %v503_v57 = vpop.f32.mrb[3].mxu1 }
  0xf9   :  { %v705_v58 = vadd.f32 %v1208_v42, %v634_v48  ;;  %v737_v59 = vadd.f32 %v1208_v42, %v666_v49  ;;  %v635_v60 = vmul.f32 %v1203_v40, %v375_v56  ;;  %v667_v61 = vmul.f32 %v1203_v40, %v503_v57 }
  0xfa   :  { %771 = vst [vmem:[%s1534_s4 + $0x10] sm:$0xff] %v707_v52  ;;  %803 = vst [vmem:[%s1534_s4 + $0x110] sm:$0xff] %v739_v53  ;;  %v708_v62 = vadd.f32 %v1208_v42, %v637_v54  ;;  %v740_v63 = vadd.f32 %v1208_v42, %v669_v55 }
  0xfb   :  { %769 = vst [vmem:[%s1534_s4] sm:$0xff] %v705_v58  ;;  %801 = vst [vmem:[%s1534_s4 + $0x100] sm:$0xff] %v737_v59  ;;  %v706_v0 = vadd.f32 %v1208_v42, %v635_v60  ;;  %v738_v1 = vadd.f32 %v1208_v42, %v667_v61 }
  0xfc   :  { %772 = vst [vmem:[%s1534_s4 + $0x18] sm:$0xff] %v708_v62  ;;  %804 = vst [vmem:[%s1534_s4 + $0x118] sm:$0xff] %v740_v63 }
  0xfd   :  { %770 = vst [vmem:[%s1534_s4 + $0x8] sm:$0xff] %v706_v0  ;;  %802 = vst [vmem:[%s1534_s4 + $0x108] sm:$0xff] %v738_v1  ;;  %v941_v2 = vpop.f32.mrb[4].mxu0  ;;  %v973_v3 = vpop.f32.mrb[4].mxu1 }
  0xfe   :  { %v640_v4 = vmul.f32 %v941_v2, %v1203_v40  ;;  %v672_v5 = vmul.f32 %v973_v3, %v1203_v40  ;;  %v388_v6 = vpop.f32.mrb[5].mxu0  ;;  %v516_v7 = vpop.f32.mrb[5].mxu1 }
  0xff   :  { %v638_v8 = vmul.f32 %v1203_v40, %v388_v6  ;;  %v670_v9 = vmul.f32 %v1203_v40, %v516_v7  ;;  %v942_v10 = vpop.f32.mrb[6].mxu0  ;;  %v974_v11 = vpop.f32.mrb[6].mxu1 }
 0x100   :  { %v711_v12 = vadd.f32 %v1208_v42, %v640_v4  ;;  %v743_v13 = vadd.f32 %v1208_v42, %v672_v5  ;;  %v641_v14 = vmul.f32 %v942_v10, %v1203_v40  ;;  %v673_v15 = vmul.f32 %v974_v11, %v1203_v40  ;;  %v391_v16 = vpop.f32.mrb[7].mxu0  ;;  %v519_v17 = vpop.f32.mrb[7].mxu1 }
 0x101   :  { %v709_v18 = vadd.f32 %v1208_v42, %v638_v8  ;;  %v741_v19 = vadd.f32 %v1208_v42, %v670_v9  ;;  %v639_v20 = vmul.f32 %v1203_v40, %v391_v16  ;;  %v671_v21 = vmul.f32 %v1203_v40, %v519_v17 }
 0x102   :  { %775 = vst [vmem:[%s1534_s4 + $0x30] sm:$0xff] %v711_v12  ;;  %807 = vst [vmem:[%s1534_s4 + $0x130] sm:$0xff] %v743_v13  ;;  %v712_v22 = vadd.f32 %v1208_v42, %v641_v14  ;;  %v744_v23 = vadd.f32 %v1208_v42, %v673_v15 }
 0x103   :  { %773 = vst [vmem:[%s1534_s4 + $0x20] sm:$0xff] %v709_v18  ;;  %805 = vst [vmem:[%s1534_s4 + $0x120] sm:$0xff] %v741_v19  ;;  %v710_v24 = vadd.f32 %v1208_v42, %v639_v20  ;;  %v742_v25 = vadd.f32 %v1208_v42, %v671_v21 }
 0x104   :  { %776 = vst [vmem:[%s1534_s4 + $0x38] sm:$0xff] %v712_v22  ;;  %808 = vst [vmem:[%s1534_s4 + $0x138] sm:$0xff] %v744_v23 }
 0x105   :  { %774 = vst [vmem:[%s1534_s4 + $0x28] sm:$0xff] %v710_v24  ;;  %806 = vst [vmem:[%s1534_s4 + $0x128] sm:$0xff] %v742_v25  ;;  %v945_v26 = vpop.f32.mrb[8].mxu0  ;;  %v977_v27 = vpop.f32.mrb[8].mxu1 }
 0x106   :  { %v644_v28 = vmul.f32 %v945_v26, %v1203_v40  ;;  %v676_v29 = vmul.f32 %v977_v27, %v1203_v40  ;;  %v404_v30 = vpop.f32.mrb[9].mxu0  ;;  %v532_v31 = vpop.f32.mrb[9].mxu1 }
 0x107   :  { %v642_v32 = vmul.f32 %v1203_v40, %v404_v30  ;;  %v674_v33 = vmul.f32 %v1203_v40, %v532_v31  ;;  %v946_v34 = vpop.f32.mrb[10].mxu0  ;;  %v978_v35 = vpop.f32.mrb[10].mxu1 }
 0x108   :  { %v715_v36 = vadd.f32 %v1208_v42, %v644_v28  ;;  %v747_v37 = vadd.f32 %v1208_v42, %v676_v29  ;;  %v645_v38 = vmul.f32 %v946_v34, %v1203_v40  ;;  %v677_v39 = vmul.f32 %v978_v35, %v1203_v40  ;;  %v407_v41 = vpop.f32.mrb[11].mxu0  ;;  %v535_v43 = vpop.f32.mrb[11].mxu1 }
 0x109   :  { %v713_v44 = vadd.f32 %v1208_v42, %v642_v32  ;;  %v745_v45 = vadd.f32 %v1208_v42, %v674_v33  ;;  %v643_v46 = vmul.f32 %v1203_v40, %v407_v41  ;;  %v675_v47 = vmul.f32 %v1203_v40, %v535_v43 }
 0x10a   :  { %779 = vst [vmem:[%s1534_s4 + $0x50] sm:$0xff] %v715_v36  ;;  %811 = vst [vmem:[%s1534_s4 + $0x150] sm:$0xff] %v747_v37  ;;  %v716_v48 = vadd.f32 %v1208_v42, %v645_v38  ;;  %v748_v49 = vadd.f32 %v1208_v42, %v677_v39 }
 0x10b   :  { %777 = vst [vmem:[%s1534_s4 + $0x40] sm:$0xff] %v713_v44  ;;  %809 = vst [vmem:[%s1534_s4 + $0x140] sm:$0xff] %v745_v45  ;;  %v714_v50 = vadd.f32 %v1208_v42, %v643_v46  ;;  %v746_v51 = vadd.f32 %v1208_v42, %v675_v47 }
 0x10c   :  { %780 = vst [vmem:[%s1534_s4 + $0x58] sm:$0xff] %v716_v48  ;;  %812 = vst [vmem:[%s1534_s4 + $0x158] sm:$0xff] %v748_v49 }
 0x10d   :  { %778 = vst [vmem:[%s1534_s4 + $0x48] sm:$0xff] %v714_v50  ;;  %810 = vst [vmem:[%s1534_s4 + $0x148] sm:$0xff] %v746_v51  ;;  %v949_v52 = vpop.f32.mrb[12].mxu0  ;;  %v981_v53 = vpop.f32.mrb[12].mxu1 }
 0x10e   :  { %v648_v54 = vmul.f32 %v949_v52, %v1203_v40  ;;  %v680_v55 = vmul.f32 %v981_v53, %v1203_v40  ;;  %v420_v56 = vpop.f32.mrb[13].mxu0  ;;  %v548_v57 = vpop.f32.mrb[13].mxu1 }
 0x10f   :  { %v646_v58 = vmul.f32 %v1203_v40, %v420_v56  ;;  %v678_v59 = vmul.f32 %v1203_v40, %v548_v57  ;;  %v950_v60 = vpop.f32.mrb[14].mxu0  ;;  %v982_v61 = vpop.f32.mrb[14].mxu1 }
 0x110   :  { %v719_v62 = vadd.f32 %v1208_v42, %v648_v54  ;;  %v751_v63 = vadd.f32 %v1208_v42, %v680_v55  ;;  %v649_v0 = vmul.f32 %v950_v60, %v1203_v40  ;;  %v681_v1 = vmul.f32 %v982_v61, %v1203_v40  ;;  %v423_v2 = vpop.f32.mrb[15].mxu0  ;;  %v551_v3 = vpop.f32.mrb[15].mxu1 }
 0x111   :  { %v717_v4 = vadd.f32 %v1208_v42, %v646_v58  ;;  %v749_v5 = vadd.f32 %v1208_v42, %v678_v59  ;;  %v647_v6 = vmul.f32 %v1203_v40, %v423_v2  ;;  %v679_v7 = vmul.f32 %v1203_v40, %v551_v3 }
 0x112   :  { %783 = vst [vmem:[%s1534_s4 + $0x70] sm:$0xff] %v719_v62  ;;  %815 = vst [vmem:[%s1534_s4 + $0x170] sm:$0xff] %v751_v63  ;;  %v720_v8 = vadd.f32 %v1208_v42, %v649_v0  ;;  %v752_v9 = vadd.f32 %v1208_v42, %v681_v1 }
 0x113   :  { %781 = vst [vmem:[%s1534_s4 + $0x60] sm:$0xff] %v717_v4  ;;  %813 = vst [vmem:[%s1534_s4 + $0x160] sm:$0xff] %v749_v5  ;;  %v718_v10 = vadd.f32 %v1208_v42, %v647_v6  ;;  %v750_v11 = vadd.f32 %v1208_v42, %v679_v7 }
 0x114   :  { %784 = vst [vmem:[%s1534_s4 + $0x78] sm:$0xff] %v720_v8  ;;  %816 = vst [vmem:[%s1534_s4 + $0x178] sm:$0xff] %v752_v9 }
 0x115   :  { %782 = vst [vmem:[%s1534_s4 + $0x68] sm:$0xff] %v718_v10  ;;  %814 = vst [vmem:[%s1534_s4 + $0x168] sm:$0xff] %v750_v11  ;;  %v953_v12 = vpop.f32.mrb[16].mxu0  ;;  %v985_v13 = vpop.f32.mrb[16].mxu1 }
 0x116   :  { %v652_v14 = vmul.f32 %v953_v12, %v1203_v40  ;;  %v684_v15 = vmul.f32 %v985_v13, %v1203_v40  ;;  %v436_v16 = vpop.f32.mrb[17].mxu0  ;;  %v564_v17 = vpop.f32.mrb[17].mxu1 }
 0x117   :  { %v650_v18 = vmul.f32 %v1203_v40, %v436_v16  ;;  %v682_v19 = vmul.f32 %v1203_v40, %v564_v17  ;;  %v954_v20 = vpop.f32.mrb[18].mxu0  ;;  %v986_v21 = vpop.f32.mrb[18].mxu1 }
 0x118   :  { %v723_v22 = vadd.f32 %v1208_v42, %v652_v14  ;;  %v755_v23 = vadd.f32 %v1208_v42, %v684_v15  ;;  %v653_v24 = vmul.f32 %v954_v20, %v1203_v40  ;;  %v685_v25 = vmul.f32 %v986_v21, %v1203_v40  ;;  %v439_v26 = vpop.f32.mrb[19].mxu0  ;;  %v567_v27 = vpop.f32.mrb[19].mxu1 }
 0x119   :  { %v721_v28 = vadd.f32 %v1208_v42, %v650_v18  ;;  %v753_v29 = vadd.f32 %v1208_v42, %v682_v19  ;;  %v651_v30 = vmul.f32 %v1203_v40, %v439_v26  ;;  %v683_v31 = vmul.f32 %v1203_v40, %v567_v27 }
 0x11a   :  { %787 = vst [vmem:[%s1534_s4 + $0x90] sm:$0xff] %v723_v22  ;;  %819 = vst [vmem:[%s1534_s4 + $0x190] sm:$0xff] %v755_v23  ;;  %v724_v32 = vadd.f32 %v1208_v42, %v653_v24  ;;  %v756_v33 = vadd.f32 %v1208_v42, %v685_v25 }
 0x11b   :  { %785 = vst [vmem:[%s1534_s4 + $0x80] sm:$0xff] %v721_v28  ;;  %817 = vst [vmem:[%s1534_s4 + $0x180] sm:$0xff] %v753_v29  ;;  %v722_v34 = vadd.f32 %v1208_v42, %v651_v30  ;;  %v754_v35 = vadd.f32 %v1208_v42, %v683_v31 }
 0x11c   :  { %788 = vst [vmem:[%s1534_s4 + $0x98] sm:$0xff] %v724_v32  ;;  %820 = vst [vmem:[%s1534_s4 + $0x198] sm:$0xff] %v756_v33 }
 0x11d   :  { %786 = vst [vmem:[%s1534_s4 + $0x88] sm:$0xff] %v722_v34  ;;  %818 = vst [vmem:[%s1534_s4 + $0x188] sm:$0xff] %v754_v35  ;;  %v957_v36 = vpop.f32.mrb[20].mxu0  ;;  %v989_v37 = vpop.f32.mrb[20].mxu1 }
 0x11e   :  { %v656_v38 = vmul.f32 %v957_v36, %v1203_v40  ;;  %v688_v39 = vmul.f32 %v989_v37, %v1203_v40  ;;  %v452_v41 = vpop.f32.mrb[21].mxu0  ;;  %v580_v43 = vpop.f32.mrb[21].mxu1 }
 0x11f   :  { %v654_v44 = vmul.f32 %v1203_v40, %v452_v41  ;;  %v686_v45 = vmul.f32 %v1203_v40, %v580_v43  ;;  %v958_v46 = vpop.f32.mrb[22].mxu0  ;;  %v990_v47 = vpop.f32.mrb[22].mxu1 }
 0x120   :  { %v727_v48 = vadd.f32 %v1208_v42, %v656_v38  ;;  %v759_v49 = vadd.f32 %v1208_v42, %v688_v39  ;;  %v657_v50 = vmul.f32 %v958_v46, %v1203_v40  ;;  %v689_v51 = vmul.f32 %v990_v47, %v1203_v40  ;;  %v455_v52 = vpop.f32.mrb[23].mxu0  ;;  %v583_v53 = vpop.f32.mrb[23].mxu1 }
 0x121   :  { %v725_v54 = vadd.f32 %v1208_v42, %v654_v44  ;;  %v757_v55 = vadd.f32 %v1208_v42, %v686_v45  ;;  %v655_v56 = vmul.f32 %v1203_v40, %v455_v52  ;;  %v687_v57 = vmul.f32 %v1203_v40, %v583_v53 }
 0x122   :  { %791 = vst [vmem:[%s1534_s4 + $0xb0] sm:$0xff] %v727_v48  ;;  %823 = vst [vmem:[%s1534_s4 + $0x1b0] sm:$0xff] %v759_v49  ;;  %v728_v58 = vadd.f32 %v1208_v42, %v657_v50  ;;  %v760_v59 = vadd.f32 %v1208_v42, %v689_v51 }
 0x123   :  { %789 = vst [vmem:[%s1534_s4 + $0xa0] sm:$0xff] %v725_v54  ;;  %821 = vst [vmem:[%s1534_s4 + $0x1a0] sm:$0xff] %v757_v55  ;;  %v726_v60 = vadd.f32 %v1208_v42, %v655_v56  ;;  %v758_v61 = vadd.f32 %v1208_v42, %v687_v57 }
 0x124   :  { %792 = vst [vmem:[%s1534_s4 + $0xb8] sm:$0xff] %v728_v58  ;;  %824 = vst [vmem:[%s1534_s4 + $0x1b8] sm:$0xff] %v760_v59 }
 0x125   :  { %790 = vst [vmem:[%s1534_s4 + $0xa8] sm:$0xff] %v726_v60  ;;  %822 = vst [vmem:[%s1534_s4 + $0x1a8] sm:$0xff] %v758_v61  ;;  %v961_v62 = vpop.f32.mrb[24].mxu0  ;;  %v993_v63 = vpop.f32.mrb[24].mxu1 }
 0x126   :  { %v660_v0 = vmul.f32 %v961_v62, %v1203_v40  ;;  %v692_v1 = vmul.f32 %v993_v63, %v1203_v40  ;;  %v468_v2 = vpop.f32.mrb[25].mxu0  ;;  %v596_v3 = vpop.f32.mrb[25].mxu1 }
 0x127   :  { %v658_v4 = vmul.f32 %v1203_v40, %v468_v2  ;;  %v690_v5 = vmul.f32 %v1203_v40, %v596_v3  ;;  %v962_v6 = vpop.f32.mrb[26].mxu0  ;;  %v994_v7 = vpop.f32.mrb[26].mxu1 }
 0x128   :  { %v731_v8 = vadd.f32 %v1208_v42, %v660_v0  ;;  %v763_v9 = vadd.f32 %v1208_v42, %v692_v1  ;;  %v661_v10 = vmul.f32 %v962_v6, %v1203_v40  ;;  %v693_v11 = vmul.f32 %v994_v7, %v1203_v40  ;;  %v471_v12 = vpop.f32.mrb[27].mxu0  ;;  %v599_v13 = vpop.f32.mrb[27].mxu1 }
 0x129   :  { %v729_v14 = vadd.f32 %v1208_v42, %v658_v4  ;;  %v761_v15 = vadd.f32 %v1208_v42, %v690_v5  ;;  %v659_v16 = vmul.f32 %v1203_v40, %v471_v12  ;;  %v691_v17 = vmul.f32 %v1203_v40, %v599_v13 }
 0x12a   :  { %795 = vst [vmem:[%s1534_s4 + $0xd0] sm:$0xff] %v731_v8  ;;  %827 = vst [vmem:[%s1534_s4 + $0x1d0] sm:$0xff] %v763_v9  ;;  %v732_v18 = vadd.f32 %v1208_v42, %v661_v10  ;;  %v764_v19 = vadd.f32 %v1208_v42, %v693_v11 }
 0x12b   :  { %793 = vst [vmem:[%s1534_s4 + $0xc0] sm:$0xff] %v729_v14  ;;  %825 = vst [vmem:[%s1534_s4 + $0x1c0] sm:$0xff] %v761_v15  ;;  %v730_v20 = vadd.f32 %v1208_v42, %v659_v16  ;;  %v762_v21 = vadd.f32 %v1208_v42, %v691_v17 }
 0x12c   :  { %796 = vst [vmem:[%s1534_s4 + $0xd8] sm:$0xff] %v732_v18  ;;  %828 = vst [vmem:[%s1534_s4 + $0x1d8] sm:$0xff] %v764_v19 }
 0x12d   :  { %794 = vst [vmem:[%s1534_s4 + $0xc8] sm:$0xff] %v730_v20  ;;  %826 = vst [vmem:[%s1534_s4 + $0x1c8] sm:$0xff] %v762_v21  ;;  %v965_v22 = vpop.f32.mrb[28].mxu0  ;;  %v997_v23 = vpop.f32.mrb[28].mxu1 }
 0x12e   :  { %v664_v24 = vmul.f32 %v965_v22, %v1203_v40  ;;  %v696_v25 = vmul.f32 %v997_v23, %v1203_v40  ;;  %v484_v26 = vpop.f32.mrb[29].mxu0  ;;  %v612_v27 = vpop.f32.mrb[29].mxu1 }
 0x12f   :  { %v662_v28 = vmul.f32 %v1203_v40, %v484_v26  ;;  %v694_v29 = vmul.f32 %v1203_v40, %v612_v27  ;;  %v966_v30 = vpop.f32.mrb[30].mxu0  ;;  %v998_v31 = vpop.f32.mrb[30].mxu1 }
 0x130   :  { %v735_v32 = vadd.f32 %v1208_v42, %v664_v24  ;;  %v767_v33 = vadd.f32 %v1208_v42, %v696_v25  ;;  %v665_v34 = vmul.f32 %v966_v30, %v1203_v40  ;;  %v697_v35 = vmul.f32 %v998_v31, %v1203_v40  ;;  %v487_v36 = vpop.f32.mrb[31].mxu0  ;;  %v615_v37 = vpop.f32.mrb[31].mxu1 }
 0x131   :  { %v733_v38 = vadd.f32 %v1208_v42, %v662_v28  ;;  %v765_v39 = vadd.f32 %v1208_v42, %v694_v29  ;;  %v663_v41 = vmul.f32 %v1203_v40, %v487_v36  ;;  %v695_v43 = vmul.f32 %v1203_v40, %v615_v37 }
 0x132   :  { %799 = vst [vmem:[%s1534_s4 + $0xf0] sm:$0xff] %v735_v32  ;;  %831 = vst [vmem:[%s1534_s4 + $0x1f0] sm:$0xff] %v767_v33  ;;  %v736_v44 = vadd.f32 %v1208_v42, %v665_v34  ;;  %v768_v45 = vadd.f32 %v1208_v42, %v697_v35 }
 0x133   :  { %797 = vst [vmem:[%s1534_s4 + $0xe0] sm:$0xff] %v733_v38  ;;  %829 = vst [vmem:[%s1534_s4 + $0x1e0] sm:$0xff] %v765_v39  ;;  %v734_v40 = vadd.f32 %v1208_v42, %v663_v41  ;;  %v766_v46 = vadd.f32 %v1208_v42, %v695_v43 }
 0x134   :  { %800 = vst [vmem:[%s1534_s4 + $0xf8] sm:$0xff] %v736_v44  ;;  %832 = vst [vmem:[%s1534_s4 + $0x1f8] sm:$0xff] %v768_v45 }
 0x135   :  { %798 = vst [vmem:[%s1534_s4 + $0xe8] sm:$0xff] %v734_v40  ;;  %830 = vst [vmem:[%s1534_s4 + $0x1e8] sm:$0xff] %v766_v46 }

// kernel: discriminator64_forward.12
= control target key start
LH: loop header
LB: loop body
LE: loop exit
PB: predicated region body
PF: predicated region fallthrough
CT: control target
= control target key end

     0   :  { %s1030_s0 = inlined_call_operand.vmem [shape: f32[512,128], index: 0, kind: input, shape index: {}]   ;;  %s1031_s1 = inlined_call_operand.vmem [shape: f32[1,128], index: 1, kind: input, shape index: {}]   ;;  %s1032_s2 = inlined_call_operand.vmem [shape: f32[1,128], index: 2, kind: input, shape index: {}]   ;;  %s1033_s3 = inlined_call_operand.vmem [shape: f32[512,128], index: 3, kind: output, shape index: {}]  }
   0x1   :  { %v14_v0 = vld [vmem:[%s1030_s0] sm:$0xff]  ;;  %v15_v4 = vld [vmem:[%s1030_s0 + $0x8] sm:$0xff]  ;;  %v16_v5 = vld [vmem:[%s1030_s0 + $0x10] sm:$0xff] }
   0x2   :  { %v508_v1 = vld [vmem:[%s1031_s1] ss:$0 sm:$0xff]  ;;  %v17_v6 = vld [vmem:[%s1030_s0 + $0x18] sm:$0xff]  ;;  %v19_v11 = vld [vmem:[%s1030_s0 + $0x28] sm:$0xff] }
   0x3   :  { %v513_v2 = vld [vmem:[%s1032_s2] ss:$0 sm:$0xff]  ;;  %v85_v3 = vmul.f32 %v508_v1, %v14_v0  ;;  %v86_v7 = vmul.f32 %v508_v1, %v15_v4  ;;  %v87_v8 = vmul.f32 %v508_v1, %v16_v5  ;;  %v88_v9 = vmul.f32 %v508_v1, %v17_v6  ;;  %v20_v12 = vld [vmem:[%s1030_s0 + $0x30] sm:$0xff]  ;;  %v21_v17 = vld [vmem:[%s1030_s0 + $0x38] sm:$0xff] }
   0x4   :  { %v18_v10 = vld [vmem:[%s1030_s0 + $0x20] sm:$0xff]  ;;  %v90_v15 = vmul.f32 %v508_v1, %v19_v11  ;;  %v91_v16 = vmul.f32 %v508_v1, %v20_v12  ;;  %v92_v21 = vmul.f32 %v508_v1, %v21_v17  ;;  %v23_v30 = vld [vmem:[%s1030_s0 + $0x48] sm:$0xff]  ;;  %v24_v31 = vld [vmem:[%s1030_s0 + $0x50] sm:$0xff] }
   0x5   :  { %v156_v13 = vadd.f32 %v513_v2, %v85_v3  ;;  %v89_v14 = vmul.f32 %v508_v1, %v18_v10  ;;  %v157_v18 = vadd.f32 %v513_v2, %v86_v7  ;;  %v158_v19 = vadd.f32 %v513_v2, %v87_v8  ;;  %v22_v25 = vld [vmem:[%s1030_s0 + $0x40] sm:$0xff]  ;;  %v25_v43 = vld [vmem:[%s1030_s0 + $0x58] sm:$0xff]  ;;  %v27_v45 = vld [vmem:[%s1030_s0 + $0x68] sm:$0xff] }
   0x6   :  { %v159_v20 = vadd.f32 %v513_v2, %v88_v9  ;;  %v161_v24 = vadd.f32 %v513_v2, %v90_v15  ;;  %v162_v37 = vadd.f32 %v513_v2, %v91_v16  ;;  %v163_v38 = vadd.f32 %v513_v2, %v92_v21  ;;  %v26_v44 = vld [vmem:[%s1030_s0 + $0x60] sm:$0xff]  ;;  %v28_v56 = vld [vmem:[%s1030_s0 + $0x70] sm:$0xff]  ;;  %v29_v4 = vld [vmem:[%s1030_s0 + $0x78] sm:$0xff] }
   0x7   :  { %vm220_vm0 = vcmp.gt.f32.partialorder %v156_v13, 0.0  ;;  %v284_v22 = vmul.f32 0.2, %v156_v13  ;;  %v160_v23 = vadd.f32 %v513_v2, %v89_v14  ;;  %vm221_vm1 = vcmp.gt.f32.partialorder %v157_v18, 0.0  ;;  %v30_v5 = vld [vmem:[%s1030_s0 + $0x80] sm:$0xff]  ;;  %v31_v9 = vld [vmem:[%s1030_s0 + $0x88] sm:$0xff] }
   0x8   :  { %v285_v26 = vmul.f32 0.2, %v157_v18  ;;  %vm222_vm2 = vcmp.gt.f32.partialorder %v158_v19, 0.0  ;;  %v286_v27 = vmul.f32 0.2, %v158_v19  ;;  %vm223_vm3 = vcmp.gt.f32.partialorder %v159_v20, 0.0 }
   0x9   :  { %v348_v28 = vsel %vm220_vm0, %v156_v13, %v284_v22  ;;  %v287_v29 = vmul.f32 0.2, %v159_v20  ;;  %vm224_vm4 = vcmp.gt.f32.partialorder %v160_v23, 0.0  ;;  %v288_v34 = vmul.f32 0.2, %v160_v23  ;;  %v32_v10 = vld [vmem:[%s1030_s0 + $0x90] sm:$0xff] }
   0xa   :  { %412 = vst [vmem:[%s1033_s3] sm:$0xff] %v348_v28  ;;  %v349_v32 = vsel %vm221_vm1, %v157_v18, %v285_v26  ;;  %v350_v33 = vsel %vm222_vm2, %v158_v19, %v286_v27  ;;  %vm225_vm5 = vcmp.gt.f32.partialorder %v161_v24, 0.0  ;;  %v289_v36 = vmul.f32 0.2, %v161_v24  ;;  %v33_v17 = vld [vmem:[%s1030_s0 + $0x98] sm:$0xff]  ;;  %v34_v18 = vld [vmem:[%s1030_s0 + $0xa0] sm:$0xff] }
   0xb   :  { %413 = vst [vmem:[%s1033_s3 + $0x8] sm:$0xff] %v349_v32  ;;  %414 = vst [vmem:[%s1033_s3 + $0x10] sm:$0xff] %v350_v33  ;;  %v351_v35 = vsel %vm223_vm3, %v159_v20, %v287_v29  ;;  %v352_v39 = vsel %vm224_vm4, %v160_v23, %v288_v34  ;;  %v93_v40 = vmul.f32 %v508_v1, %v22_v25  ;;  %vm226_vm6 = vcmp.gt.f32.partialorder %v162_v37, 0.0  ;;  %v35_v32 = vld [vmem:[%s1030_s0 + $0xa8] sm:$0xff]  ;;  %v36_v33 = vld [vmem:[%s1030_s0 + $0xb0] sm:$0xff] }
   0xc   :  { %415 = vst [vmem:[%s1033_s3 + $0x18] sm:$0xff] %v351_v35  ;;  %v94_v41 = vmul.f32 %v508_v1, %v23_v30  ;;  %v95_v42 = vmul.f32 %v508_v1, %v24_v31  ;;  %416 = vst [vmem:[%s1033_s3 + $0x20] sm:$0xff] %v352_v39  ;;  %v353_v46 = vsel %vm225_vm5, %v161_v24, %v289_v36  ;;  %v290_v47 = vmul.f32 0.2, %v162_v37 }
   0xd   :  { %vm227_vm7 = vcmp.gt.f32.partialorder %v163_v38, 0.0  ;;  %417 = vst [vmem:[%s1033_s3 + $0x28] sm:$0xff] %v353_v46  ;;  %v291_v48 = vmul.f32 0.2, %v163_v38  ;;  %v164_v49 = vadd.f32 %v513_v2, %v93_v40  ;;  %v96_v53 = vmul.f32 %v508_v1, %v25_v43  ;;  %v37_v40 = vld [vmem:[%s1030_s0 + $0xb8] sm:$0xff]  ;;  %v39_v46 = vld [vmem:[%s1030_s0 + $0xc8] sm:$0xff] }
   0xe   :  { %v165_v50 = vadd.f32 %v513_v2, %v94_v41  ;;  %v166_v51 = vadd.f32 %v513_v2, %v95_v42  ;;  %v354_v52 = vsel %vm226_vm6, %v162_v37, %v290_v47  ;;  %v97_v54 = vmul.f32 %v508_v1, %v26_v44  ;;  %v40_v47 = vld [vmem:[%s1030_s0 + $0xd0] sm:$0xff] }
   0xf   :  { %v98_v55 = vmul.f32 %v508_v1, %v27_v45  ;;  %418 = vst [vmem:[%s1033_s3 + $0x30] sm:$0xff] %v354_v52  ;;  %v355_v57 = vsel %vm227_vm7, %v163_v38, %v291_v48  ;;  %vm228_vm8 = vcmp.gt.f32.partialorder %v164_v49, 0.0  ;;  %v292_v58 = vmul.f32 0.2, %v164_v49  ;;  %v38_v45 = vld [vmem:[%s1030_s0 + $0xc0] sm:$0xff] }
  0x10   :  { %vm229_vm9 = vcmp.gt.f32.partialorder %v165_v50, 0.0  ;;  %419 = vst [vmem:[%s1033_s3 + $0x38] sm:$0xff] %v355_v57  ;;  %v293_v59 = vmul.f32 0.2, %v165_v50  ;;  %vm230_vm10 = vcmp.gt.f32.partialorder %v166_v51, 0.0  ;;  %v167_v61 = vadd.f32 %v513_v2, %v96_v53 }
  0x11   :  { %v294_v60 = vmul.f32 0.2, %v166_v51  ;;  %v356_v62 = vsel %vm228_vm8, %v164_v49, %v292_v58  ;;  %v168_v63 = vadd.f32 %v513_v2, %v97_v54  ;;  %v169_v0 = vadd.f32 %v513_v2, %v98_v55  ;;  %v41_v58 = vld [vmem:[%s1030_s0 + $0xd8] sm:$0xff] }
  0x12   :  { %v99_v3 = vmul.f32 %v508_v1, %v28_v56  ;;  %420 = vst [vmem:[%s1033_s3 + $0x40] sm:$0xff] %v356_v62  ;;  %v357_v6 = vsel %vm229_vm9, %v165_v50, %v293_v59  ;;  %vm231_vm11 = vcmp.gt.f32.partialorder %v167_v61, 0.0  ;;  %v295_v8 = vmul.f32 0.2, %v167_v61  ;;  %v42_v59 = vld [vmem:[%s1030_s0 + $0xe0] sm:$0xff] }
  0x13   :  { %v358_v7 = vsel %vm230_vm10, %v166_v51, %v294_v60  ;;  %421 = vst [vmem:[%s1033_s3 + $0x48] sm:$0xff] %v357_v6  ;;  %vm232_vm12 = vcmp.gt.f32.partialorder %v168_v63, 0.0  ;;  %v296_v11 = vmul.f32 0.2, %v168_v63  ;;  %vm233_vm13 = vcmp.gt.f32.partialorder %v169_v0, 0.0 }
  0x14   :  { %422 = vst [vmem:[%s1033_s3 + $0x50] sm:$0xff] %v358_v7  ;;  %v297_v12 = vmul.f32 0.2, %v169_v0  ;;  %v359_v13 = vsel %vm231_vm11, %v167_v61, %v295_v8  ;;  %v170_v14 = vadd.f32 %v513_v2, %v99_v3  ;;  %v100_v15 = vmul.f32 %v508_v1, %v29_v4 }
  0x15   :  { %v101_v16 = vmul.f32 %v508_v1, %v30_v5  ;;  %423 = vst [vmem:[%s1033_s3 + $0x58] sm:$0xff] %v359_v13  ;;  %v360_v19 = vsel %vm232_vm12, %v168_v63, %v296_v11  ;;  %v102_v21 = vmul.f32 %v508_v1, %v31_v9  ;;  %v103_v22 = vmul.f32 %v508_v1, %v32_v10  ;;  %v43_v10 = vld [vmem:[%s1030_s0 + $0xe8] sm:$0xff]  ;;  %v44_v11 = vld [vmem:[%s1030_s0 + $0xf0] sm:$0xff] }
  0x16   :  { %v361_v20 = vsel %vm233_vm13, %v169_v0, %v297_v12  ;;  %424 = vst [vmem:[%s1033_s3 + $0x60] sm:$0xff] %v360_v19  ;;  %vm234_vm14 = vcmp.gt.f32.partialorder %v170_v14, 0.0  ;;  %v298_v23 = vmul.f32 0.2, %v170_v14  ;;  %v171_v24 = vadd.f32 %v513_v2, %v100_v15 }
  0x17   :  { %425 = vst [vmem:[%s1033_s3 + $0x68] sm:$0xff] %v361_v20  ;;  %v172_v25 = vadd.f32 %v513_v2, %v101_v16  ;;  %v173_v26 = vadd.f32 %v513_v2, %v102_v21  ;;  %v174_v27 = vadd.f32 %v513_v2, %v103_v22  ;;  %v104_v28 = vmul.f32 %v508_v1, %v33_v17 }
  0x18   :  { %v105_v29 = vmul.f32 %v508_v1, %v34_v18  ;;  %v362_v30 = vsel %vm234_vm14, %v170_v14, %v298_v23  ;;  %vm235_vm15 = vcmp.gt.f32.partialorder %v171_v24, 0.0  ;;  %v299_v31 = vmul.f32 0.2, %v171_v24  ;;  %v45_v18 = vld [vmem:[%s1030_s0 + $0xf8] sm:$0xff]  ;;  %v46_v23 = vld [vmem:[%s1030_s0 + $0x100] sm:$0xff] }
  0x19   :  { %vm236_vm0 = vcmp.gt.f32.partialorder %v172_v25, 0.0  ;;  %426 = vst [vmem:[%s1033_s3 + $0x70] sm:$0xff] %v362_v30  ;;  %v300_v34 = vmul.f32 0.2, %v172_v25  ;;  %vm237_vm1 = vcmp.gt.f32.partialorder %v173_v26, 0.0  ;;  %vm238_vm2 = vcmp.gt.f32.partialorder %v174_v27, 0.0 }
  0x1a   :  { %v301_v35 = vmul.f32 0.2, %v173_v26  ;;  %v363_v36 = vsel %vm235_vm15, %v171_v24, %v299_v31  ;;  %v302_v37 = vmul.f32 0.2, %v174_v27  ;;  %v175_v38 = vadd.f32 %v513_v2, %v104_v28  ;;  %v47_v24 = vld [vmem:[%s1030_s0 + $0x108] sm:$0xff] }
  0x1b   :  { %v176_v39 = vadd.f32 %v513_v2, %v105_v29  ;;  %427 = vst [vmem:[%s1033_s3 + $0x78] sm:$0xff] %v363_v36  ;;  %v364_v41 = vsel %vm236_vm0, %v172_v25, %v300_v34  ;;  %v106_v43 = vmul.f32 %v508_v1, %v35_v32  ;;  %v107_v44 = vmul.f32 %v508_v1, %v36_v33  ;;  %v48_v25 = vld [vmem:[%s1030_s0 + $0x110] sm:$0xff]  ;;  %v49_v36 = vld [vmem:[%s1030_s0 + $0x118] sm:$0xff] }
  0x1c   :  { %v365_v42 = vsel %vm237_vm1, %v173_v26, %v301_v35  ;;  %428 = vst [vmem:[%s1033_s3 + $0x80] sm:$0xff] %v364_v41  ;;  %v366_v48 = vsel %vm238_vm2, %v174_v27, %v302_v37  ;;  %vm239_vm3 = vcmp.gt.f32.partialorder %v175_v38, 0.0  ;;  %v303_v49 = vmul.f32 0.2, %v175_v38  ;;  %v50_v37 = vld [vmem:[%s1030_s0 + $0x120] sm:$0xff] }
  0x1d   :  { %429 = vst [vmem:[%s1033_s3 + $0x88] sm:$0xff] %v365_v42  ;;  %vm240_vm4 = vcmp.gt.f32.partialorder %v176_v39, 0.0  ;;  %430 = vst [vmem:[%s1033_s3 + $0x90] sm:$0xff] %v366_v48  ;;  %v304_v50 = vmul.f32 0.2, %v176_v39  ;;  %v177_v51 = vadd.f32 %v513_v2, %v106_v43  ;;  %v178_v52 = vadd.f32 %v513_v2, %v107_v44 }
  0x1e   :  { %v108_v53 = vmul.f32 %v508_v1, %v37_v40  ;;  %v367_v54 = vsel %vm239_vm3, %v175_v38, %v303_v49  ;;  %v109_v55 = vmul.f32 %v508_v1, %v38_v45  ;;  %v110_v56 = vmul.f32 %v508_v1, %v39_v46 }
  0x1f   :  { %v111_v57 = vmul.f32 %v508_v1, %v40_v47  ;;  %431 = vst [vmem:[%s1033_s3 + $0x98] sm:$0xff] %v367_v54  ;;  %v368_v60 = vsel %vm240_vm4, %v176_v39, %v304_v50  ;;  %vm241_vm5 = vcmp.gt.f32.partialorder %v177_v51, 0.0  ;;  %v305_v61 = vmul.f32 0.2, %v177_v51  ;;  %v51_v50 = vld [vmem:[%s1030_s0 + $0x128] sm:$0xff] }
  0x20   :  { %vm242_vm6 = vcmp.gt.f32.partialorder %v178_v52, 0.0  ;;  %432 = vst [vmem:[%s1033_s3 + $0xa0] sm:$0xff] %v368_v60  ;;  %v306_v62 = vmul.f32 0.2, %v178_v52  ;;  %v179_v63 = vadd.f32 %v513_v2, %v108_v53  ;;  %v180_v0 = vadd.f32 %v513_v2, %v109_v55 }
  0x21   :  { %v181_v3 = vadd.f32 %v513_v2, %v110_v56  ;;  %v369_v4 = vsel %vm241_vm5, %v177_v51, %v305_v61  ;;  %v182_v5 = vadd.f32 %v513_v2, %v111_v57  ;;  %v112_v6 = vmul.f32 %v508_v1, %v41_v58  ;;  %v52_v51 = vld [vmem:[%s1030_s0 + $0x130] sm:$0xff]  ;;  %v53_v58 = vld [vmem:[%s1030_s0 + $0x138] sm:$0xff] }
  0x22   :  { %v113_v7 = vmul.f32 %v508_v1, %v42_v59  ;;  %433 = vst [vmem:[%s1033_s3 + $0xa8] sm:$0xff] %v369_v4  ;;  %v370_v8 = vsel %vm242_vm6, %v178_v52, %v306_v62  ;;  %vm243_vm7 = vcmp.gt.f32.partialorder %v179_v63, 0.0  ;;  %v307_v9 = vmul.f32 0.2, %v179_v63 }
  0x23   :  { %vm244_vm8 = vcmp.gt.f32.partialorder %v180_v0, 0.0  ;;  %434 = vst [vmem:[%s1033_s3 + $0xb0] sm:$0xff] %v370_v8  ;;  %v308_v12 = vmul.f32 0.2, %v180_v0  ;;  %vm245_vm9 = vcmp.gt.f32.partialorder %v181_v3, 0.0  ;;  %vm246_vm10 = vcmp.gt.f32.partialorder %v182_v5, 0.0 }
  0x24   :  { %v309_v13 = vmul.f32 0.2, %v181_v3  ;;  %v371_v14 = vsel %vm243_vm7, %v179_v63, %v307_v9  ;;  %v310_v15 = vmul.f32 0.2, %v182_v5  ;;  %v183_v16 = vadd.f32 %v513_v2, %v112_v6  ;;  %v54_v63 = vld [vmem:[%s1030_s0 + $0x140] sm:$0xff] }
  0x25   :  { %v184_v17 = vadd.f32 %v513_v2, %v113_v7  ;;  %435 = vst [vmem:[%s1033_s3 + $0xb8] sm:$0xff] %v371_v14  ;;  %v372_v19 = vsel %vm244_vm8, %v180_v0, %v308_v12  ;;  %v114_v21 = vmul.f32 %v508_v1, %v43_v10  ;;  %v115_v22 = vmul.f32 %v508_v1, %v44_v11  ;;  %v55_v0 = vld [vmem:[%s1030_s0 + $0x148] sm:$0xff]  ;;  %v57_v14 = vld [vmem:[%s1030_s0 + $0x158] sm:$0xff] }
  0x26   :  { %v373_v20 = vsel %vm245_vm9, %v181_v3, %v309_v13  ;;  %436 = vst [vmem:[%s1033_s3 + $0xc0] sm:$0xff] %v372_v19  ;;  %v374_v26 = vsel %vm246_vm10, %v182_v5, %v310_v15  ;;  %vm247_vm11 = vcmp.gt.f32.partialorder %v183_v16, 0.0  ;;  %v311_v27 = vmul.f32 0.2, %v183_v16  ;;  %v56_v3 = vld [vmem:[%s1030_s0 + $0x150] sm:$0xff]  ;;  %v58_v15 = vld [vmem:[%s1030_s0 + $0x160] sm:$0xff] }
  0x27   :  { %437 = vst [vmem:[%s1033_s3 + $0xc8] sm:$0xff] %v373_v20  ;;  %vm248_vm12 = vcmp.gt.f32.partialorder %v184_v17, 0.0  ;;  %438 = vst [vmem:[%s1033_s3 + $0xd0] sm:$0xff] %v374_v26  ;;  %v312_v28 = vmul.f32 0.2, %v184_v17  ;;  %v185_v29 = vadd.f32 %v513_v2, %v114_v21  ;;  %v186_v30 = vadd.f32 %v513_v2, %v115_v22 }
  0x28   :  { %v116_v31 = vmul.f32 %v508_v1, %v45_v18  ;;  %v375_v32 = vsel %vm247_vm11, %v183_v16, %v311_v27  ;;  %v117_v33 = vmul.f32 %v508_v1, %v46_v23  ;;  %v118_v34 = vmul.f32 %v508_v1, %v47_v24 }
  0x29   :  { %v119_v35 = vmul.f32 %v508_v1, %v48_v25  ;;  %439 = vst [vmem:[%s1033_s3 + $0xd8] sm:$0xff] %v375_v32  ;;  %v376_v38 = vsel %vm248_vm12, %v184_v17, %v312_v28  ;;  %vm249_vm13 = vcmp.gt.f32.partialorder %v185_v29, 0.0  ;;  %v313_v39 = vmul.f32 0.2, %v185_v29  ;;  %v59_v28 = vld [vmem:[%s1030_s0 + $0x168] sm:$0xff] }
  0x2a   :  { %vm250_vm14 = vcmp.gt.f32.partialorder %v186_v30, 0.0  ;;  %440 = vst [vmem:[%s1033_s3 + $0xe0] sm:$0xff] %v376_v38  ;;  %v314_v40 = vmul.f32 0.2, %v186_v30  ;;  %v187_v41 = vadd.f32 %v513_v2, %v116_v31  ;;  %v188_v42 = vadd.f32 %v513_v2, %v117_v33 }
  0x2b   :  { %v189_v43 = vadd.f32 %v513_v2, %v118_v34  ;;  %v377_v44 = vsel %vm249_vm13, %v185_v29, %v313_v39  ;;  %v190_v45 = vadd.f32 %v513_v2, %v119_v35  ;;  %v120_v46 = vmul.f32 %v508_v1, %v49_v36  ;;  %v60_v29 = vld [vmem:[%s1030_s0 + $0x170] sm:$0xff]  ;;  %v61_v36 = vld [vmem:[%s1030_s0 + $0x178] sm:$0xff] }
  0x2c   :  { %v121_v47 = vmul.f32 %v508_v1, %v50_v37  ;;  %441 = vst [vmem:[%s1033_s3 + $0xe8] sm:$0xff] %v377_v44  ;;  %v378_v48 = vsel %vm250_vm14, %v186_v30, %v314_v40  ;;  %vm251_vm15 = vcmp.gt.f32.partialorder %v187_v41, 0.0  ;;  %v315_v49 = vmul.f32 0.2, %v187_v41 }
  0x2d   :  { %vm252_vm0 = vcmp.gt.f32.partialorder %v188_v42, 0.0  ;;  %442 = vst [vmem:[%s1033_s3 + $0xf0] sm:$0xff] %v378_v48  ;;  %v316_v52 = vmul.f32 0.2, %v188_v42  ;;  %vm253_vm1 = vcmp.gt.f32.partialorder %v189_v43, 0.0  ;;  %vm254_vm2 = vcmp.gt.f32.partialorder %v190_v45, 0.0 }
  0x2e   :  { %v317_v53 = vmul.f32 0.2, %v189_v43  ;;  %v379_v54 = vsel %vm251_vm15, %v187_v41, %v315_v49  ;;  %v318_v55 = vmul.f32 0.2, %v190_v45  ;;  %v191_v56 = vadd.f32 %v513_v2, %v120_v46  ;;  %v62_v41 = vld [vmem:[%s1030_s0 + $0x180] sm:$0xff] }
  0x2f   :  { %v192_v57 = vadd.f32 %v513_v2, %v121_v47  ;;  %443 = vst [vmem:[%s1033_s3 + $0xf8] sm:$0xff] %v379_v54  ;;  %v380_v59 = vsel %vm252_vm0, %v188_v42, %v316_v52  ;;  %v122_v61 = vmul.f32 %v508_v1, %v51_v50  ;;  %v123_v62 = vmul.f32 %v508_v1, %v52_v51  ;;  %v63_v42 = vld [vmem:[%s1030_s0 + $0x188] sm:$0xff]  ;;  %v65_v54 = vld [vmem:[%s1030_s0 + $0x198] sm:$0xff] }
  0x30   :  { %v381_v60 = vsel %vm253_vm1, %v189_v43, %v317_v53  ;;  %444 = vst [vmem:[%s1033_s3 + $0x100] sm:$0xff] %v380_v59  ;;  %v382_v4 = vsel %vm254_vm2, %v190_v45, %v318_v55  ;;  %vm255_vm3 = vcmp.gt.f32.partialorder %v191_v56, 0.0  ;;  %v319_v5 = vmul.f32 0.2, %v191_v56  ;;  %v64_v43 = vld [vmem:[%s1030_s0 + $0x190] sm:$0xff]  ;;  %v66_v55 = vld [vmem:[%s1030_s0 + $0x1a0] sm:$0xff] }
  0x31   :  { %445 = vst [vmem:[%s1033_s3 + $0x108] sm:$0xff] %v381_v60  ;;  %vm256_vm4 = vcmp.gt.f32.partialorder %v192_v57, 0.0  ;;  %446 = vst [vmem:[%s1033_s3 + $0x110] sm:$0xff] %v382_v4  ;;  %v320_v6 = vmul.f32 0.2, %v192_v57  ;;  %v193_v7 = vadd.f32 %v513_v2, %v122_v61  ;;  %v194_v8 = vadd.f32 %v513_v2, %v123_v62 }
  0x32   :  { %v124_v9 = vmul.f32 %v508_v1, %v53_v58  ;;  %v383_v10 = vsel %vm255_vm3, %v191_v56, %v319_v5  ;;  %v125_v11 = vmul.f32 %v508_v1, %v54_v63  ;;  %v126_v12 = vmul.f32 %v508_v1, %v55_v0 }
  0x33   :  { %v127_v13 = vmul.f32 %v508_v1, %v56_v3  ;;  %447 = vst [vmem:[%s1033_s3 + $0x118] sm:$0xff] %v383_v10  ;;  %v384_v16 = vsel %vm256_vm4, %v192_v57, %v320_v6  ;;  %vm257_vm5 = vcmp.gt.f32.partialorder %v193_v7, 0.0  ;;  %v321_v17 = vmul.f32 0.2, %v193_v7  ;;  %v67_v6 = vld [vmem:[%s1030_s0 + $0x1a8] sm:$0xff] }
  0x34   :  { %vm258_vm6 = vcmp.gt.f32.partialorder %v194_v8, 0.0  ;;  %448 = vst [vmem:[%s1033_s3 + $0x120] sm:$0xff] %v384_v16  ;;  %v322_v18 = vmul.f32 0.2, %v194_v8  ;;  %v195_v19 = vadd.f32 %v513_v2, %v124_v9  ;;  %v196_v20 = vadd.f32 %v513_v2, %v125_v11 }
  0x35   :  { %v197_v21 = vadd.f32 %v513_v2, %v126_v12  ;;  %v385_v22 = vsel %vm257_vm5, %v193_v7, %v321_v17  ;;  %v198_v23 = vadd.f32 %v513_v2, %v127_v13  ;;  %v128_v24 = vmul.f32 %v508_v1, %v57_v14  ;;  %v68_v7 = vld [vmem:[%s1030_s0 + $0x1b0] sm:$0xff]  ;;  %v69_v14 = vld [vmem:[%s1030_s0 + $0x1b8] sm:$0xff] }
  0x36   :  { %v129_v25 = vmul.f32 %v508_v1, %v58_v15  ;;  %449 = vst [vmem:[%s1033_s3 + $0x128] sm:$0xff] %v385_v22  ;;  %v386_v26 = vsel %vm258_vm6, %v194_v8, %v322_v18  ;;  %vm259_vm7 = vcmp.gt.f32.partialorder %v195_v19, 0.0  ;;  %v323_v27 = vmul.f32 0.2, %v195_v19 }
  0x37   :  { %vm260_vm8 = vcmp.gt.f32.partialorder %v196_v20, 0.0  ;;  %450 = vst [vmem:[%s1033_s3 + $0x130] sm:$0xff] %v386_v26  ;;  %v324_v30 = vmul.f32 0.2, %v196_v20  ;;  %vm261_vm9 = vcmp.gt.f32.partialorder %v197_v21, 0.0  ;;  %vm262_vm10 = vcmp.gt.f32.partialorder %v198_v23, 0.0 }
  0x38   :  { %v325_v31 = vmul.f32 0.2, %v197_v21  ;;  %v387_v32 = vsel %vm259_vm7, %v195_v19, %v323_v27  ;;  %v326_v33 = vmul.f32 0.2, %v198_v23  ;;  %v199_v34 = vadd.f32 %v513_v2, %v128_v24  ;;  %v70_v19 = vld [vmem:[%s1030_s0 + $0x1c0] sm:$0xff] }
  0x39   :  { %v200_v35 = vadd.f32 %v513_v2, %v129_v25  ;;  %451 = vst [vmem:[%s1033_s3 + $0x138] sm:$0xff] %v387_v32  ;;  %v388_v37 = vsel %vm260_vm8, %v196_v20, %v324_v30  ;;  %v130_v39 = vmul.f32 %v508_v1, %v59_v28  ;;  %v131_v40 = vmul.f32 %v508_v1, %v60_v29  ;;  %v71_v20 = vld [vmem:[%s1030_s0 + $0x1c8] sm:$0xff]  ;;  %v73_v32 = vld [vmem:[%s1030_s0 + $0x1d8] sm:$0xff] }
  0x3a   :  { %v389_v38 = vsel %vm261_vm9, %v197_v21, %v325_v31  ;;  %452 = vst [vmem:[%s1033_s3 + $0x140] sm:$0xff] %v388_v37  ;;  %v390_v44 = vsel %vm262_vm10, %v198_v23, %v326_v33  ;;  %vm263_vm11 = vcmp.gt.f32.partialorder %v199_v34, 0.0  ;;  %v327_v45 = vmul.f32 0.2, %v199_v34  ;;  %v72_v21 = vld [vmem:[%s1030_s0 + $0x1d0] sm:$0xff]  ;;  %v74_v33 = vld [vmem:[%s1030_s0 + $0x1e0] sm:$0xff] }
  0x3b   :  { %453 = vst [vmem:[%s1033_s3 + $0x148] sm:$0xff] %v389_v38  ;;  %vm264_vm12 = vcmp.gt.f32.partialorder %v200_v35, 0.0  ;;  %454 = vst [vmem:[%s1033_s3 + $0x150] sm:$0xff] %v390_v44  ;;  %v328_v46 = vmul.f32 0.2, %v200_v35  ;;  %v201_v47 = vadd.f32 %v513_v2, %v130_v39  ;;  %v202_v48 = vadd.f32 %v513_v2, %v131_v40 }
  0x3c   :  { %v132_v49 = vmul.f32 %v508_v1, %v61_v36  ;;  %v391_v50 = vsel %vm263_vm11, %v199_v34, %v327_v45  ;;  %v133_v51 = vmul.f32 %v508_v1, %v62_v41  ;;  %v134_v52 = vmul.f32 %v508_v1, %v63_v42 }
  0x3d   :  { %v135_v53 = vmul.f32 %v508_v1, %v64_v43  ;;  %455 = vst [vmem:[%s1033_s3 + $0x158] sm:$0xff] %v391_v50  ;;  %v392_v56 = vsel %vm264_vm12, %v200_v35, %v328_v46  ;;  %vm265_vm13 = vcmp.gt.f32.partialorder %v201_v47, 0.0  ;;  %v329_v57 = vmul.f32 0.2, %v201_v47  ;;  %v75_v46 = vld [vmem:[%s1030_s0 + $0x1e8] sm:$0xff] }
  0x3e   :  { %vm266_vm14 = vcmp.gt.f32.partialorder %v202_v48, 0.0  ;;  %456 = vst [vmem:[%s1033_s3 + $0x160] sm:$0xff] %v392_v56  ;;  %v330_v58 = vmul.f32 0.2, %v202_v48  ;;  %v203_v59 = vadd.f32 %v513_v2, %v132_v49  ;;  %v204_v60 = vadd.f32 %v513_v2, %v133_v51 }
  0x3f   :  { %v205_v61 = vadd.f32 %v513_v2, %v134_v52  ;;  %v393_v62 = vsel %vm265_vm13, %v201_v47, %v329_v57  ;;  %v206_v63 = vadd.f32 %v513_v2, %v135_v53  ;;  %v136_v0 = vmul.f32 %v508_v1, %v65_v54  ;;  %v76_v47 = vld [vmem:[%s1030_s0 + $0x1f0] sm:$0xff]  ;;  %v77_v54 = vld [vmem:[%s1030_s0 + $0x1f8] sm:$0xff] }
  0x40   :  { %v137_v3 = vmul.f32 %v508_v1, %v66_v55  ;;  %457 = vst [vmem:[%s1033_s3 + $0x168] sm:$0xff] %v393_v62  ;;  %v394_v4 = vsel %vm266_vm14, %v202_v48, %v330_v58  ;;  %vm267_vm15 = vcmp.gt.f32.partialorder %v203_v59, 0.0  ;;  %v331_v5 = vmul.f32 0.2, %v203_v59 }
  0x41   :  { %vm268_vm0 = vcmp.gt.f32.partialorder %v204_v60, 0.0  ;;  %458 = vst [vmem:[%s1033_s3 + $0x170] sm:$0xff] %v394_v4  ;;  %v332_v8 = vmul.f32 0.2, %v204_v60  ;;  %vm269_vm1 = vcmp.gt.f32.partialorder %v205_v61, 0.0  ;;  %vm270_vm2 = vcmp.gt.f32.partialorder %v206_v63, 0.0 }
  0x42   :  { %v333_v9 = vmul.f32 0.2, %v205_v61  ;;  %v395_v10 = vsel %vm267_vm15, %v203_v59, %v331_v5  ;;  %v334_v11 = vmul.f32 0.2, %v206_v63  ;;  %v207_v12 = vadd.f32 %v513_v2, %v136_v0 }
  0x43   :  { %v208_v13 = vadd.f32 %v513_v2, %v137_v3  ;;  %459 = vst [vmem:[%s1033_s3 + $0x178] sm:$0xff] %v395_v10  ;;  %v396_v15 = vsel %vm268_vm0, %v204_v60, %v332_v8  ;;  %v138_v17 = vmul.f32 %v508_v1, %v67_v6  ;;  %v139_v18 = vmul.f32 %v508_v1, %v68_v7 }
  0x44   :  { %v397_v16 = vsel %vm269_vm1, %v205_v61, %v333_v9  ;;  %460 = vst [vmem:[%s1033_s3 + $0x180] sm:$0xff] %v396_v15  ;;  %v398_v22 = vsel %vm270_vm2, %v206_v63, %v334_v11  ;;  %vm271_vm3 = vcmp.gt.f32.partialorder %v207_v12, 0.0  ;;  %v335_v23 = vmul.f32 0.2, %v207_v12 }
  0x45   :  { %461 = vst [vmem:[%s1033_s3 + $0x188] sm:$0xff] %v397_v16  ;;  %vm272_vm4 = vcmp.gt.f32.partialorder %v208_v13, 0.0  ;;  %462 = vst [vmem:[%s1033_s3 + $0x190] sm:$0xff] %v398_v22  ;;  %v336_v24 = vmul.f32 0.2, %v208_v13  ;;  %v209_v25 = vadd.f32 %v513_v2, %v138_v17  ;;  %v210_v26 = vadd.f32 %v513_v2, %v139_v18 }
  0x46   :  { %v140_v27 = vmul.f32 %v508_v1, %v69_v14  ;;  %v399_v28 = vsel %vm271_vm3, %v207_v12, %v335_v23  ;;  %v141_v29 = vmul.f32 %v508_v1, %v70_v19  ;;  %v142_v30 = vmul.f32 %v508_v1, %v71_v20 }
  0x47   :  { %v143_v31 = vmul.f32 %v508_v1, %v72_v21  ;;  %463 = vst [vmem:[%s1033_s3 + $0x198] sm:$0xff] %v399_v28  ;;  %v400_v34 = vsel %vm272_vm4, %v208_v13, %v336_v24  ;;  %vm273_vm5 = vcmp.gt.f32.partialorder %v209_v25, 0.0  ;;  %v337_v35 = vmul.f32 0.2, %v209_v25 }
  0x48   :  { %vm274_vm6 = vcmp.gt.f32.partialorder %v210_v26, 0.0  ;;  %464 = vst [vmem:[%s1033_s3 + $0x1a0] sm:$0xff] %v400_v34  ;;  %v338_v36 = vmul.f32 0.2, %v210_v26  ;;  %v211_v37 = vadd.f32 %v513_v2, %v140_v27  ;;  %v212_v38 = vadd.f32 %v513_v2, %v141_v29 }
  0x49   :  { %v213_v39 = vadd.f32 %v513_v2, %v142_v30  ;;  %v401_v40 = vsel %vm273_vm5, %v209_v25, %v337_v35  ;;  %v214_v41 = vadd.f32 %v513_v2, %v143_v31  ;;  %v144_v42 = vmul.f32 %v508_v1, %v73_v32 }
  0x4a   :  { %v145_v43 = vmul.f32 %v508_v1, %v74_v33  ;;  %465 = vst [vmem:[%s1033_s3 + $0x1a8] sm:$0xff] %v401_v40  ;;  %v402_v44 = vsel %vm274_vm6, %v210_v26, %v338_v36  ;;  %vm275_vm7 = vcmp.gt.f32.partialorder %v211_v37, 0.0  ;;  %v339_v45 = vmul.f32 0.2, %v211_v37 }
  0x4b   :  { %vm276_vm8 = vcmp.gt.f32.partialorder %v212_v38, 0.0  ;;  %466 = vst [vmem:[%s1033_s3 + $0x1b0] sm:$0xff] %v402_v44  ;;  %v340_v48 = vmul.f32 0.2, %v212_v38  ;;  %vm277_vm9 = vcmp.gt.f32.partialorder %v213_v39, 0.0  ;;  %vm278_vm10 = vcmp.gt.f32.partialorder %v214_v41, 0.0 }
  0x4c   :  { %v341_v49 = vmul.f32 0.2, %v213_v39  ;;  %v403_v50 = vsel %vm275_vm7, %v211_v37, %v339_v45  ;;  %v342_v51 = vmul.f32 0.2, %v214_v41  ;;  %v215_v52 = vadd.f32 %v513_v2, %v144_v42 }
  0x4d   :  { %v216_v53 = vadd.f32 %v513_v2, %v145_v43  ;;  %467 = vst [vmem:[%s1033_s3 + $0x1b8] sm:$0xff] %v403_v50  ;;  %v404_v55 = vsel %vm276_vm8, %v212_v38, %v340_v48  ;;  %v146_v57 = vmul.f32 %v508_v1, %v75_v46  ;;  %v147_v58 = vmul.f32 %v508_v1, %v76_v47 }
  0x4e   :  { %v405_v56 = vsel %vm277_vm9, %v213_v39, %v341_v49  ;;  %468 = vst [vmem:[%s1033_s3 + $0x1c0] sm:$0xff] %v404_v55  ;;  %v406_v59 = vsel %vm278_vm10, %v214_v41, %v342_v51  ;;  %vm279_vm11 = vcmp.gt.f32.partialorder %v215_v52, 0.0  ;;  %v343_v60 = vmul.f32 0.2, %v215_v52 }
  0x4f   :  { %469 = vst [vmem:[%s1033_s3 + $0x1c8] sm:$0xff] %v405_v56  ;;  %vm280_vm12 = vcmp.gt.f32.partialorder %v216_v53, 0.0  ;;  %470 = vst [vmem:[%s1033_s3 + $0x1d0] sm:$0xff] %v406_v59  ;;  %v344_v61 = vmul.f32 0.2, %v216_v53  ;;  %v217_v62 = vadd.f32 %v513_v2, %v146_v57  ;;  %v218_v63 = vadd.f32 %v513_v2, %v147_v58 }
  0x50   :  { %v148_v0 = vmul.f32 %v508_v1, %v77_v54  ;;  %v407_v3 = vsel %vm279_vm11, %v215_v52, %v343_v60 }
  0x51   :  { %471 = vst [vmem:[%s1033_s3 + $0x1d8] sm:$0xff] %v407_v3  ;;  %v408_v4 = vsel %vm280_vm12, %v216_v53, %v344_v61  ;;  %vm281_vm13 = vcmp.gt.f32.partialorder %v217_v62, 0.0  ;;  %v345_v5 = vmul.f32 0.2, %v217_v62  ;;  %vm282_vm14 = vcmp.gt.f32.partialorder %v218_v63, 0.0 }
  0x52   :  { %472 = vst [vmem:[%s1033_s3 + $0x1e0] sm:$0xff] %v408_v4  ;;  %v346_v6 = vmul.f32 0.2, %v218_v63  ;;  %v219_v7 = vadd.f32 %v513_v2, %v148_v0 }
  0x53   :  { %v409_v8 = vsel %vm281_vm13, %v217_v62, %v345_v5 }
  0x54   :  { %473 = vst [vmem:[%s1033_s3 + $0x1e8] sm:$0xff] %v409_v8  ;;  %v410_v1 = vsel %vm282_vm14, %v218_v63, %v346_v6  ;;  %vm283_vm15 = vcmp.gt.f32.partialorder %v219_v7, 0.0  ;;  %v347_v9 = vmul.f32 0.2, %v219_v7 }
  0x55   :  { %474 = vst [vmem:[%s1033_s3 + $0x1f0] sm:$0xff] %v410_v1 }
  0x56   :  { %v411_v10 = vsel %vm283_vm15, %v219_v7, %v347_v9 }
  0x57   :  { %475 = vst [vmem:[%s1033_s3 + $0x1f8] sm:$0xff] %v411_v10 }

// kernel: discriminator64_forward.13
= control target key start
LH: loop header
LB: loop body
LE: loop exit
PB: predicated region body
PF: predicated region fallthrough
CT: control target
= control target key end

     0   :  { %s770_s1 = inlined_call_operand.vmem [shape: bf16[256,128], index: 1, kind: input, shape index: {}]   ;;  %s771_s0 = inlined_call_operand.vmem [shape: bf16[128,256], index: 0, kind: input, shape index: {}]   ;;  %s772_s2 = inlined_call_operand.vmem [shape: f32[1,128], index: 2, kind: input, shape index: {}]   ;;  %s773_s3 = inlined_call_operand.vmem [shape: f32[1,128], index: 3, kind: input, shape index: {}]   ;;  %s774_s4 = inlined_call_operand.vmem [shape: f32[128,128], index: 4, kind: output, shape index: {}]  }
   0x1   :  { %v519_v0 = vld [vmem:[%s770_s1 + $0x40] sm:$0xff]   ;;  %v521_v2 = vld [vmem:[%s770_s1 + $0x48] sm:$0xff]   ;;  %v523_v4 = vld [vmem:[%s770_s1 + $0x50] sm:$0xff]  }
   0x2   :  { %v520_v1 = vld [vmem:[%s770_s1] sm:$0xff]   ;;  %439 = vmatprep.subr.bf16.mxu0 %v519_v0  ;;  %503 = vmatprep.subr.bf16.mxu1 %v519_v0  ;;  %v522_v3 = vld [vmem:[%s770_s1 + $0x8] sm:$0xff]   ;;  %v524_v5 = vld [vmem:[%s770_s1 + $0x10] sm:$0xff]  }
   0x3   :  { %440 = vmatpush3.bf16.msra.mxu0 %v520_v1  ;;  %511 = vmatpush3.bf16.msra.mxu1 %v520_v1  ;;  %v525_v6 = vld [vmem:[%s770_s1 + $0x58] sm:$0xff]   ;;  %v527_v8 = vld [vmem:[%s770_s1 + $0x60] sm:$0xff]   ;;  %v529_v10 = vld [vmem:[%s770_s1 + $0x68] sm:$0xff]  }
   0x4   :  { %441 = vmatprep.subr.bf16.mxu0 %v521_v2  ;;  %504 = vmatprep.subr.bf16.mxu1 %v521_v2  ;;  %v526_v7 = vld [vmem:[%s770_s1 + $0x18] sm:$0xff]   ;;  %v528_v9 = vld [vmem:[%s770_s1 + $0x20] sm:$0xff]   ;;  %v530_v13 = vld [vmem:[%s770_s1 + $0x28] sm:$0xff]  }
   0x5   :  { %v537_v11 = vld [vmem:[%s771_s0 + $0x4] ss:$8 sps:$4 sm:$0xff]   ;;  %v531_v14 = vld [vmem:[%s770_s1 + $0x70] sm:$0xff]   ;;  %v533_v16 = vld [vmem:[%s770_s1 + $0x78] sm:$0xff]  }
   0x6   :  { %v540_v12 = vld [vmem:[%s771_s0 + $0x44] ss:$8 sps:$4 sm:$0xff]   ;;  %274 = vmatprep.mubr.bf16.mxu0 %v537_v11  ;;  %v532_v15 = vld [vmem:[%s770_s1 + $0x30] sm:$0xff]   ;;  %v534_v17 = vld [vmem:[%s770_s1 + $0x38] sm:$0xff]  }
   0x7   :  { %442 = vmatpush3.bf16.msra.mxu0 %v522_v3  ;;  %512 = vmatpush3.bf16.msra.mxu1 %v522_v3  ;;  %v535_v18 = vld [vmem:[%s771_s0] ss:$8 sps:$4 sm:$0xff]   ;;  %v541_v20 = vld [vmem:[%s771_s0 + $0x14] ss:$8 sps:$4 sm:$0xff]   ;;  %v545_v22 = vld [vmem:[%s771_s0 + $0x10] ss:$8 sps:$4 sm:$0xff]  }
   0x8   :  { %443 = vmatprep.subr.bf16.mxu0 %v523_v4  ;;  %505 = vmatprep.subr.bf16.mxu1 %v523_v4  ;;  %v538_v19 = vld [vmem:[%s771_s0 + $0x40] ss:$8 sps:$4 sm:$0xff]   ;;  %v543_v21 = vld [vmem:[%s771_s0 + $0x54] ss:$8 sps:$4 sm:$0xff]   ;;  %v546_v23 = vld [vmem:[%s771_s0 + $0x50] ss:$8 sps:$4 sm:$0xff]  }
   0x9   :  { %306 = vmatprep.mubr.bf16.mxu1 %v540_v12  ;;  %v547_v24 = vld [vmem:[%s771_s0 + $0x24] ss:$8 sps:$4 sm:$0xff]   ;;  %v551_v26 = vld [vmem:[%s771_s0 + $0x20] ss:$8 sps:$4 sm:$0xff]   ;;  %v553_v28 = vld [vmem:[%s771_s0 + $0x34] ss:$8 sps:$4 sm:$0xff]  }
   0xa   :  { %v549_v25 = vld [vmem:[%s771_s0 + $0x64] ss:$8 sps:$4 sm:$0xff]   ;;  %v552_v27 = vld [vmem:[%s771_s0 + $0x60] ss:$8 sps:$4 sm:$0xff]   ;;  %v555_v29 = vld [vmem:[%s771_s0 + $0x74] ss:$8 sps:$4 sm:$0xff]  }
   0xb   :  { %444 = vmatpush3.bf16.msra.mxu0 %v524_v5  ;;  %513 = vmatpush3.bf16.msra.mxu1 %v524_v5  ;;  %v557_v30 = vld [vmem:[%s771_s0 + $0x30] ss:$8 sps:$4 sm:$0xff]   ;;  %v683_v35 = vld [vmem:[%s772_s2] ss:$0 sm:$0xff] }
   0xc   :  { %445 = vmatprep.subr.bf16.mxu0 %v525_v6  ;;  %506 = vmatprep.subr.bf16.mxu1 %v525_v6  ;;  %v558_v31 = vld [vmem:[%s771_s0 + $0x70] ss:$8 sps:$4 sm:$0xff]   ;;  %v688_v41 = vld [vmem:[%s773_s3] ss:$0 sm:$0xff] }
   0xf   :  { %446 = vmatpush3.bf16.msra.mxu0 %v526_v7  ;;  %514 = vmatpush3.bf16.msra.mxu1 %v526_v7 }
  0x10   :  { %447 = vmatprep.subr.bf16.mxu0 %v527_v8  ;;  %507 = vmatprep.subr.bf16.mxu1 %v527_v8 }
  0x13   :  { %448 = vmatpush3.bf16.msra.mxu0 %v528_v9  ;;  %515 = vmatpush3.bf16.msra.mxu1 %v528_v9 }
  0x14   :  { %449 = vmatprep.subr.bf16.mxu0 %v529_v10  ;;  %508 = vmatprep.subr.bf16.mxu1 %v529_v10 }
  0x17   :  { %450 = vmatpush3.bf16.msra.mxu0 %v530_v13  ;;  %516 = vmatpush3.bf16.msra.mxu1 %v530_v13 }
  0x18   :  { %451 = vmatprep.subr.bf16.mxu0 %v531_v14  ;;  %509 = vmatprep.subr.bf16.mxu1 %v531_v14 }
  0x1b   :  { %452 = vmatpush3.bf16.msra.mxu0 %v532_v15  ;;  %517 = vmatpush3.bf16.msra.mxu1 %v532_v15 }
  0x1c   :  { %453 = vmatprep.subr.bf16.mxu0 %v533_v16  ;;  %510 = vmatprep.subr.bf16.mxu1 %v533_v16 }
  0x1f   :  { %454 = vmatpush3.bf16.msra.mxu0 %v534_v17  ;;  %518 = vmatpush3.bf16.msra.mxu1 %v534_v17 }
  0x22   :  { %275 = vmatmul.mubr.bf16.vlgmr.msra.gmra.mrb[0].mxu0 %v535_v18  ;;  %307 = vmatmul.mubr.bf16.vlgmr.msra.gmra.mrb[0].mxu1 %v538_v19 }
  0x23   :  { %282 = vmatprep.mubr.bf16.mxu0 %v541_v20  ;;  %314 = vmatprep.mubr.bf16.mxu1 %v543_v21 }
  0x2a   :  { %283 = vmatmul.mubr.bf16.gmra.mrb[4].mxu0 %v545_v22  ;;  %315 = vmatmul.mubr.bf16.gmra.mrb[4].mxu1 %v546_v23 }
  0x2b   :  { %290 = vmatprep.mubr.bf16.mxu0 %v547_v24  ;;  %322 = vmatprep.mubr.bf16.mxu1 %v549_v25 }
  0x32   :  { %291 = vmatmul.mubr.bf16.gmra.mrb[8].mxu0 %v551_v26  ;;  %323 = vmatmul.mubr.bf16.gmra.mrb[8].mxu1 %v552_v27 }
  0x33   :  { %298 = vmatprep.mubr.bf16.mxu0 %v553_v28  ;;  %330 = vmatprep.mubr.bf16.mxu1 %v555_v29 }
  0x3a   :  { %299 = vmatmul.mubr.bf16.gmra.mrb[12].mxu0 %v557_v30  ;;  %331 = vmatmul.mubr.bf16.gmra.mrb[12].mxu1 %v558_v31 }
  0xf5   :  { %v455_v32 = vpop.f32.mrb[0].mxu0  ;;  %v479_v33 = vpop.f32.mrb[0].mxu1 }
  0xf6   :  { %v456_v34 = vpop.f32.mrb[1].mxu0  ;;  %v480_v36 = vpop.f32.mrb[1].mxu1 }
  0xf7   :  { %v457_v37 = vadd.f32 %v456_v34, %v455_v32  ;;  %v481_v38 = vadd.f32 %v480_v36, %v479_v33  ;;  %v458_v39 = vpop.f32.mrb[2].mxu0  ;;  %v482_v40 = vpop.f32.mrb[2].mxu1 }
  0xf8   :  { %v459_v42 = vpop.f32.mrb[3].mxu0  ;;  %v483_v43 = vpop.f32.mrb[3].mxu1 }
  0xf9   :  { %v346_v44 = vmul.f32 %v457_v37, %v683_v35  ;;  %v354_v45 = vmul.f32 %v481_v38, %v683_v35  ;;  %v460_v46 = vadd.f32 %v459_v42, %v458_v39  ;;  %v484_v47 = vadd.f32 %v483_v43, %v482_v40 }
  0xfb   :  { %v369_v48 = vadd.f32 %v688_v41, %v346_v44  ;;  %v377_v49 = vadd.f32 %v688_v41, %v354_v45  ;;  %v347_v50 = vmul.f32 %v460_v46, %v683_v35  ;;  %v355_v51 = vmul.f32 %v484_v47, %v683_v35 }
  0xfd   :  { %385 = vst [vmem:[%s774_s4] sm:$0xff] %v369_v48  ;;  %393 = vst [vmem:[%s774_s4 + $0x40] sm:$0xff] %v377_v49  ;;  %v370_v52 = vadd.f32 %v688_v41, %v347_v50  ;;  %v378_v53 = vadd.f32 %v688_v41, %v355_v51  ;;  %v461_v54 = vpop.f32.mrb[4].mxu0  ;;  %v485_v55 = vpop.f32.mrb[4].mxu1 }
  0xfe   :  { %v462_v56 = vpop.f32.mrb[5].mxu0  ;;  %v486_v57 = vpop.f32.mrb[5].mxu1 }
  0xff   :  { %386 = vst [vmem:[%s774_s4 + $0x8] sm:$0xff] %v370_v52  ;;  %394 = vst [vmem:[%s774_s4 + $0x48] sm:$0xff] %v378_v53  ;;  %v463_v58 = vadd.f32 %v462_v56, %v461_v54  ;;  %v487_v59 = vadd.f32 %v486_v57, %v485_v55  ;;  %v464_v60 = vpop.f32.mrb[6].mxu0  ;;  %v488_v61 = vpop.f32.mrb[6].mxu1 }
 0x100   :  { %v465_v62 = vpop.f32.mrb[7].mxu0  ;;  %v489_v63 = vpop.f32.mrb[7].mxu1 }
 0x101   :  { %v348_v0 = vmul.f32 %v463_v58, %v683_v35  ;;  %v356_v1 = vmul.f32 %v487_v59, %v683_v35  ;;  %v466_v2 = vadd.f32 %v465_v62, %v464_v60  ;;  %v490_v3 = vadd.f32 %v489_v63, %v488_v61 }
 0x103   :  { %v371_v4 = vadd.f32 %v688_v41, %v348_v0  ;;  %v379_v5 = vadd.f32 %v688_v41, %v356_v1  ;;  %v349_v6 = vmul.f32 %v466_v2, %v683_v35  ;;  %v357_v7 = vmul.f32 %v490_v3, %v683_v35 }
 0x105   :  { %387 = vst [vmem:[%s774_s4 + $0x10] sm:$0xff] %v371_v4  ;;  %395 = vst [vmem:[%s774_s4 + $0x50] sm:$0xff] %v379_v5  ;;  %v372_v8 = vadd.f32 %v688_v41, %v349_v6  ;;  %v380_v9 = vadd.f32 %v688_v41, %v357_v7  ;;  %v467_v10 = vpop.f32.mrb[8].mxu0  ;;  %v491_v11 = vpop.f32.mrb[8].mxu1 }
 0x106   :  { %v468_v12 = vpop.f32.mrb[9].mxu0  ;;  %v492_v13 = vpop.f32.mrb[9].mxu1 }
 0x107   :  { %388 = vst [vmem:[%s774_s4 + $0x18] sm:$0xff] %v372_v8  ;;  %396 = vst [vmem:[%s774_s4 + $0x58] sm:$0xff] %v380_v9  ;;  %v469_v14 = vadd.f32 %v468_v12, %v467_v10  ;;  %v493_v15 = vadd.f32 %v492_v13, %v491_v11  ;;  %v470_v16 = vpop.f32.mrb[10].mxu0  ;;  %v494_v17 = vpop.f32.mrb[10].mxu1 }
 0x108   :  { %v471_v18 = vpop.f32.mrb[11].mxu0  ;;  %v495_v19 = vpop.f32.mrb[11].mxu1 }
 0x109   :  { %v350_v20 = vmul.f32 %v469_v14, %v683_v35  ;;  %v358_v21 = vmul.f32 %v493_v15, %v683_v35  ;;  %v472_v22 = vadd.f32 %v471_v18, %v470_v16  ;;  %v496_v23 = vadd.f32 %v495_v19, %v494_v17 }
 0x10b   :  { %v373_v24 = vadd.f32 %v688_v41, %v350_v20  ;;  %v381_v25 = vadd.f32 %v688_v41, %v358_v21  ;;  %v351_v26 = vmul.f32 %v472_v22, %v683_v35  ;;  %v359_v27 = vmul.f32 %v496_v23, %v683_v35 }
 0x10d   :  { %389 = vst [vmem:[%s774_s4 + $0x20] sm:$0xff] %v373_v24  ;;  %397 = vst [vmem:[%s774_s4 + $0x60] sm:$0xff] %v381_v25  ;;  %v374_v28 = vadd.f32 %v688_v41, %v351_v26  ;;  %v382_v29 = vadd.f32 %v688_v41, %v359_v27  ;;  %v473_v30 = vpop.f32.mrb[12].mxu0  ;;  %v497_v31 = vpop.f32.mrb[12].mxu1 }
 0x10e   :  { %v474_v32 = vpop.f32.mrb[13].mxu0  ;;  %v498_v33 = vpop.f32.mrb[13].mxu1 }
 0x10f   :  { %390 = vst [vmem:[%s774_s4 + $0x28] sm:$0xff] %v374_v28  ;;  %398 = vst [vmem:[%s774_s4 + $0x68] sm:$0xff] %v382_v29  ;;  %v475_v34 = vadd.f32 %v474_v32, %v473_v30  ;;  %v499_v36 = vadd.f32 %v498_v33, %v497_v31  ;;  %v476_v37 = vpop.f32.mrb[14].mxu0  ;;  %v500_v38 = vpop.f32.mrb[14].mxu1 }
 0x110   :  { %v477_v39 = vpop.f32.mrb[15].mxu0  ;;  %v501_v40 = vpop.f32.mrb[15].mxu1 }
 0x111   :  { %v352_v42 = vmul.f32 %v475_v34, %v683_v35  ;;  %v360_v43 = vmul.f32 %v499_v36, %v683_v35  ;;  %v478_v44 = vadd.f32 %v477_v39, %v476_v37  ;;  %v502_v45 = vadd.f32 %v501_v40, %v500_v38 }
 0x113   :  { %v375_v46 = vadd.f32 %v688_v41, %v352_v42  ;;  %v383_v47 = vadd.f32 %v688_v41, %v360_v43  ;;  %v353_v48 = vmul.f32 %v478_v44, %v683_v35  ;;  %v361_v49 = vmul.f32 %v502_v45, %v683_v35 }
 0x115   :  { %391 = vst [vmem:[%s774_s4 + $0x30] sm:$0xff] %v375_v46  ;;  %399 = vst [vmem:[%s774_s4 + $0x70] sm:$0xff] %v383_v47  ;;  %v376_v50 = vadd.f32 %v688_v41, %v353_v48  ;;  %v384_v51 = vadd.f32 %v688_v41, %v361_v49 }
 0x117   :  { %392 = vst [vmem:[%s774_s4 + $0x38] sm:$0xff] %v376_v50  ;;  %400 = vst [vmem:[%s774_s4 + $0x78] sm:$0xff] %v384_v51 }

// kernel: discriminator64_forward.14
= control target key start
LH: loop header
LB: loop body
LE: loop exit
PB: predicated region body
PF: predicated region fallthrough
CT: control target
= control target key end

     0   :  { %s305_s0 = inlined_call_operand.vmem [shape: f32[128,128], index: 0, kind: input, shape index: {}]   ;;  %s306_s1 = inlined_call_operand.vmem [shape: f32[1,128], index: 1, kind: input, shape index: {}]   ;;  %s307_s2 = inlined_call_operand.vmem [shape: f32[1,128], index: 2, kind: input, shape index: {}]   ;;  %s308_s3 = inlined_call_operand.vmem [shape: f32[128,128], index: 3, kind: output, shape index: {}]  }
   0x1   :  { %v14_v0 = vld [vmem:[%s305_s0] sm:$0xff]  ;;  %v15_v4 = vld [vmem:[%s305_s0 + $0x8] sm:$0xff]  ;;  %v16_v5 = vld [vmem:[%s305_s0 + $0x10] sm:$0xff] }
   0x2   :  { %v172_v1 = vld [vmem:[%s306_s1] ss:$0 sm:$0xff]  ;;  %v17_v6 = vld [vmem:[%s305_s0 + $0x18] sm:$0xff]  ;;  %v19_v11 = vld [vmem:[%s305_s0 + $0x28] sm:$0xff] }
   0x3   :  { %v177_v2 = vld [vmem:[%s307_s2] ss:$0 sm:$0xff]  ;;  %v37_v3 = vmul.f32 %v172_v1, %v14_v0  ;;  %v38_v7 = vmul.f32 %v172_v1, %v15_v4  ;;  %v39_v8 = vmul.f32 %v172_v1, %v16_v5  ;;  %v40_v9 = vmul.f32 %v172_v1, %v17_v6  ;;  %v20_v12 = vld [vmem:[%s305_s0 + $0x30] sm:$0xff]  ;;  %v21_v17 = vld [vmem:[%s305_s0 + $0x38] sm:$0xff] }
   0x4   :  { %v18_v10 = vld [vmem:[%s305_s0 + $0x20] sm:$0xff]  ;;  %v42_v15 = vmul.f32 %v172_v1, %v19_v11  ;;  %v43_v16 = vmul.f32 %v172_v1, %v20_v12  ;;  %v44_v21 = vmul.f32 %v172_v1, %v21_v17  ;;  %v23_v30 = vld [vmem:[%s305_s0 + $0x48] sm:$0xff]  ;;  %v24_v31 = vld [vmem:[%s305_s0 + $0x50] sm:$0xff] }
   0x5   :  { %v60_v13 = vadd.f32 %v177_v2, %v37_v3  ;;  %v41_v14 = vmul.f32 %v172_v1, %v18_v10  ;;  %v61_v18 = vadd.f32 %v177_v2, %v38_v7  ;;  %v62_v19 = vadd.f32 %v177_v2, %v39_v8  ;;  %v22_v25 = vld [vmem:[%s305_s0 + $0x40] sm:$0xff]  ;;  %v25_v43 = vld [vmem:[%s305_s0 + $0x58] sm:$0xff]  ;;  %v27_v45 = vld [vmem:[%s305_s0 + $0x68] sm:$0xff] }
   0x6   :  { %v63_v20 = vadd.f32 %v177_v2, %v40_v9  ;;  %v65_v24 = vadd.f32 %v177_v2, %v42_v15  ;;  %v66_v37 = vadd.f32 %v177_v2, %v43_v16  ;;  %v67_v38 = vadd.f32 %v177_v2, %v44_v21  ;;  %v26_v44 = vld [vmem:[%s305_s0 + $0x60] sm:$0xff]  ;;  %v28_v56 = vld [vmem:[%s305_s0 + $0x70] sm:$0xff]  ;;  %v29_v4 = vld [vmem:[%s305_s0 + $0x78] sm:$0xff] }
   0x7   :  { %vm76_vm0 = vcmp.gt.f32.partialorder %v60_v13, 0.0  ;;  %v92_v22 = vmul.f32 0.2, %v60_v13  ;;  %v64_v23 = vadd.f32 %v177_v2, %v41_v14  ;;  %vm77_vm1 = vcmp.gt.f32.partialorder %v61_v18, 0.0 }
   0x8   :  { %v93_v26 = vmul.f32 0.2, %v61_v18  ;;  %vm78_vm2 = vcmp.gt.f32.partialorder %v62_v19, 0.0  ;;  %v94_v27 = vmul.f32 0.2, %v62_v19  ;;  %vm79_vm3 = vcmp.gt.f32.partialorder %v63_v20, 0.0 }
   0x9   :  { %v108_v28 = vsel %vm76_vm0, %v60_v13, %v92_v22  ;;  %v95_v29 = vmul.f32 0.2, %v63_v20  ;;  %vm80_vm4 = vcmp.gt.f32.partialorder %v64_v23, 0.0  ;;  %v96_v34 = vmul.f32 0.2, %v64_v23 }
   0xa   :  { %124 = vst [vmem:[%s308_s3] sm:$0xff] %v108_v28  ;;  %v109_v32 = vsel %vm77_vm1, %v61_v18, %v93_v26  ;;  %v110_v33 = vsel %vm78_vm2, %v62_v19, %v94_v27  ;;  %vm81_vm5 = vcmp.gt.f32.partialorder %v65_v24, 0.0  ;;  %v97_v36 = vmul.f32 0.2, %v65_v24 }
   0xb   :  { %125 = vst [vmem:[%s308_s3 + $0x8] sm:$0xff] %v109_v32  ;;  %126 = vst [vmem:[%s308_s3 + $0x10] sm:$0xff] %v110_v33  ;;  %v111_v35 = vsel %vm79_vm3, %v63_v20, %v95_v29  ;;  %v112_v39 = vsel %vm80_vm4, %v64_v23, %v96_v34  ;;  %v45_v40 = vmul.f32 %v172_v1, %v22_v25  ;;  %vm82_vm6 = vcmp.gt.f32.partialorder %v66_v37, 0.0 }
   0xc   :  { %127 = vst [vmem:[%s308_s3 + $0x18] sm:$0xff] %v111_v35  ;;  %v46_v41 = vmul.f32 %v172_v1, %v23_v30  ;;  %v47_v42 = vmul.f32 %v172_v1, %v24_v31  ;;  %128 = vst [vmem:[%s308_s3 + $0x20] sm:$0xff] %v112_v39  ;;  %v113_v46 = vsel %vm81_vm5, %v65_v24, %v97_v36  ;;  %v98_v47 = vmul.f32 0.2, %v66_v37 }
   0xd   :  { %vm83_vm7 = vcmp.gt.f32.partialorder %v67_v38, 0.0  ;;  %129 = vst [vmem:[%s308_s3 + $0x28] sm:$0xff] %v113_v46  ;;  %v99_v48 = vmul.f32 0.2, %v67_v38  ;;  %v68_v49 = vadd.f32 %v177_v2, %v45_v40  ;;  %v48_v53 = vmul.f32 %v172_v1, %v25_v43 }
   0xe   :  { %v69_v50 = vadd.f32 %v177_v2, %v46_v41  ;;  %v70_v51 = vadd.f32 %v177_v2, %v47_v42  ;;  %v114_v52 = vsel %vm82_vm6, %v66_v37, %v98_v47  ;;  %v49_v54 = vmul.f32 %v172_v1, %v26_v44 }
   0xf   :  { %v50_v55 = vmul.f32 %v172_v1, %v27_v45  ;;  %130 = vst [vmem:[%s308_s3 + $0x30] sm:$0xff] %v114_v52  ;;  %v115_v57 = vsel %vm83_vm7, %v67_v38, %v99_v48  ;;  %vm84_vm8 = vcmp.gt.f32.partialorder %v68_v49, 0.0  ;;  %v100_v58 = vmul.f32 0.2, %v68_v49 }
  0x10   :  { %vm85_vm9 = vcmp.gt.f32.partialorder %v69_v50, 0.0  ;;  %131 = vst [vmem:[%s308_s3 + $0x38] sm:$0xff] %v115_v57  ;;  %v101_v59 = vmul.f32 0.2, %v69_v50  ;;  %vm86_vm10 = vcmp.gt.f32.partialorder %v70_v51, 0.0  ;;  %v71_v61 = vadd.f32 %v177_v2, %v48_v53 }
  0x11   :  { %v102_v60 = vmul.f32 0.2, %v70_v51  ;;  %v116_v62 = vsel %vm84_vm8, %v68_v49, %v100_v58  ;;  %v72_v63 = vadd.f32 %v177_v2, %v49_v54  ;;  %v73_v0 = vadd.f32 %v177_v2, %v50_v55 }
  0x12   :  { %v51_v3 = vmul.f32 %v172_v1, %v28_v56  ;;  %132 = vst [vmem:[%s308_s3 + $0x40] sm:$0xff] %v116_v62  ;;  %v117_v5 = vsel %vm85_vm9, %v69_v50, %v101_v59  ;;  %vm87_vm11 = vcmp.gt.f32.partialorder %v71_v61, 0.0  ;;  %v103_v7 = vmul.f32 0.2, %v71_v61 }
  0x13   :  { %v118_v6 = vsel %vm86_vm10, %v70_v51, %v102_v60  ;;  %133 = vst [vmem:[%s308_s3 + $0x48] sm:$0xff] %v117_v5  ;;  %vm88_vm12 = vcmp.gt.f32.partialorder %v72_v63, 0.0  ;;  %v104_v8 = vmul.f32 0.2, %v72_v63  ;;  %vm89_vm13 = vcmp.gt.f32.partialorder %v73_v0, 0.0 }
  0x14   :  { %134 = vst [vmem:[%s308_s3 + $0x50] sm:$0xff] %v118_v6  ;;  %v105_v9 = vmul.f32 0.2, %v73_v0  ;;  %v119_v10 = vsel %vm87_vm11, %v71_v61, %v103_v7  ;;  %v74_v11 = vadd.f32 %v177_v2, %v51_v3  ;;  %v52_v12 = vmul.f32 %v172_v1, %v29_v4 }
  0x15   :  { %135 = vst [vmem:[%s308_s3 + $0x58] sm:$0xff] %v119_v10  ;;  %v120_v13 = vsel %vm88_vm12, %v72_v63, %v104_v8 }
  0x16   :  { %v121_v14 = vsel %vm89_vm13, %v73_v0, %v105_v9  ;;  %136 = vst [vmem:[%s308_s3 + $0x60] sm:$0xff] %v120_v13  ;;  %vm90_vm14 = vcmp.gt.f32.partialorder %v74_v11, 0.0  ;;  %v106_v15 = vmul.f32 0.2, %v74_v11  ;;  %v75_v16 = vadd.f32 %v177_v2, %v52_v12 }
  0x17   :  { %137 = vst [vmem:[%s308_s3 + $0x68] sm:$0xff] %v121_v14 }
  0x18   :  { %v122_v17 = vsel %vm90_vm14, %v74_v11, %v106_v15  ;;  %vm91_vm15 = vcmp.gt.f32.partialorder %v75_v16, 0.0  ;;  %v107_v1 = vmul.f32 0.2, %v75_v16 }
  0x19   :  { %138 = vst [vmem:[%s308_s3 + $0x70] sm:$0xff] %v122_v17 }
  0x1a   :  { %v123_v18 = vsel %vm91_vm15, %v75_v16, %v107_v1 }
  0x1b   :  { %139 = vst [vmem:[%s308_s3 + $0x78] sm:$0xff] %v123_v18 }

// kernel: discriminator64_forward.15
= control target key start
LH: loop header
LB: loop body
LE: loop exit
PB: predicated region body
PF: predicated region fallthrough
CT: control target
= control target key end

     0   :  { %s755_s1 = inlined_call_operand.vmem [shape: bf16[512,128], index: 1, kind: input, shape index: {}]   ;;  %s756_s0 = inlined_call_operand.vmem [shape: bf16[32,512], index: 0, kind: input, shape index: {}]   ;;  %s757_s2 = inlined_call_operand.vmem [shape: f32[1,128], index: 2, kind: input, shape index: {}]   ;;  %s758_s3 = inlined_call_operand.vmem [shape: f32[1,128], index: 3, kind: input, shape index: {}]   ;;  %s759_s4 = inlined_call_operand.vmem [shape: f32[32,128], index: 4, kind: output, shape index: {}]  }
   0x1   :  { %v548_v0 = vld [vmem:[%s755_s1 + $0x40] sm:$0xff]   ;;  %v552_v4 = vld [vmem:[%s755_s1 + $0x48] sm:$0xff]   ;;  %v556_v8 = vld [vmem:[%s755_s1 + $0x50] sm:$0xff]  }
   0x2   :  { %v549_v1 = vld [vmem:[%s755_s1 + $0xc0] sm:$0xff]   ;;  %492 = vmatprep.subr.bf16.mxu0 %v548_v0  ;;  %v553_v5 = vld [vmem:[%s755_s1 + $0xc8] sm:$0xff]   ;;  %v557_v9 = vld [vmem:[%s755_s1 + $0xd0] sm:$0xff]  }
   0x3   :  { %v550_v2 = vld [vmem:[%s755_s1] sm:$0xff]   ;;  %520 = vmatprep.subr.bf16.mxu1 %v549_v1  ;;  %v554_v6 = vld [vmem:[%s755_s1 + $0x8] sm:$0xff]   ;;  %v558_v10 = vld [vmem:[%s755_s1 + $0x10] sm:$0xff]  }
   0x4   :  { %v551_v3 = vld [vmem:[%s755_s1 + $0x80] sm:$0xff]   ;;  %493 = vmatpush3.bf16.msra.mxu0 %v550_v2  ;;  %v555_v7 = vld [vmem:[%s755_s1 + $0x88] sm:$0xff]   ;;  %v559_v11 = vld [vmem:[%s755_s1 + $0x90] sm:$0xff]  }
   0x5   :  { %521 = vmatpush3.bf16.msra.mxu1 %v551_v3  ;;  %494 = vmatprep.subr.bf16.mxu0 %v552_v4  ;;  %v560_v12 = vld [vmem:[%s755_s1 + $0x58] sm:$0xff]   ;;  %v564_v16 = vld [vmem:[%s755_s1 + $0x60] sm:$0xff]   ;;  %v568_v20 = vld [vmem:[%s755_s1 + $0x68] sm:$0xff]  }
   0x6   :  { %522 = vmatprep.subr.bf16.mxu1 %v553_v5  ;;  %v561_v13 = vld [vmem:[%s755_s1 + $0xd8] sm:$0xff]   ;;  %v565_v17 = vld [vmem:[%s755_s1 + $0xe0] sm:$0xff]   ;;  %v569_v21 = vld [vmem:[%s755_s1 + $0xe8] sm:$0xff]  }
   0x7   :  { %v562_v14 = vld [vmem:[%s755_s1 + $0x18] sm:$0xff]   ;;  %v566_v18 = vld [vmem:[%s755_s1 + $0x20] sm:$0xff]   ;;  %v570_v22 = vld [vmem:[%s755_s1 + $0x28] sm:$0xff]  }
   0x8   :  { %495 = vmatpush3.bf16.msra.mxu0 %v554_v6  ;;  %v563_v15 = vld [vmem:[%s755_s1 + $0x98] sm:$0xff]   ;;  %v567_v19 = vld [vmem:[%s755_s1 + $0xa0] sm:$0xff]   ;;  %v571_v23 = vld [vmem:[%s755_s1 + $0xa8] sm:$0xff]  }
   0x9   :  { %523 = vmatpush3.bf16.msra.mxu1 %v555_v7  ;;  %496 = vmatprep.subr.bf16.mxu0 %v556_v8  ;;  %v572_v24 = vld [vmem:[%s755_s1 + $0x70] sm:$0xff]   ;;  %v576_v28 = vld [vmem:[%s755_s1 + $0x78] sm:$0xff]   ;;  %v490_v49 = vld [vmem:[%s757_s2] ss:$0 sm:$0xff] }
   0xa   :  { %524 = vmatprep.subr.bf16.mxu1 %v557_v9  ;;  %v573_v25 = vld [vmem:[%s755_s1 + $0xf0] sm:$0xff]   ;;  %v577_v29 = vld [vmem:[%s755_s1 + $0xf8] sm:$0xff]   ;;  %v491_v54 = vld [vmem:[%s758_s3] ss:$0 sm:$0xff] }
   0xb   :  { %v574_v26 = vld [vmem:[%s755_s1 + $0x30] sm:$0xff]   ;;  %v578_v30 = vld [vmem:[%s755_s1 + $0x38] sm:$0xff]  }
   0xc   :  { %497 = vmatpush3.bf16.msra.mxu0 %v558_v10  ;;  %v575_v27 = vld [vmem:[%s755_s1 + $0xb0] sm:$0xff]   ;;  %v579_v31 = vld [vmem:[%s755_s1 + $0xb8] sm:$0xff]  }
   0xd   :  { %525 = vmatpush3.bf16.msra.mxu1 %v559_v11  ;;  %498 = vmatprep.subr.bf16.mxu0 %v560_v12  ;;  %v580_v32 = vld [vmem:[%s756_s0] ss:$16 sps:$4 sm:$0xff]   ;;  %v582_v33 = vld [vmem:[%s756_s0 + $0x4] ss:$16 sps:$4 sm:$0xff]   ;;  %v583_v34 = vld [vmem:[%s756_s0 + $0x8] ss:$16 sps:$4 sm:$0xff]  }
   0xe   :  { %526 = vmatprep.subr.bf16.mxu1 %v561_v13  ;;  %v585_v35 = vld [vmem:[%s756_s0 + $0xc] ss:$16 sps:$4 sm:$0xff]   ;;  %354 = vmatprep.mubr.bf16.mxu0 %v582_v33  ;;  %v586_v36 = vld [vmem:[%s756_s0 + $0x24] ss:$16 sps:$4 sm:$0xff]   ;;  %v590_v38 = vld [vmem:[%s756_s0 + $0x20] ss:$16 sps:$4 sm:$0xff]  }
   0xf   :  { %403 = vmatprep.mubr.bf16.mxu1 %v585_v35  ;;  %v588_v37 = vld [vmem:[%s756_s0 + $0x2c] ss:$16 sps:$4 sm:$0xff]   ;;  %v591_v39 = vld [vmem:[%s756_s0 + $0x28] ss:$16 sps:$4 sm:$0xff]  }
  0x10   :  { %499 = vmatpush3.bf16.msra.mxu0 %v562_v14 }
  0x11   :  { %527 = vmatpush3.bf16.msra.mxu1 %v563_v15  ;;  %500 = vmatprep.subr.bf16.mxu0 %v564_v16 }
  0x12   :  { %528 = vmatprep.subr.bf16.mxu1 %v565_v17 }
  0x14   :  { %501 = vmatpush3.bf16.msra.mxu0 %v566_v18 }
  0x15   :  { %529 = vmatpush3.bf16.msra.mxu1 %v567_v19  ;;  %502 = vmatprep.subr.bf16.mxu0 %v568_v20 }
  0x16   :  { %530 = vmatprep.subr.bf16.mxu1 %v569_v21 }
  0x18   :  { %503 = vmatpush3.bf16.msra.mxu0 %v570_v22 }
  0x19   :  { %531 = vmatpush3.bf16.msra.mxu1 %v571_v23  ;;  %504 = vmatprep.subr.bf16.mxu0 %v572_v24 }
  0x1a   :  { %532 = vmatprep.subr.bf16.mxu1 %v573_v25 }
  0x1c   :  { %505 = vmatpush3.bf16.msra.mxu0 %v574_v26 }
  0x1d   :  { %533 = vmatpush3.bf16.msra.mxu1 %v575_v27  ;;  %506 = vmatprep.subr.bf16.mxu0 %v576_v28 }
  0x1e   :  { %534 = vmatprep.subr.bf16.mxu1 %v577_v29 }
  0x20   :  { %507 = vmatpush3.bf16.msra.mxu0 %v578_v30 }
  0x21   :  { %535 = vmatpush3.bf16.msra.mxu1 %v579_v31 }
  0x23   :  { %355 = vmatmul.mubr.bf16.vlgmr.msra.gmra.mrb[0].mxu0 %v580_v32 }
  0x24   :  { %404 = vmatmul.mubr.bf16.vlgmr.msra.gmra.mrb[0].mxu1 %v583_v34  ;;  %362 = vmatprep.mubr.bf16.mxu0 %v586_v36 }
  0x25   :  { %411 = vmatprep.mubr.bf16.mxu1 %v588_v37 }
  0x2b   :  { %363 = vmatmul.mubr.bf16.gmra.mrb[4].mxu0 %v590_v38 }
  0x2c   :  { %412 = vmatmul.mubr.bf16.gmra.mrb[4].mxu1 %v591_v39 }
  0xf6   :  { %v508_v40 = vpop.f32.mrb[0].mxu0 }
  0xf7   :  { %v536_v41 = vpop.f32.mrb[0].mxu1  ;;  %v509_v42 = vpop.f32.mrb[1].mxu0 }
  0xf8   :  { %v510_v43 = vadd.f32 %v509_v42, %v508_v40  ;;  %v537_v44 = vpop.f32.mrb[1].mxu1  ;;  %v511_v45 = vpop.f32.mrb[2].mxu0 }
  0xf9   :  { %v538_v46 = vadd.f32 %v537_v44, %v536_v41  ;;  %v539_v47 = vpop.f32.mrb[2].mxu1  ;;  %v512_v48 = vpop.f32.mrb[3].mxu0 }
  0xfa   :  { %v513_v50 = vadd.f32 %v512_v48, %v511_v45  ;;  %v540_v51 = vpop.f32.mrb[3].mxu1 }
  0xfb   :  { %v406_v52 = vadd.f32 %v538_v46, %v510_v43  ;;  %v541_v53 = vadd.f32 %v540_v51, %v539_v47 }
  0xfd   :  { %v427_v55 = vmul.f32 %v490_v49, %v406_v52  ;;  %v409_v56 = vadd.f32 %v541_v53, %v513_v50 }
  0xfe   :  { %v514_v57 = vpop.f32.mrb[4].mxu0 }
  0xff   :  { %v438_v58 = vadd.f32 %v491_v54, %v427_v55  ;;  %v428_v59 = vmul.f32 %v490_v49, %v409_v56  ;;  %v542_v60 = vpop.f32.mrb[4].mxu1  ;;  %v515_v61 = vpop.f32.mrb[5].mxu0 }
 0x100   :  { %v516_v62 = vadd.f32 %v515_v61, %v514_v57  ;;  %v543_v63 = vpop.f32.mrb[5].mxu1  ;;  %v517_v0 = vpop.f32.mrb[6].mxu0 }
 0x101   :  { %442 = vst [vmem:[%s759_s4] sm:$0xff] %v438_v58  ;;  %v439_v1 = vadd.f32 %v491_v54, %v428_v59  ;;  %v544_v2 = vadd.f32 %v543_v63, %v542_v60  ;;  %v545_v3 = vpop.f32.mrb[6].mxu1  ;;  %v518_v4 = vpop.f32.mrb[7].mxu0 }
 0x102   :  { %v519_v5 = vadd.f32 %v518_v4, %v517_v0  ;;  %v546_v6 = vpop.f32.mrb[7].mxu1 }
 0x103   :  { %443 = vst [vmem:[%s759_s4 + $0x8] sm:$0xff] %v439_v1  ;;  %v414_v7 = vadd.f32 %v544_v2, %v516_v62  ;;  %v547_v8 = vadd.f32 %v546_v6, %v545_v3 }
 0x105   :  { %v429_v9 = vmul.f32 %v490_v49, %v414_v7  ;;  %v417_v10 = vadd.f32 %v547_v8, %v519_v5 }
 0x107   :  { %v440_v11 = vadd.f32 %v491_v54, %v429_v9  ;;  %v430_v12 = vmul.f32 %v490_v49, %v417_v10 }
 0x109   :  { %444 = vst [vmem:[%s759_s4 + $0x10] sm:$0xff] %v440_v11  ;;  %v441_v13 = vadd.f32 %v491_v54, %v430_v12 }
 0x10b   :  { %445 = vst [vmem:[%s759_s4 + $0x18] sm:$0xff] %v441_v13 }

// kernel: discriminator64_forward.16
= control target key start
LH: loop header
LB: loop body
LE: loop exit
PB: predicated region body
PF: predicated region fallthrough
CT: control target
= control target key end

     0   :  { %s112_s0 = inlined_call_operand.vmem [shape: f32[32,128], index: 0, kind: input, shape index: {}]   ;;  %s113_s1 = inlined_call_operand.vmem [shape: f32[1,128], index: 1, kind: input, shape index: {}]   ;;  %s114_s2 = inlined_call_operand.vmem [shape: f32[1,128], index: 2, kind: input, shape index: {}]   ;;  %s115_s3 = inlined_call_operand.vmem [shape: f32[32,128], index: 3, kind: output, shape index: {}]  }
   0x1   :  { %v14_v0 = vld [vmem:[%s112_s0] sm:$0xff]  ;;  %v15_v4 = vld [vmem:[%s112_s0 + $0x8] sm:$0xff]  ;;  %v16_v5 = vld [vmem:[%s112_s0 + $0x10] sm:$0xff] }
   0x2   :  { %v60_v1 = vld [vmem:[%s113_s1] ss:$0 sm:$0xff]  ;;  %v17_v6 = vld [vmem:[%s112_s0 + $0x18] sm:$0xff] }
   0x3   :  { %v61_v2 = vld [vmem:[%s114_s2] ss:$0 sm:$0xff]  ;;  %v25_v3 = vmul.f32 %v60_v1, %v14_v0  ;;  %v26_v7 = vmul.f32 %v60_v1, %v15_v4  ;;  %v27_v8 = vmul.f32 %v60_v1, %v16_v5  ;;  %v28_v9 = vmul.f32 %v60_v1, %v17_v6 }
   0x5   :  { %v36_v10 = vadd.f32 %v61_v2, %v25_v3  ;;  %v37_v11 = vadd.f32 %v61_v2, %v26_v7  ;;  %v38_v12 = vadd.f32 %v61_v2, %v27_v8  ;;  %v39_v13 = vadd.f32 %v61_v2, %v28_v9 }
   0x7   :  { %vm40_vm0 = vcmp.gt.f32.partialorder %v36_v10, 0.0  ;;  %v44_v14 = vmul.f32 0.2, %v36_v10  ;;  %vm41_vm1 = vcmp.gt.f32.partialorder %v37_v11, 0.0  ;;  %v45_v15 = vmul.f32 0.2, %v37_v11 }
   0x8   :  { %vm42_vm2 = vcmp.gt.f32.partialorder %v38_v12, 0.0  ;;  %v46_v16 = vmul.f32 0.2, %v38_v12  ;;  %vm43_vm3 = vcmp.gt.f32.partialorder %v39_v13, 0.0  ;;  %v47_v18 = vmul.f32 0.2, %v39_v13 }
   0x9   :  { %v48_v17 = vsel %vm40_vm0, %v36_v10, %v44_v14  ;;  %v49_v19 = vsel %vm41_vm1, %v37_v11, %v45_v15 }
   0xa   :  { %52 = vst [vmem:[%s115_s3] sm:$0xff] %v48_v17  ;;  %v50_v20 = vsel %vm42_vm2, %v38_v12, %v46_v16  ;;  %53 = vst [vmem:[%s115_s3 + $0x8] sm:$0xff] %v49_v19  ;;  %v51_v21 = vsel %vm43_vm3, %v39_v13, %v47_v18 }
   0xb   :  { %54 = vst [vmem:[%s115_s3 + $0x10] sm:$0xff] %v50_v20  ;;  %55 = vst [vmem:[%s115_s3 + $0x18] sm:$0xff] %v51_v21 }

// kernel: discriminator64_forward.17
= control target key start
LH: loop header
LB: loop body
LE: loop exit
PB: predicated region body
PF: predicated region fallthrough
CT: control target
= control target key end

     0   :  { %s1265_s1 = inlined_call_operand.vmem [shape: bf16[1024,128], index: 1, kind: input, shape index: {}]   ;;  %s1266_s0 = inlined_call_operand.vmem [shape: bf16[16,1024], index: 0, kind: input, shape index: {}]   ;;  %s1267_s2 = inlined_call_operand.vmem [shape: f32[1,128], index: 2, kind: input, shape index: {}]   ;;  %s1268_s3 = inlined_call_operand.vmem [shape: f32[1,128], index: 3, kind: input, shape index: {}]   ;;  %s1269_s4 = inlined_call_operand.vmem [shape: f32[16,128], index: 4, kind: output, shape index: {}]  }
   0x1   :  { %v940_v0 = vld [vmem:[%s1265_s1 + $0x40] sm:$0xff]   ;;  %v944_v4 = vld [vmem:[%s1265_s1 + $0x48] sm:$0xff]   ;;  %v948_v8 = vld [vmem:[%s1265_s1 + $0x50] sm:$0xff]  }
   0x2   :  { %v941_v1 = vld [vmem:[%s1265_s1 + $0xc0] sm:$0xff]   ;;  %852 = vmatprep.subr.bf16.mxu0 %v940_v0  ;;  %v945_v5 = vld [vmem:[%s1265_s1 + $0xc8] sm:$0xff]   ;;  %v949_v9 = vld [vmem:[%s1265_s1 + $0xd0] sm:$0xff]  }
   0x3   :  { %v942_v2 = vld [vmem:[%s1265_s1] sm:$0xff]   ;;  %874 = vmatprep.subr.bf16.mxu1 %v941_v1  ;;  %v946_v6 = vld [vmem:[%s1265_s1 + $0x8] sm:$0xff]   ;;  %v950_v10 = vld [vmem:[%s1265_s1 + $0x10] sm:$0xff]  }
   0x4   :  { %v943_v3 = vld [vmem:[%s1265_s1 + $0x80] sm:$0xff]   ;;  %853 = vmatpush3.bf16.msra.mxu0 %v942_v2  ;;  %v947_v7 = vld [vmem:[%s1265_s1 + $0x88] sm:$0xff]   ;;  %v951_v11 = vld [vmem:[%s1265_s1 + $0x90] sm:$0xff]  }
   0x5   :  { %875 = vmatpush3.bf16.msra.mxu1 %v943_v3  ;;  %854 = vmatprep.subr.bf16.mxu0 %v944_v4  ;;  %v952_v12 = vld [vmem:[%s1265_s1 + $0x58] sm:$0xff]   ;;  %v956_v16 = vld [vmem:[%s1265_s1 + $0x60] sm:$0xff]   ;;  %v960_v20 = vld [vmem:[%s1265_s1 + $0x68] sm:$0xff]  }
   0x6   :  { %876 = vmatprep.subr.bf16.mxu1 %v945_v5  ;;  %v953_v13 = vld [vmem:[%s1265_s1 + $0xd8] sm:$0xff]   ;;  %v957_v17 = vld [vmem:[%s1265_s1 + $0xe0] sm:$0xff]   ;;  %v961_v21 = vld [vmem:[%s1265_s1 + $0xe8] sm:$0xff]  }
   0x7   :  { %v954_v14 = vld [vmem:[%s1265_s1 + $0x18] sm:$0xff]   ;;  %v958_v18 = vld [vmem:[%s1265_s1 + $0x20] sm:$0xff]   ;;  %v962_v22 = vld [vmem:[%s1265_s1 + $0x28] sm:$0xff]  }
   0x8   :  { %855 = vmatpush3.bf16.msra.mxu0 %v946_v6  ;;  %v955_v15 = vld [vmem:[%s1265_s1 + $0x98] sm:$0xff]   ;;  %v959_v19 = vld [vmem:[%s1265_s1 + $0xa0] sm:$0xff]   ;;  %v963_v23 = vld [vmem:[%s1265_s1 + $0xa8] sm:$0xff]  }
   0x9   :  { %877 = vmatpush3.bf16.msra.mxu1 %v947_v7  ;;  %856 = vmatprep.subr.bf16.mxu0 %v948_v8  ;;  %v964_v24 = vld [vmem:[%s1265_s1 + $0x70] sm:$0xff]   ;;  %v968_v28 = vld [vmem:[%s1265_s1 + $0x78] sm:$0xff]   ;;  %v18_v32 = vld [vmem:[%s1266_s0] sm:$0xff] }
   0xa   :  { %878 = vmatprep.subr.bf16.mxu1 %v949_v9  ;;  %v965_v25 = vld [vmem:[%s1265_s1 + $0xf0] sm:$0xff]   ;;  %v969_v29 = vld [vmem:[%s1265_s1 + $0xf8] sm:$0xff]   ;;  %v22_v33 = vld [vmem:[%s1266_s0 + $0x20] sm:$0xff] }
   0xb   :  { %v966_v26 = vld [vmem:[%s1265_s1 + $0x30] sm:$0xff]   ;;  %v970_v30 = vld [vmem:[%s1265_s1 + $0x38] sm:$0xff]   ;;  %v19_v34 = vld [vmem:[%s1266_s0 + $0x8] sm:$0xff]  ;;  %v778_v35 = vcombine.low %v18_v32, %v22_v33  ;;  %v779_v36 = vcombine.high %v18_v32, %v22_v33 }
   0xc   :  { %857 = vmatpush3.bf16.msra.mxu0 %v950_v10  ;;  %v967_v27 = vld [vmem:[%s1265_s1 + $0xb0] sm:$0xff]   ;;  %v971_v31 = vld [vmem:[%s1265_s1 + $0xb8] sm:$0xff]   ;;  %v23_v37 = vld [vmem:[%s1266_s0 + $0x28] sm:$0xff] }
   0xd   :  { %879 = vmatpush3.bf16.msra.mxu1 %v951_v11  ;;  %858 = vmatprep.subr.bf16.mxu0 %v952_v12  ;;  %v780_v38 = vcombine.low %v19_v34, %v23_v37  ;;  %v781_v39 = vcombine.high %v19_v34, %v23_v37  ;;  %v972_v40 = vld [vmem:[%s1265_s1 + $0x140] sm:$0xff]   ;;  %v976_v44 = vld [vmem:[%s1265_s1 + $0x148] sm:$0xff]   ;;  %v980_v48 = vld [vmem:[%s1265_s1 + $0x150] sm:$0xff]  }
   0xe   :  { %880 = vmatprep.subr.bf16.mxu1 %v953_v13  ;;  %610 = vmatprep.mubr.bf16.mxu0 %v779_v36  ;;  %v973_v41 = vld [vmem:[%s1265_s1 + $0x1c0] sm:$0xff]   ;;  %v977_v45 = vld [vmem:[%s1265_s1 + $0x1c8] sm:$0xff]   ;;  %v981_v49 = vld [vmem:[%s1265_s1 + $0x1d0] sm:$0xff]  }
   0xf   :  { %651 = vmatprep.mubr.bf16.mxu1 %v781_v39  ;;  %v974_v42 = vld [vmem:[%s1265_s1 + $0x100] sm:$0xff]   ;;  %v978_v46 = vld [vmem:[%s1265_s1 + $0x108] sm:$0xff]   ;;  %v982_v50 = vld [vmem:[%s1265_s1 + $0x110] sm:$0xff]  }
  0x10   :  { %859 = vmatpush3.bf16.msra.mxu0 %v954_v14  ;;  %v975_v43 = vld [vmem:[%s1265_s1 + $0x180] sm:$0xff]   ;;  %v979_v47 = vld [vmem:[%s1265_s1 + $0x188] sm:$0xff]   ;;  %v983_v51 = vld [vmem:[%s1265_s1 + $0x190] sm:$0xff]  }
  0x11   :  { %881 = vmatpush3.bf16.msra.mxu1 %v955_v15  ;;  %860 = vmatprep.subr.bf16.mxu0 %v956_v16  ;;  %v984_v52 = vld [vmem:[%s1265_s1 + $0x158] sm:$0xff]   ;;  %v988_v56 = vld [vmem:[%s1265_s1 + $0x160] sm:$0xff]   ;;  %v992_v60 = vld [vmem:[%s1265_s1 + $0x168] sm:$0xff]  }
  0x12   :  { %882 = vmatprep.subr.bf16.mxu1 %v957_v17  ;;  %v985_v53 = vld [vmem:[%s1265_s1 + $0x1d8] sm:$0xff]   ;;  %v989_v57 = vld [vmem:[%s1265_s1 + $0x1e0] sm:$0xff]   ;;  %v993_v61 = vld [vmem:[%s1265_s1 + $0x1e8] sm:$0xff]  }
  0x13   :  { %v986_v54 = vld [vmem:[%s1265_s1 + $0x118] sm:$0xff]   ;;  %v990_v58 = vld [vmem:[%s1265_s1 + $0x120] sm:$0xff]   ;;  %v994_v62 = vld [vmem:[%s1265_s1 + $0x128] sm:$0xff]  }
  0x14   :  { %861 = vmatpush3.bf16.msra.mxu0 %v958_v18  ;;  %v987_v55 = vld [vmem:[%s1265_s1 + $0x198] sm:$0xff]   ;;  %v991_v59 = vld [vmem:[%s1265_s1 + $0x1a0] sm:$0xff]   ;;  %v995_v63 = vld [vmem:[%s1265_s1 + $0x1a8] sm:$0xff]  }
  0x15   :  { %883 = vmatpush3.bf16.msra.mxu1 %v959_v19  ;;  %862 = vmatprep.subr.bf16.mxu0 %v960_v20  ;;  %v996_v0 = vld [vmem:[%s1265_s1 + $0x170] sm:$0xff]   ;;  %v1000_v4 = vld [vmem:[%s1265_s1 + $0x178] sm:$0xff]  }
  0x16   :  { %884 = vmatprep.subr.bf16.mxu1 %v961_v21  ;;  %v997_v1 = vld [vmem:[%s1265_s1 + $0x1f0] sm:$0xff]   ;;  %v1001_v5 = vld [vmem:[%s1265_s1 + $0x1f8] sm:$0xff]  }
  0x17   :  { %v998_v2 = vld [vmem:[%s1265_s1 + $0x130] sm:$0xff]   ;;  %v1002_v6 = vld [vmem:[%s1265_s1 + $0x138] sm:$0xff]  }
  0x18   :  { %863 = vmatpush3.bf16.msra.mxu0 %v962_v22  ;;  %v999_v3 = vld [vmem:[%s1265_s1 + $0x1b0] sm:$0xff]   ;;  %v1003_v7 = vld [vmem:[%s1265_s1 + $0x1b8] sm:$0xff]  }
  0x19   :  { %885 = vmatpush3.bf16.msra.mxu1 %v963_v23  ;;  %864 = vmatprep.subr.bf16.mxu0 %v964_v24  ;;  %v20_v8 = vld [vmem:[%s1266_s0 + $0x10] sm:$0xff]  ;;  %v21_v12 = vld [vmem:[%s1266_s0 + $0x18] sm:$0xff] }
  0x1a   :  { %886 = vmatprep.subr.bf16.mxu1 %v965_v25  ;;  %v24_v9 = vld [vmem:[%s1266_s0 + $0x30] sm:$0xff]  ;;  %v25_v13 = vld [vmem:[%s1266_s0 + $0x38] sm:$0xff] }
  0x1b   :  { %v782_v10 = vcombine.low %v20_v8, %v24_v9  ;;  %v783_v11 = vcombine.high %v20_v8, %v24_v9  ;;  %v784_v14 = vcombine.low %v21_v12, %v25_v13  ;;  %v785_v15 = vcombine.high %v21_v12, %v25_v13 }
  0x1c   :  { %865 = vmatpush3.bf16.msra.mxu0 %v966_v26 }
  0x1d   :  { %887 = vmatpush3.bf16.msra.mxu1 %v967_v27  ;;  %866 = vmatprep.subr.bf16.mxu0 %v968_v28 }
  0x1e   :  { %888 = vmatprep.subr.bf16.mxu1 %v969_v29 }
  0x20   :  { %867 = vmatpush3.bf16.msra.mxu0 %v970_v30 }
  0x21   :  { %889 = vmatpush3.bf16.msra.mxu1 %v971_v31  ;;  %896 = vmatprep.subr.bf16.mxu0 %v972_v40 }
  0x22   :  { %918 = vmatprep.subr.bf16.mxu1 %v973_v41 }
  0x23   :  { %611 = vmatmul.mubr.bf16.vlgmr.msra.gmra.mrb[0].mxu0 %v778_v35 }
  0x24   :  { %652 = vmatmul.mubr.bf16.vlgmr.msra.gmra.mrb[0].mxu1 %v780_v38  ;;  %897 = vmatpush3.bf16.msra.mxu0 %v974_v42  ;;  %v850_v42 = vld [vmem:[%s1267_s2] ss:$0 sm:$0xff] }
  0x25   :  { %919 = vmatpush3.bf16.msra.mxu1 %v975_v43  ;;  %898 = vmatprep.subr.bf16.mxu0 %v976_v44 }
  0x26   :  { %920 = vmatprep.subr.bf16.mxu1 %v977_v45  ;;  %692 = vmatprep.mubr.bf16.mxu0 %v783_v11 }
  0x27   :  { %733 = vmatprep.mubr.bf16.mxu1 %v785_v15 }
  0x28   :  { %899 = vmatpush3.bf16.msra.mxu0 %v978_v46  ;;  %v851_v46 = vld [vmem:[%s1268_s3] ss:$0 sm:$0xff] }
  0x29   :  { %921 = vmatpush3.bf16.msra.mxu1 %v979_v47  ;;  %900 = vmatprep.subr.bf16.mxu0 %v980_v48 }
  0x2a   :  { %922 = vmatprep.subr.bf16.mxu1 %v981_v49 }
  0x2c   :  { %901 = vmatpush3.bf16.msra.mxu0 %v982_v50 }
  0x2d   :  { %923 = vmatpush3.bf16.msra.mxu1 %v983_v51  ;;  %902 = vmatprep.subr.bf16.mxu0 %v984_v52 }
  0x2e   :  { %924 = vmatprep.subr.bf16.mxu1 %v985_v53 }
  0x30   :  { %903 = vmatpush3.bf16.msra.mxu0 %v986_v54 }
  0x31   :  { %925 = vmatpush3.bf16.msra.mxu1 %v987_v55  ;;  %904 = vmatprep.subr.bf16.mxu0 %v988_v56 }
  0x32   :  { %926 = vmatprep.subr.bf16.mxu1 %v989_v57 }
  0x34   :  { %905 = vmatpush3.bf16.msra.mxu0 %v990_v58 }
  0x35   :  { %927 = vmatpush3.bf16.msra.mxu1 %v991_v59  ;;  %906 = vmatprep.subr.bf16.mxu0 %v992_v60 }
  0x36   :  { %928 = vmatprep.subr.bf16.mxu1 %v993_v61 }
  0x38   :  { %907 = vmatpush3.bf16.msra.mxu0 %v994_v62 }
  0x39   :  { %929 = vmatpush3.bf16.msra.mxu1 %v995_v63  ;;  %908 = vmatprep.subr.bf16.mxu0 %v996_v0 }
  0x3a   :  { %930 = vmatprep.subr.bf16.mxu1 %v997_v1 }
  0x3c   :  { %909 = vmatpush3.bf16.msra.mxu0 %v998_v2 }
  0x3d   :  { %931 = vmatpush3.bf16.msra.mxu1 %v999_v3  ;;  %910 = vmatprep.subr.bf16.mxu0 %v1000_v4 }
  0x3e   :  { %932 = vmatprep.subr.bf16.mxu1 %v1001_v5 }
  0x40   :  { %911 = vmatpush3.bf16.msra.mxu0 %v1002_v6 }
  0x41   :  { %933 = vmatpush3.bf16.msra.mxu1 %v1003_v7 }
  0x43   :  { %693 = vmatmul.mubr.bf16.vlgmr.msra.gmra.mrb[4].mxu0 %v782_v10 }
  0x44   :  { %734 = vmatmul.mubr.bf16.vlgmr.msra.gmra.mrb[4].mxu1 %v784_v14 }
  0xf6   :  { %v868_v16 = vpop.f32.mrb[0].mxu0 }
  0xf7   :  { %v890_v17 = vpop.f32.mrb[0].mxu1  ;;  %v869_v18 = vpop.f32.mrb[1].mxu0 }
  0xf8   :  { %v870_v19 = vadd.f32 %v869_v18, %v868_v16  ;;  %v891_v20 = vpop.f32.mrb[1].mxu1  ;;  %v871_v21 = vpop.f32.mrb[2].mxu0 }
  0xf9   :  { %v892_v22 = vadd.f32 %v891_v20, %v890_v17  ;;  %v893_v23 = vpop.f32.mrb[2].mxu1  ;;  %v872_v24 = vpop.f32.mrb[3].mxu0 }
  0xfa   :  { %v873_v25 = vadd.f32 %v872_v24, %v871_v21  ;;  %v894_v26 = vpop.f32.mrb[3].mxu1 }
  0xfb   :  { %v654_v27 = vadd.f32 %v892_v22, %v870_v19  ;;  %v895_v28 = vadd.f32 %v894_v26, %v893_v23 }
  0xfd   :  { %v657_v29 = vadd.f32 %v895_v28, %v873_v25 }
 0x116   :  { %v912_v30 = vpop.f32.mrb[4].mxu0 }
 0x117   :  { %v934_v31 = vpop.f32.mrb[4].mxu1  ;;  %v913_v32 = vpop.f32.mrb[5].mxu0 }
 0x118   :  { %v914_v33 = vadd.f32 %v913_v32, %v912_v30  ;;  %v935_v34 = vpop.f32.mrb[5].mxu1  ;;  %v915_v35 = vpop.f32.mrb[6].mxu0 }
 0x119   :  { %v936_v36 = vadd.f32 %v935_v34, %v934_v31  ;;  %v937_v37 = vpop.f32.mrb[6].mxu1  ;;  %v916_v38 = vpop.f32.mrb[7].mxu0 }
 0x11a   :  { %v695_v39 = vadd.f32 %v914_v33, %v654_v27  ;;  %v917_v40 = vadd.f32 %v916_v38, %v915_v35  ;;  %v938_v41 = vpop.f32.mrb[7].mxu1 }
 0x11b   :  { %v939_v43 = vadd.f32 %v938_v41, %v937_v37 }
 0x11c   :  { %v736_v44 = vadd.f32 %v936_v36, %v695_v39  ;;  %v698_v45 = vadd.f32 %v917_v40, %v657_v29 }
 0x11e   :  { %v749_v47 = vmul.f32 %v850_v42, %v736_v44  ;;  %v739_v48 = vadd.f32 %v939_v43, %v698_v45 }
 0x120   :  { %v758_v49 = vadd.f32 %v851_v46, %v749_v47  ;;  %v750_v50 = vmul.f32 %v850_v42, %v739_v48 }
 0x122   :  { %v760_v51 = vsub.f32 0.0, %v758_v49  ;;  %v759_v52 = vadd.f32 %v851_v46, %v750_v50 }
 0x124   :  { %v762_v53 = vmul.f32 1.442695, %v760_v51  ;;  %v761_v54 = vsub.f32 0.0, %v759_v52 }
 0x126   :  { %1004 = vpow2.f32 %v762_v53  ;;  %v764_v55 = vmul.f32 1.442695, %v761_v54 }
 0x128   :  { %1006 = vpow2.f32 %v764_v55 }
 0x130   :  { %v1005_v56 = vpop.eup %1004 }
 0x131   :  { %v766_v57 = vadd.f32 1.0, %v1005_v56 }
 0x132   :  { %v1007_v58 = vpop.eup %1006 }
 0x133   :  { %1008 = vrcp.f32 %v766_v57  ;;  %v767_v59 = vadd.f32 1.0, %v1007_v58 }
 0x135   :  { %1010 = vrcp.f32 %v767_v59 }
 0x13d   :  { %v1009_v60 = vpop.eup %1008 }
 0x13e   :  { %772 = vst [vmem:[%s1269_s4] sm:$0xff] %v1009_v60 }
 0x13f   :  { %v1011_v61 = vpop.eup %1010 }
 0x140   :  { %773 = vst [vmem:[%s1269_s4 + $0x8] sm:$0xff] %v1011_v61 }

</bundles_post_ra>
